<compile_context>
chip_gen: v5e
topology: v5e:2x2
jax: 0.10.0
libtpu: 0.0.40
codegen_flags: <defaults>
</compile_context>

<pallas_src>
import math

import jax
import jax.numpy as jnp
from jax.experimental import pallas as pl
from jax.experimental.pallas import tpu as pltpu


H1, H2 = 512, 256
OUT_W = 128          # lane-dense padding of the final 1-wide output
_HEADROOM = 2 << 20  # VMEM headroom for compiler scratch


def _round_up(n, m):
    return ((n + m - 1) // m) * m


def _mlp_kernel(x_ref, w1_ref, b1_ref, w2_ref, b2_ref, w3_ref, b3_ref,
                o_ref, acc_ref):
    """One (batch tile, K tile) step of the 3-layer MLP."""
    k = pl.program_id(1)

    @pl.when(k == 0)
    def _():
        acc_ref[...] = jnp.zeros_like(acc_ref)

    # Layer 1 partial product for this K slice: (tb, tk) @ (tk, 512) -> f32 acc.
    acc_ref[...] += jnp.dot(x_ref[...], w1_ref[...],
                            preferred_element_type=jnp.float32)

    @pl.when(k == pl.num_programs(1) - 1)
    def _():
        h1 = acc_ref[...] + b1_ref[...]
        h1 = jnp.maximum(h1, 0.2 * h1)                       # LeakyReLU(0.2)
        h2 = jnp.dot(h1.astype(w2_ref.dtype), w2_ref[...],
                     preferred_element_type=jnp.float32) + b2_ref[...]
        h2 = jnp.maximum(h2, 0.2 * h2)                       # LeakyReLU(0.2)
        h3 = jnp.dot(h2.astype(w3_ref.dtype), w3_ref[...],
                     preferred_element_type=jnp.float32) + b3_ref[...]
        o_ref[...] = jax.nn.sigmoid(h3)                      # col 0 is the logit


def init_params(key, num_classes, img_h, img_w):
    """Deterministic init matching nn.Linear defaults: U(-1/sqrt(fan_in), +)."""
    D = num_classes * img_h * img_w
    dims = [(D, H1), (H1, H2), (H2, 1)]
    params = []
    for fan_in, fan_out in dims:
        key, kw, kb = jax.random.split(key, 3)
        bound = 1.0 / math.sqrt(fan_in)
        w = jax.random.uniform(kw, (fan_in, fan_out), jnp.float32, -bound, bound)
        b = jax.random.uniform(kb, (fan_out,), jnp.float32, -bound, bound)
        params += [w, b]
    return tuple(params)


def prepare_params(params, param_dtype=jnp.float32):
    """One-time prep: pad D to 128, lane-pad last layer, reshape biases.

    param_dtype=jnp.bfloat16 casts weight matrices for the MXU (f32 accumulation
    in-kernel); biases stay f32.
    """
    w1, b1, w2, b2, w3, b3 = params
    D = w1.shape[0]
    D_pad = _round_up(D, 128)
    if D_pad != D:
        w1 = jnp.pad(w1, ((0, D_pad - D), (0, 0)))
    w3_p = jnp.zeros((w3.shape[0], OUT_W), jnp.float32).at[:, 0].set(w3[:, 0])
    b3_p = jnp.zeros((OUT_W,), jnp.float32).at[0].set(b3[0])
    return dict(
        w1=w1.astype(param_dtype),
        b1=b1.reshape(1, H1).astype(jnp.float32),
        w2=w2.astype(param_dtype),
        b2=b2.reshape(1, H2).astype(jnp.float32),
        w3=w3_p.astype(param_dtype),
        b3=b3_p.reshape(1, OUT_W).astype(jnp.float32),
        d_in=D,
    )


def _vmem_ceiling():
    """Per-TC VMEM budget: ~72% of physical (v7x ~46 MiB, v5e/v6e ~92 MiB)."""
    cap = None
    try:
        cap = getattr(pltpu.get_tpu_info(), "vmem_capacity_bytes", None)
    except Exception:
        cap = None
    if not cap:
        cap = 64 << 20          # conservative default: v7x per-TC VMEM
    return min(int(cap * 0.72), 100 << 20)


def _plan_tiles(B, D_pad, x_isz, w_isz, ceiling, sublane):
    """Pick (tb, tk).  tk == D_pad means w1 is fully VMEM-resident (1 K step)."""
    tb_cap = _round_up(B, sublane)
    fixed = ((H1 * H2 + H2 * OUT_W) * w_isz      # resident w2, w3 (single-buffered)
             + (H1 + H2 + OUT_W) * 4             # resident biases
             + _HEADROOM)

    def resident_need(tb):
        return (fixed
                + D_pad * H1 * w_isz             # w1 resident, single buffer
                + 2 * tb * D_pad * x_isz         # x tile, double-buffered
                + 2 * tb * OUT_W * 4             # out tile, double-buffered
                + tb * (2 * H1 + H2) * 4)        # acc scratch + live h1/h2

    # Prefer the largest batch tile for which w1 stays resident.
    for tb in [t for t in (min(512, tb_cap), 256, 128, 64, 32, 16, 8)
               if t <= tb_cap and t % sublane == 0]:
        if resident_need(tb) <= ceiling:
            return tb, D_pad

    # Otherwise stream w1 along a K (reduction) axis.
    tb = min(256, tb_cap)
    budget = ceiling - fixed - 2 * tb * OUT_W * 4 - tb * (2 * H1 + H2) * 4
    per_tk = 2 * tb * x_isz + 2 * H1 * w_isz     # x + streamed w1, double-buffered
    max_tk = max(budget // per_tk, 128)
    m = D_pad // 128
    tk = 128
    for d in range(1, m + 1):                    # largest 128*divisor of D_pad <= max_tk
        if m % d == 0 and 128 * d <= max_tk:
            tk = 128 * d
    return tb, tk


def _build_in_specs(tb, tk, num_k, single_buffer):
    def const(shape):
        if single_buffer:
            return pl.BlockSpec(shape, lambda i, k: (0, 0),
                                pipeline_mode=pl.Buffered(1))
        return pl.BlockSpec(shape, lambda i, k: (0, 0))

    w1_map = lambda i, k: (k, 0)
    if num_k == 1 and single_buffer:
        w1_spec = pl.BlockSpec((tk, H1), w1_map, pipeline_mode=pl.Buffered(1))
    else:
        w1_spec = pl.BlockSpec((tk, H1), w1_map)   # streamed -> keep double-buffer

    return [
        pl.BlockSpec((tb, tk), lambda i, k: (i, k)),   # x tile (pipelined)
        w1_spec,
        const((1, H1)),
        const((H1, H2)),
        const((1, H2)),
        const((H2, OUT_W)),
        const((1, OUT_W)),
    ]


def _call(xf, w1, b1, w2, b2, w3, b3, *, tb, tk, single_buffer):
    B = xf.shape[0]
    D_pad = w1.shape[0]
    num_b = pl.cdiv(B, tb)
    num_k = D_pad // tk
    x_isz = jnp.dtype(xf.dtype).itemsize
    w_isz = jnp.dtype(w1.dtype).itemsize

    w1_bufs = 1 if (num_k == 1 and single_buffer) else 2
    wb_bufs = 1 if single_buffer else 2
    need = (2 * tb * tk * x_isz
            + w1_bufs * tk * H1 * w_isz
            + wb_bufs * ((H1 * H2 + H2 * OUT_W) * w_isz + (H1 + H2 + OUT_W) * 4)
            + 2 * tb * OUT_W * 4
            + tb * (2 * H1 + H2) * 4
            + _HEADROOM)
    vmem_limit = int(min(max(need, 32 << 20), _vmem_ceiling()))

    cost = pl.CostEstimate(
        flops=2 * num_b * tb * (D_pad * H1 + H1 * H2 + H2 * OUT_W),
        transcendentals=num_b * tb * OUT_W,                      # sigmoid
        bytes_accessed=(B * D_pad * x_isz + B * OUT_W * 4
                        + (num_b if num_k > 1 else 1) * D_pad * H1 * w_isz
                        + (H1 * H2 + H2 * OUT_W) * w_isz
                        + (H1 + H2 + OUT_W) * 4),
    )

    return pl.pallas_call(
        _mlp_kernel,
        out_shape=jax.ShapeDtypeStruct((B, OUT_W), jnp.float32),
        grid_spec=pltpu.PrefetchScalarGridSpec(
            num_scalar_prefetch=0,
            grid=(num_b, num_k),
            in_specs=_build_in_specs(tb, tk, num_k, single_buffer),
            out_specs=pl.BlockSpec((tb, OUT_W), lambda i, k: (i, 0)),
            scratch_shapes=[pltpu.VMEM((tb, H1), jnp.float32)],
        ),
        compiler_params=pltpu.CompilerParams(
            dimension_semantics=("parallel", "arbitrary"),  # batch across TCs; K reduce
            vmem_limit_bytes=vmem_limit,
        ),
        cost_estimate=cost,
    )(xf, w1, b1, w2, b2, w3, b3)


def aal_discriminator_forward(x, prepared_params, *, tb=None, tk=None):
    """x: (B, C, H, W); prepared_params from prepare_params().  Returns (B,) f32."""
    p = prepared_params
    w1, b1, w2, b2, w3, b3 = p["w1"], p["b1"], p["w2"], p["b2"], p["w3"], p["b3"]
    d_in = p["d_in"]

    B = x.shape[0]
    xf = x.reshape(B, -1)                        # NCHW flatten, matches torch .view
    if xf.shape[1] != d_in:
        raise ValueError(
            f"flattened input dim {xf.shape[1]} != expected {d_in} from params")
    # Stream activations in the weight dtype (bf16 halves x DMA bytes; the cast
    # fuses with the flatten here, outside the kernel).  No-op for f32.
    xf = xf.astype(w1.dtype)
    D_pad = w1.shape[0]
    if D_pad != d_in:
        xf = jnp.pad(xf, ((0, 0), (0, D_pad - d_in)))

    x_isz = jnp.dtype(xf.dtype).itemsize
    w_isz = jnp.dtype(w1.dtype).itemsize
    sublane = 16 if x_isz == 2 else 8
    tb_auto, tk_auto = _plan_tiles(B, D_pad, x_isz, w_isz, _vmem_ceiling(), sublane)
    tb = tb_auto if tb is None else _round_up(tb, sublane)
    tk = tk_auto if tk is None else tk
    if tk % 128 != 0 or D_pad % tk != 0:
        raise ValueError(f"tk={tk} must be a multiple of 128 that divides {D_pad}")

    try:
        out = _call(xf, w1, b1, w2, b2, w3, b3, tb=tb, tk=tk, single_buffer=True)
    except Exception:
        # Fallback if this Pallas version rejects pl.Buffered(1) resident specs.
        out = _call(xf, w1, b1, w2, b2, w3, b3, tb=tb, tk=tk, single_buffer=False)

    return out[:, 0]                              # -> (B,), matches .view(-1)


def reference_forward(x, params):
    """Plain-JAX f32 reference for correctness checks."""
    w1, b1, w2, b2, w3, b3 = params
    h = x.reshape(x.shape[0], -1)
    h = h @ w1 + b1
    h = jnp.where(h > 0, h, 0.2 * h)
    h = h @ w2 + b2
    h = jnp.where(h > 0, h, 0.2 * h)
    h = h @ w3 + b3
    return jax.nn.sigmoid(h).reshape(-1)


if __name__ == "__main__":
    # Small shapes consistent with the module: num_classes=4, 16x16 images.
    B, C, H, W = 2, 4, 16, 16

    key = jax.random.PRNGKey(0)
    kx, kx2, kp = jax.random.split(key, 3)
    x = jax.random.normal(kx, (B, C, H, W), jnp.float32)
    params = init_params(kp, C, H, W)
    ref = jax.block_until_ready(reference_forward(x, params))

    # 1) f32 weights, w1 fully resident: tight match against the reference.
    p_f32 = prepare_params(params, jnp.float32)
    out = jax.block_until_ready(aal_discriminator_forward(x, p_f32))
    assert out.shape == (B,), out.shape
    assert jnp.allclose(out, ref, atol=1e-5, rtol=1e-5), (out, ref)

    # 2) Forced K-streaming path (tk=128 -> 8 reduction steps over D=1024).
    out_k = jax.block_until_ready(aal_discriminator_forward(x, p_f32, tk=128))
    assert jnp.allclose(out_k, ref, atol=1e-5, rtol=1e-5), (out_k, ref)

    # 3) Ragged batch (B not a multiple of the tile): masked last-block store.
    x10 = jax.random.normal(kx2, (10, C, H, W), jnp.float32)
    ref10 = jax.block_until_ready(reference_forward(x10, params))
    out10 = jax.block_until_ready(aal_discriminator_forward(x10, p_f32))
    assert out10.shape == (10,), out10.shape
    assert jnp.allclose(out10, ref10, atol=1e-5, rtol=1e-5), (out10, ref10)

    # 4) bf16 weights + bf16 x streaming (MXU fast path): looser tolerance.
    p_bf16 = prepare_params(params, jnp.bfloat16)
    out_bf = jax.block_until_ready(aal_discriminator_forward(x, p_bf16))
    assert out_bf.shape == (B,), out_bf.shape
    assert jnp.allclose(out_bf, ref, atol=2e-2, rtol=2e-2), (out_bf, ref)

    print("KERNEL_OK")
</pallas_src>

<mosaic_0001>
module attributes {stable_mosaic.version = 11 : i64} {
  func.func @_mlp_kernel(%arg0: i32, %arg1: i32, %arg2: memref<8x1024xf32, #tpu.memory_space<vmem>>, %arg3: memref<1024x512xf32, #tpu.memory_space<vmem>>, %arg4: memref<1x512xf32, #tpu.memory_space<vmem>>, %arg5: memref<512x256xf32, #tpu.memory_space<vmem>>, %arg6: memref<1x256xf32, #tpu.memory_space<vmem>>, %arg7: memref<256x128xf32, #tpu.memory_space<vmem>>, %arg8: memref<1x128xf32, #tpu.memory_space<vmem>>, %arg9: memref<8x128xf32, #tpu.memory_space<vmem>>, %arg10: memref<8x512xf32, #tpu.memory_space<vmem>>) attributes {dimension_semantics = [#tpu.dimension_semantics<parallel>, #tpu.dimension_semantics<arbitrary>], iteration_bounds = array<i64: 1, 1>, scalar_prefetch = 0 : i64, scratch_operands = 1 : i64, tpu.core_type = #tpu.core_type<tc>, window_params = [{transform_indices = @transform_0, window_bounds = array<i64: 8, 1024>}, {pipeline_mode = #tpu.pipeline_mode<synchronous>, transform_indices = @transform_1, window_bounds = array<i64: 1024, 512>}, {pipeline_mode = #tpu.pipeline_mode<synchronous>, transform_indices = @transform_2, window_bounds = array<i64: 1, 512>}, {pipeline_mode = #tpu.pipeline_mode<synchronous>, transform_indices = @transform_3, window_bounds = array<i64: 512, 256>}, {pipeline_mode = #tpu.pipeline_mode<synchronous>, transform_indices = @transform_4, window_bounds = array<i64: 1, 256>}, {pipeline_mode = #tpu.pipeline_mode<synchronous>, transform_indices = @transform_5, window_bounds = array<i64: 256, 128>}, {pipeline_mode = #tpu.pipeline_mode<synchronous>, transform_indices = @transform_6, window_bounds = array<i64: 1, 128>}, {transform_indices = @transform_7, window_bounds = array<i64: 8, 128>}]} {
    %c0_i32 = arith.constant 0 : i32
    %0 = arith.cmpi eq, %arg1, %c0_i32 : i32
    %1 = arith.extui %0 : i1 to i32
    %c0_i32_0 = arith.constant 0 : i32
    %2 = arith.cmpi ne, %1, %c0_i32_0 : i32
    scf.if %2 {
      %cst_10 = arith.constant 0.000000e+00 : f32
      %12 = vector.broadcast %cst_10 : f32 to vector<8x512xf32>
      %c0_11 = arith.constant 0 : index
      %c0_12 = arith.constant 0 : index
      %13 = vector.load %arg10[%c0_11, %c0_12] : memref<8x512xf32, #tpu.memory_space<vmem>>, vector<8x512xf32>
      tpu.vector_store %arg10[%c0_11, %c0_12], %12 {strides = array<i32>} : memref<8x512xf32, #tpu.memory_space<vmem>>, vector<8x512xf32>,
    } else {
    }
    %c0 = arith.constant 0 : index
    %c0_1 = arith.constant 0 : index
    %3 = vector.load %arg10[%c0, %c0_1] : memref<8x512xf32, #tpu.memory_space<vmem>>, vector<8x512xf32>
    %c0_2 = arith.constant 0 : index
    %c0_3 = arith.constant 0 : index
    %4 = vector.load %arg2[%c0_2, %c0_3] : memref<8x1024xf32, #tpu.memory_space<vmem>>, vector<8x1024xf32>
    %c0_4 = arith.constant 0 : index
    %c0_5 = arith.constant 0 : index
    %5 = vector.load %arg3[%c0_4, %c0_5] : memref<1024x512xf32, #tpu.memory_space<vmem>>, vector<1024x512xf32>
    %cst = arith.constant dense<0.000000e+00> : vector<8x512xf32>
    %6 = tpu.matmul %4, %5, %cst {dimension_numbers = #tpu.dot_dimension_numbers<[1], [0], [0], [1], [0, 0, 1, 1], [], []>} : vector<8x1024xf32>, vector<1024x512xf32>, vector<8x512xf32> -> vector<8x512xf32>
    %7 = arith.addf %3, %6 : vector<8x512xf32>
    %c0_6 = arith.constant 0 : index
    %c0_7 = arith.constant 0 : index
    %8 = vector.load %arg10[%c0_6, %c0_7] : memref<8x512xf32, #tpu.memory_space<vmem>>, vector<8x512xf32>
    tpu.vector_store %arg10[%c0_6, %c0_7], %7 {strides = array<i32>} : memref<8x512xf32, #tpu.memory_space<vmem>>, vector<8x512xf32>,
    %c0_i32_8 = arith.constant 0 : i32
    %9 = arith.cmpi eq, %arg1, %c0_i32_8 : i32
    %10 = arith.extui %9 : i1 to i32
    %c0_i32_9 = arith.constant 0 : i32
    %11 = arith.cmpi ne, %10, %c0_i32_9 : i32
    scf.if %11 {
      %c0_10 = arith.constant 0 : index
      %c0_11 = arith.constant 0 : index
      %12 = vector.load %arg10[%c0_10, %c0_11] : memref<8x512xf32, #tpu.memory_space<vmem>>, vector<8x512xf32>
      %c0_12 = arith.constant 0 : index
      %c0_13 = arith.constant 0 : index
      %13 = vector.load %arg4[%c0_12, %c0_13] : memref<1x512xf32, #tpu.memory_space<vmem>>, vector<1x512xf32>
      %14 = vector.broadcast %13 : vector<1x512xf32> to vector<8x512xf32>
      %15 = arith.addf %12, %14 : vector<8x512xf32>
      %cst_14 = arith.constant 2.000000e-01 : f32
      %16 = vector.broadcast %cst_14 : f32 to vector<8x512xf32>
      %17 = arith.mulf %16, %15 : vector<8x512xf32>
      %18 = arith.maximumf %15, %17 : vector<8x512xf32>
      %c0_15 = arith.constant 0 : index
      %c0_16 = arith.constant 0 : index
      %19 = vector.load %arg5[%c0_15, %c0_16] : memref<512x256xf32, #tpu.memory_space<vmem>>, vector<512x256xf32>
      %cst_17 = arith.constant dense<0.000000e+00> : vector<8x256xf32>
      %20 = tpu.matmul %18, %19, %cst_17 {dimension_numbers = #tpu.dot_dimension_numbers<[1], [0], [0], [1], [0, 0, 1, 1], [], []>} : vector<8x512xf32>, vector<512x256xf32>, vector<8x256xf32> -> vector<8x256xf32>
      %c0_18 = arith.constant 0 : index
      %c0_19 = arith.constant 0 : index
      %21 = vector.load %arg6[%c0_18, %c0_19] : memref<1x256xf32, #tpu.memory_space<vmem>>, vector<1x256xf32>
      %22 = vector.broadcast %21 : vector<1x256xf32> to vector<8x256xf32>
      %23 = arith.addf %20, %22 : vector<8x256xf32>
      %cst_20 = arith.constant 2.000000e-01 : f32
      %24 = vector.broadcast %cst_20 : f32 to vector<8x256xf32>
      %25 = arith.mulf %24, %23 : vector<8x256xf32>
      %26 = arith.maximumf %23, %25 : vector<8x256xf32>
      %c0_21 = arith.constant 0 : index
      %c0_22 = arith.constant 0 : index
      %27 = vector.load %arg7[%c0_21, %c0_22] : memref<256x128xf32, #tpu.memory_space<vmem>>, vector<256x128xf32>
      %cst_23 = arith.constant dense<0.000000e+00> : vector<8x128xf32>
      %28 = tpu.matmul %26, %27, %cst_23 {dimension_numbers = #tpu.dot_dimension_numbers<[1], [0], [0], [1], [0, 0, 1, 1], [], []>} : vector<8x256xf32>, vector<256x128xf32>, vector<8x128xf32> -> vector<8x128xf32>
      %c0_24 = arith.constant 0 : index
      %c0_25 = arith.constant 0 : index
      %29 = vector.load %arg8[%c0_24, %c0_25] : memref<1x128xf32, #tpu.memory_space<vmem>>, vector<1x128xf32>
      %30 = vector.broadcast %29 : vector<1x128xf32> to vector<8x128xf32>
      %31 = arith.addf %28, %30 : vector<8x128xf32>
      %32 = arith.negf %31 : vector<8x128xf32>
      %33 = math.exp %32 : vector<8x128xf32>
      %cst_26 = arith.constant 1.000000e+00 : f32
      %34 = vector.broadcast %cst_26 : f32 to vector<8x128xf32>
      %35 = arith.addf %34, %33 : vector<8x128xf32>
      %36 = arith.divf %34, %35 : vector<8x128xf32>
      %c0_27 = arith.constant 0 : index
      %c0_28 = arith.constant 0 : index
      %37 = vector.load %arg9[%c0_27, %c0_28] : memref<8x128xf32, #tpu.memory_space<vmem>>, vector<8x128xf32>
      tpu.vector_store %arg9[%c0_27, %c0_28], %36 {strides = array<i32>} : memref<8x128xf32, #tpu.memory_space<vmem>>, vector<8x128xf32>,
    } else {
    }
    return
  }
  func.func @transform_0(%arg0: i32, %arg1: i32) -> (i32, i32) {
    %c0_i32 = arith.constant 0 : i32
    return %arg0, %arg1 : i32, i32
  }
  func.func @transform_1(%arg0: i32, %arg1: i32) -> (i32, i32) {
    %c0_i32 = arith.constant 0 : i32
    %c0_i32_0 = arith.constant 0 : i32
    return %arg1, %c0_i32 : i32, i32
  }
  func.func @transform_2(%arg0: i32, %arg1: i32) -> (i32, i32) {
    %c0_i32 = arith.constant 0 : i32
    %c0_i32_0 = arith.constant 0 : i32
    %c0_i32_1 = arith.constant 0 : i32
    return %c0_i32, %c0_i32_0 : i32, i32
  }
  func.func @transform_3(%arg0: i32, %arg1: i32) -> (i32, i32) {
    %c0_i32 = arith.constant 0 : i32
    %c0_i32_0 = arith.constant 0 : i32
    %c0_i32_1 = arith.constant 0 : i32
    return %c0_i32, %c0_i32_0 : i32, i32
  }
  func.func @transform_4(%arg0: i32, %arg1: i32) -> (i32, i32) {
    %c0_i32 = arith.constant 0 : i32
    %c0_i32_0 = arith.constant 0 : i32
    %c0_i32_1 = arith.constant 0 : i32
    return %c0_i32, %c0_i32_0 : i32, i32
  }
  func.func @transform_5(%arg0: i32, %arg1: i32) -> (i32, i32) {
    %c0_i32 = arith.constant 0 : i32
    %c0_i32_0 = arith.constant 0 : i32
    %c0_i32_1 = arith.constant 0 : i32
    return %c0_i32, %c0_i32_0 : i32, i32
  }
  func.func @transform_6(%arg0: i32, %arg1: i32) -> (i32, i32) {
    %c0_i32 = arith.constant 0 : i32
    %c0_i32_0 = arith.constant 0 : i32
    %c0_i32_1 = arith.constant 0 : i32
    return %c0_i32, %c0_i32_0 : i32, i32
  }
  func.func @transform_7(%arg0: i32, %arg1: i32) -> (i32, i32) {
    %c0_i32 = arith.constant 0 : i32
    %c0_i32_0 = arith.constant 0 : i32
    return %arg0, %c0_i32 : i32, i32
  }
}

module attributes {stable_mosaic.version = 11 : i64} {
  func.func @_mlp_kernel(%arg0: i32, %arg1: i32, %arg2: memref<8x1024xf32, #tpu.memory_space<vmem>>, %arg3: memref<1024x512xf32, #tpu.memory_space<vmem>>, %arg4: memref<1x512xf32, #tpu.memory_space<vmem>>, %arg5: memref<512x256xf32, #tpu.memory_space<vmem>>, %arg6: memref<1x256xf32, #tpu.memory_space<vmem>>, %arg7: memref<256x128xf32, #tpu.memory_space<vmem>>, %arg8: memref<1x128xf32, #tpu.memory_space<vmem>>, %arg9: memref<8x128xf32, #tpu.memory_space<vmem>>, %arg10: memref<8x512xf32, #tpu.memory_space<vmem>>) attributes {dimension_semantics = [#tpu.dimension_semantics<parallel>, #tpu.dimension_semantics<arbitrary>], iteration_bounds = array<i64: 1, 1>, scalar_prefetch = 0 : i64, scratch_operands = 1 : i64, tpu.core_type = #tpu.core_type<tc>, window_params = [{transform_indices = @transform_0, window_bounds = array<i64: 8, 1024>}, {transform_indices = @transform_1, window_bounds = array<i64: 1024, 512>}, {pipeline_mode = #tpu.pipeline_mode<synchronous>, transform_indices = @transform_2, window_bounds = array<i64: 1, 512>}, {pipeline_mode = #tpu.pipeline_mode<synchronous>, transform_indices = @transform_3, window_bounds = array<i64: 512, 256>}, {pipeline_mode = #tpu.pipeline_mode<synchronous>, transform_indices = @transform_4, window_bounds = array<i64: 1, 256>}, {pipeline_mode = #tpu.pipeline_mode<synchronous>, transform_indices = @transform_5, window_bounds = array<i64: 256, 128>}, {pipeline_mode = #tpu.pipeline_mode<synchronous>, transform_indices = @transform_6, window_bounds = array<i64: 1, 128>}, {transform_indices = @transform_7, window_bounds = array<i64: 8, 128>}]} {
    %c0_i32 = arith.constant 0 : i32
    %0 = arith.cmpi eq, %arg1, %c0_i32 : i32
    %1 = arith.extui %0 : i1 to i32
    %c0_i32_0 = arith.constant 0 : i32
    %2 = arith.cmpi ne, %1, %c0_i32_0 : i32
    scf.if %2 {
      %cst_10 = arith.constant 0.000000e+00 : f32
      %12 = vector.broadcast %cst_10 : f32 to vector<8x512xf32>
      %c0_11 = arith.constant 0 : index
      %c0_12 = arith.constant 0 : index
      %13 = vector.load %arg10[%c0_11, %c0_12] : memref<8x512xf32, #tpu.memory_space<vmem>>, vector<8x512xf32>
      tpu.vector_store %arg10[%c0_11, %c0_12], %12 {strides = array<i32>} : memref<8x512xf32, #tpu.memory_space<vmem>>, vector<8x512xf32>,
    } else {
    }
    %c0 = arith.constant 0 : index
    %c0_1 = arith.constant 0 : index
    %3 = vector.load %arg10[%c0, %c0_1] : memref<8x512xf32, #tpu.memory_space<vmem>>, vector<8x512xf32>
    %c0_2 = arith.constant 0 : index
    %c0_3 = arith.constant 0 : index
    %4 = vector.load %arg2[%c0_2, %c0_3] : memref<8x1024xf32, #tpu.memory_space<vmem>>, vector<8x1024xf32>
    %c0_4 = arith.constant 0 : index
    %c0_5 = arith.constant 0 : index
    %5 = vector.load %arg3[%c0_4, %c0_5] : memref<1024x512xf32, #tpu.memory_space<vmem>>, vector<1024x512xf32>
    %cst = arith.constant dense<0.000000e+00> : vector<8x512xf32>
    %6 = tpu.matmul %4, %5, %cst {dimension_numbers = #tpu.dot_dimension_numbers<[1], [0], [0], [1], [0, 0, 1, 1], [], []>} : vector<8x1024xf32>, vector<1024x512xf32>, vector<8x512xf32> -> vector<8x512xf32>
    %7 = arith.addf %3, %6 : vector<8x512xf32>
    %c0_6 = arith.constant 0 : index
    %c0_7 = arith.constant 0 : index
    %8 = vector.load %arg10[%c0_6, %c0_7] : memref<8x512xf32, #tpu.memory_space<vmem>>, vector<8x512xf32>
    tpu.vector_store %arg10[%c0_6, %c0_7], %7 {strides = array<i32>} : memref<8x512xf32, #tpu.memory_space<vmem>>, vector<8x512xf32>,
    %c0_i32_8 = arith.constant 0 : i32
    %9 = arith.cmpi eq, %arg1, %c0_i32_8 : i32
    %10 = arith.extui %9 : i1 to i32
    %c0_i32_9 = arith.constant 0 : i32
    %11 = arith.cmpi ne, %10, %c0_i32_9 : i32
    scf.if %11 {
      %c0_10 = arith.constant 0 : index
      %c0_11 = arith.constant 0 : index
      %12 = vector.load %arg10[%c0_10, %c0_11] : memref<8x512xf32, #tpu.memory_space<vmem>>, vector<8x512xf32>
      %c0_12 = arith.constant 0 : index
      %c0_13 = arith.constant 0 : index
      %13 = vector.load %arg4[%c0_12, %c0_13] : memref<1x512xf32, #tpu.memory_space<vmem>>, vector<1x512xf32>
      %14 = vector.broadcast %13 : vector<1x512xf32> to vector<8x512xf32>
      %15 = arith.addf %12, %14 : vector<8x512xf32>
      %cst_14 = arith.constant 2.000000e-01 : f32
      %16 = vector.broadcast %cst_14 : f32 to vector<8x512xf32>
      %17 = arith.mulf %16, %15 : vector<8x512xf32>
      %18 = arith.maximumf %15, %17 : vector<8x512xf32>
      %c0_15 = arith.constant 0 : index
      %c0_16 = arith.constant 0 : index
      %19 = vector.load %arg5[%c0_15, %c0_16] : memref<512x256xf32, #tpu.memory_space<vmem>>, vector<512x256xf32>
      %cst_17 = arith.constant dense<0.000000e+00> : vector<8x256xf32>
      %20 = tpu.matmul %18, %19, %cst_17 {dimension_numbers = #tpu.dot_dimension_numbers<[1], [0], [0], [1], [0, 0, 1, 1], [], []>} : vector<8x512xf32>, vector<512x256xf32>, vector<8x256xf32> -> vector<8x256xf32>
      %c0_18 = arith.constant 0 : index
      %c0_19 = arith.constant 0 : index
      %21 = vector.load %arg6[%c0_18, %c0_19] : memref<1x256xf32, #tpu.memory_space<vmem>>, vector<1x256xf32>
      %22 = vector.broadcast %21 : vector<1x256xf32> to vector<8x256xf32>
      %23 = arith.addf %20, %22 : vector<8x256xf32>
      %cst_20 = arith.constant 2.000000e-01 : f32
      %24 = vector.broadcast %cst_20 : f32 to vector<8x256xf32>
      %25 = arith.mulf %24, %23 : vector<8x256xf32>
      %26 = arith.maximumf %23, %25 : vector<8x256xf32>
      %c0_21 = arith.constant 0 : index
      %c0_22 = arith.constant 0 : index
      %27 = vector.load %arg7[%c0_21, %c0_22] : memref<256x128xf32, #tpu.memory_space<vmem>>, vector<256x128xf32>
      %cst_23 = arith.constant dense<0.000000e+00> : vector<8x128xf32>
      %28 = tpu.matmul %26, %27, %cst_23 {dimension_numbers = #tpu.dot_dimension_numbers<[1], [0], [0], [1], [0, 0, 1, 1], [], []>} : vector<8x256xf32>, vector<256x128xf32>, vector<8x128xf32> -> vector<8x128xf32>
      %c0_24 = arith.constant 0 : index
      %c0_25 = arith.constant 0 : index
      %29 = vector.load %arg8[%c0_24, %c0_25] : memref<1x128xf32, #tpu.memory_space<vmem>>, vector<1x128xf32>
      %30 = vector.broadcast %29 : vector<1x128xf32> to vector<8x128xf32>
      %31 = arith.addf %28, %30 : vector<8x128xf32>
      %32 = arith.negf %31 : vector<8x128xf32>
      %33 = math.exp %32 : vector<8x128xf32>
      %cst_26 = arith.constant 1.000000e+00 : f32
      %34 = vector.broadcast %cst_26 : f32 to vector<8x128xf32>
      %35 = arith.addf %34, %33 : vector<8x128xf32>
      %36 = arith.divf %34, %35 : vector<8x128xf32>
      %c0_27 = arith.constant 0 : index
      %c0_28 = arith.constant 0 : index
      %37 = vector.load %arg9[%c0_27, %c0_28] : memref<8x128xf32, #tpu.memory_space<vmem>>, vector<8x128xf32>
      tpu.vector_store %arg9[%c0_27, %c0_28], %36 {strides = array<i32>} : memref<8x128xf32, #tpu.memory_space<vmem>>, vector<8x128xf32>,
    } else {
    }
    return
  }
  func.func @transform_0(%arg0: i32, %arg1: i32) -> (i32, i32) {
    %c0_i32 = arith.constant 0 : i32
    return %arg0, %arg1 : i32, i32
  }
  func.func @transform_1(%arg0: i32, %arg1: i32) -> (i32, i32) {
    %c0_i32 = arith.constant 0 : i32
    %c0_i32_0 = arith.constant 0 : i32
    return %arg1, %c0_i32 : i32, i32
  }
  func.func @transform_2(%arg0: i32, %arg1: i32) -> (i32, i32) {
    %c0_i32 = arith.constant 0 : i32
    %c0_i32_0 = arith.constant 0 : i32
    %c0_i32_1 = arith.constant 0 : i32
    return %c0_i32, %c0_i32_0 : i32, i32
  }
  func.func @transform_3(%arg0: i32, %arg1: i32) -> (i32, i32) {
    %c0_i32 = arith.constant 0 : i32
    %c0_i32_0 = arith.constant 0 : i32
    %c0_i32_1 = arith.constant 0 : i32
    return %c0_i32, %c0_i32_0 : i32, i32
  }
  func.func @transform_4(%arg0: i32, %arg1: i32) -> (i32, i32) {
    %c0_i32 = arith.constant 0 : i32
    %c0_i32_0 = arith.constant 0 : i32
    %c0_i32_1 = arith.constant 0 : i32
    return %c0_i32, %c0_i32_0 : i32, i32
  }
  func.func @transform_5(%arg0: i32, %arg1: i32) -> (i32, i32) {
    %c0_i32 = arith.constant 0 : i32
    %c0_i32_0 = arith.constant 0 : i32
    %c0_i32_1 = arith.constant 0 : i32
    return %c0_i32, %c0_i32_0 : i32, i32
  }
  func.func @transform_6(%arg0: i32, %arg1: i32) -> (i32, i32) {
    %c0_i32 = arith.constant 0 : i32
    %c0_i32_0 = arith.constant 0 : i32
    %c0_i32_1 = arith.constant 0 : i32
    return %c0_i32, %c0_i32_0 : i32, i32
  }
  func.func @transform_7(%arg0: i32, %arg1: i32) -> (i32, i32) {
    %c0_i32 = arith.constant 0 : i32
    %c0_i32_0 = arith.constant 0 : i32
    return %arg0, %c0_i32 : i32, i32
  }
}

</mosaic_0001>

<bundles_post_ra>
// kernel: tpu_custom_call.1
= control target key start
LH: loop header
LB: loop body
LE: loop exit
PB: predicated region body
PF: predicated region fallthrough
CT: control target
= control target key end

     0   :  { %12 = vsyncpa [#allocation4], 0  ;;  %s2209_s0 = inlined_call_operand.hbm [shape: f32[2,1024], index: 0, kind: input, shape index: {}]   ;;  %s2210_s1 = inlined_call_operand.hbm [shape: f32[1024,512], index: 1, kind: input, shape index: {}]   ;;  %s2211_s2 = inlined_call_operand.hbm [shape: f32[1,512], index: 2, kind: input, shape index: {}]   ;;  %s2212_s3 = inlined_call_operand.hbm [shape: f32[512,256], index: 3, kind: input, shape index: {}]   ;;  %s2213_s4 = inlined_call_operand.hbm [shape: f32[1,256], index: 4, kind: input, shape index: {}]   ;;  %s2214_s5 = inlined_call_operand.hbm [shape: f32[256,128], index: 5, kind: input, shape index: {}]   ;;  %s2215_s6 = inlined_call_operand.hbm [shape: f32[1,128], index: 6, kind: input, shape index: {}]   ;;  %s2216_s7 = inlined_call_operand.hbm [shape: f32[2,128], index: 7, kind: output, shape index: {}]  }
   0x1   :  { %13 = vsyncpa [#allocation7], 0 }
   0x2   :  { %14 = vsyncpa [#allocation10], 0 }
   0x3   :  { %15 = vsyncpa [#allocation13], 0 }
   0x4   :  { %16 = vsyncpa [#allocation5], 0  ;;  %s34_s26 = sshll.u32 %s2210_s1, 4  ;;  %s35_s26 = int_to_ptr.hbm [resolvable:$true] %s34_s26 }
   0x5   :  { %20 = vsyncadd [#allocation4], 768  ;;  %s2025_s27 = smov [#allocation6]   ;;  %s2026_s29 = smov 512  }
   0x6   :  { %s36_s28 = sshll.u32 %s2025_s27, 4  ;;  %s2027_s30 = smov 32   ;;  %s37_s28 = int_to_ptr.vmem [resolvable:$true] %s36_s28 }
   0x7   :  { %42 = dma.hbm_to_vmem [thread:$0]  %s35_s26, 65536, %s37_s28, [#allocation7], %s2026_s29, %s2026_s29, %s2027_s30  }
   0x8   :  { %s58_s10 = sshll.u32 %s2212_s3, 4  ;;  %s2028_s11 = smov [#allocation9]   ;;  %s59_s10 = int_to_ptr.hbm [resolvable:$true] %s58_s10 }
   0x9   :  { %s60_s12 = sshll.u32 %s2028_s11, 4  ;;  %s82_s1 = sshll.u32 %s2214_s5, 4  ;;  %s61_s12 = int_to_ptr.vmem [resolvable:$true] %s60_s12  ;;  %s83_s1 = int_to_ptr.hbm [resolvable:$true] %s82_s1 }
   0xa   :  { %s2029_s15 = smov 256   ;;  %s2030_s16 = smov 16  }
   0xb   :  { %66 = dma.hbm_to_vmem [thread:$0]  %s59_s10, 16384, %s61_s12, [#allocation10], %s2029_s15, %s2029_s15, %s2030_s16  }
   0xc   :  { %s2031_s17 = smov [#allocation12]   ;;  %s21_s21 = sshll.u32 %s2209_s0, 4  ;;  %s22_s21 = int_to_ptr.hbm [resolvable:$true] %s21_s21 }
   0xd   :  { %s84_s18 = sshll.u32 %s2031_s17, 4  ;;  %s2032_s3 = smov 128   ;;  %s85_s18 = int_to_ptr.vmem [resolvable:$true] %s84_s18 }
   0xe   :  { %s2033_s22 = smov 8   ;;  %s2034_s23 = smov [#allocation3]  }
   0xf   :  { %90 = dma.hbm_to_vmem [thread:$0]  %s83_s1, 4096, %s85_s18, [#allocation13], %s2032_s3, %s2032_s3, %s2033_s22  }
  0x10   :  { %s23_s24 = sshll.u32 %s2034_s23, 4  ;;  %s48_s26 = sshll.u32 %s2211_s2, 4  ;;  %s24_s24 = int_to_ptr.vmem [resolvable:$true] %s23_s24  ;;  %s49_s26 = int_to_ptr.hbm [resolvable:$true] %s48_s26 }
  0x11   :  { %29 = dma.hbm_to_vmem [thread:$0]  %s22_s21, 256, %s24_s24, [#allocation4], %s2029_s15, %s2029_s15, %s2030_s16  }
  0x12   :  { %s72_s29 = sshll.u32 %s2213_s4, 4  ;;  %s2035_s8 = smov [#allocation8]   ;;  %s73_s29 = int_to_ptr.hbm [resolvable:$true] %s72_s29 }
  0x13   :  { %s50_s9 = sshll.u32 %s2035_s8, 4  ;;  %s2036_s0 = smov [#allocation11]   ;;  %s51_s9 = int_to_ptr.vmem [resolvable:$true] %s50_s9 }
  0x14   :  { %53 = dma.hbm_to_vmem [thread:$0]  %s49_s26, 64, %s51_s9, [#allocation7]  }
  0x15   :  { %s74_s10 = sshll.u32 %s2036_s0, 4  ;;  %s96_s13 = sshll.u32 %s2215_s6, 4  ;;  %s75_s10 = int_to_ptr.vmem [resolvable:$true] %s74_s10  ;;  %s97_s13 = int_to_ptr.hbm [resolvable:$true] %s96_s13 }
  0x16   :  { %77 = dma.hbm_to_vmem [thread:$0]  %s73_s29, 32, %s75_s10, [#allocation10]  }
  0x17   :  { %s2037_s2 = smov [#allocation14]  }
  0x18   :  { %s98_s14 = sshll.u32 %s2037_s2, 4  ;;  %s99_s14 = int_to_ptr.vmem [resolvable:$true] %s98_s14 }
  0x19   :  { %101 = dma.hbm_to_vmem [thread:$0]  %s97_s13, 16, %s99_s14, [#allocation13]  }
  0x1a   :  { %2015 = dma.done.wait [#allocation4], 1024  }
  0x1b   :  { %2016 = vsyncadd [#allocation4], 4294966272 }
  0x1c   :  { %2017 = dma.done.wait [#allocation7], 65600  }
  0x1d   :  { %2018 = vsyncadd [#allocation7], 4294901696 }
  0x1e   :  { %2019 = dma.done.wait [#allocation10], 16416  }
  0x1f   :  { %2020 = vsyncadd [#allocation10], 4294950880 }
  0x20   :  { %2021 = dma.done.wait [#allocation13], 4112  }
  0x21   :  { %2022 = vsyncadd [#allocation13], 4294963184  ;;  %v210_v0 = vld [vmem:[#allocation6 + $0x1e0] sm:$0xff] }
  0x22   :  { %v274_v1 = vld [vmem:[#allocation6 + $0x3e0] sm:$0xff]  ;;  %701 = vmatpush.msra.mxu0 %v210_v0 }
  0x23   :  { %v338_v2 = vld [vmem:[#allocation6 + $0x5e0] sm:$0xff]  ;;  %721 = vmatpush.msra.mxu1 %v274_v1 }
  0x24   :  { %v206_v3 = vld [vmem:[#allocation6 + $0x1c0] sm:$0xff]  ;;  %741 = vmatpush.msra.mxu2 %v338_v2 }
  0x25   :  { %v270_v4 = vld [vmem:[#allocation6 + $0x3c0] sm:$0xff]  ;;  %702 = vmatpush.msra.mxu0 %v206_v3 }
  0x26   :  { %v334_v5 = vld [vmem:[#allocation6 + $0x5c0] sm:$0xff]  ;;  %722 = vmatpush.msra.mxu1 %v270_v4 }
  0x27   :  { %v402_v6 = vld [vmem:[#allocation6 + $0x7e0] sm:$0xff]  ;;  %742 = vmatpush.msra.mxu2 %v334_v5 }
  0x28   :  { %v202_v7 = vld [vmem:[#allocation6 + $0x1a0] sm:$0xff]  ;;  %761 = vmatpush.msra.mxu3 %v402_v6 }
  0x29   :  { %v266_v8 = vld [vmem:[#allocation6 + $0x3a0] sm:$0xff]  ;;  %703 = vmatpush.msra.mxu0 %v202_v7 }
  0x2a   :  { %v330_v9 = vld [vmem:[#allocation6 + $0x5a0] sm:$0xff]  ;;  %723 = vmatpush.msra.mxu1 %v266_v8 }
  0x2b   :  { %v398_v10 = vld [vmem:[#allocation6 + $0x7c0] sm:$0xff]  ;;  %743 = vmatpush.msra.mxu2 %v330_v9 }
  0x2c   :  { %v198_v11 = vld [vmem:[#allocation6 + $0x180] sm:$0xff]  ;;  %762 = vmatpush.msra.mxu3 %v398_v10 }
  0x2d   :  { %v262_v12 = vld [vmem:[#allocation6 + $0x380] sm:$0xff]  ;;  %704 = vmatpush.msra.mxu0 %v198_v11 }
  0x2e   :  { %v326_v13 = vld [vmem:[#allocation6 + $0x580] sm:$0xff]  ;;  %724 = vmatpush.msra.mxu1 %v262_v12 }
  0x2f   :  { %v394_v14 = vld [vmem:[#allocation6 + $0x7a0] sm:$0xff]  ;;  %744 = vmatpush.msra.mxu2 %v326_v13 }
  0x30   :  { %v194_v15 = vld [vmem:[#allocation6 + $0x160] sm:$0xff]  ;;  %763 = vmatpush.msra.mxu3 %v394_v14 }
  0x31   :  { %v258_v16 = vld [vmem:[#allocation6 + $0x360] sm:$0xff]  ;;  %705 = vmatpush.msra.mxu0 %v194_v15 }
  0x32   :  { %v322_v17 = vld [vmem:[#allocation6 + $0x560] sm:$0xff]  ;;  %725 = vmatpush.msra.mxu1 %v258_v16 }
  0x33   :  { %v390_v18 = vld [vmem:[#allocation6 + $0x780] sm:$0xff]  ;;  %745 = vmatpush.msra.mxu2 %v322_v17 }
  0x34   :  { %v190_v19 = vld [vmem:[#allocation6 + $0x140] sm:$0xff]  ;;  %764 = vmatpush.msra.mxu3 %v390_v18 }
  0x35   :  { %v254_v20 = vld [vmem:[#allocation6 + $0x340] sm:$0xff]  ;;  %706 = vmatpush.msra.mxu0 %v190_v19 }
  0x36   :  { %v318_v21 = vld [vmem:[#allocation6 + $0x540] sm:$0xff]  ;;  %726 = vmatpush.msra.mxu1 %v254_v20 }
  0x37   :  { %v386_v22 = vld [vmem:[#allocation6 + $0x760] sm:$0xff]  ;;  %746 = vmatpush.msra.mxu2 %v318_v21 }
  0x38   :  { %v186_v23 = vld [vmem:[#allocation6 + $0x120] sm:$0xff]  ;;  %765 = vmatpush.msra.mxu3 %v386_v22  ;;  %v144_v22 = vld [vmem:[#allocation3 + $0x10] sm:$0xff] }
  0x39   :  { %v250_v24 = vld [vmem:[#allocation6 + $0x320] sm:$0xff]  ;;  %707 = vmatpush.msra.mxu0 %v186_v23  ;;  %672 = vst [vmem:[#allocation1 + $0x1] ss:$4 sm:$0xff] %v144_v22  ;;  %v331_v22 = vld [vmem:[#allocation6 + $0x5a8] sm:$0xff] }
  0x3a   :  { %v314_v25 = vld [vmem:[#allocation6 + $0x520] sm:$0xff]  ;;  %727 = vmatpush.msra.mxu1 %v250_v24  ;;  %v148_v24 = vld [vmem:[#allocation3 + $0x30] sm:$0xff] }
  0x3b   :  { %v382_v26 = vld [vmem:[#allocation6 + $0x740] sm:$0xff]  ;;  %747 = vmatpush.msra.mxu2 %v314_v25  ;;  %676 = vst [vmem:[#allocation1 + $0x3] ss:$4 sm:$0xff] %v148_v24 }
  0x3c   :  { %v182_v27 = vld [vmem:[#allocation6 + $0x100] sm:$0xff]  ;;  %766 = vmatpush.msra.mxu3 %v382_v26 }
  0x3d   :  { %v246_v28 = vld [vmem:[#allocation6 + $0x300] sm:$0xff]  ;;  %708 = vmatpush.msra.mxu0 %v182_v27 }
  0x3e   :  { %v310_v29 = vld [vmem:[#allocation6 + $0x500] sm:$0xff]  ;;  %728 = vmatpush.msra.mxu1 %v246_v28 }
  0x3f   :  { %v378_v30 = vld [vmem:[#allocation6 + $0x720] sm:$0xff]  ;;  %748 = vmatpush.msra.mxu2 %v310_v29 }
  0x40   :  { %v178_v31 = vld [vmem:[#allocation6 + $0xe0] sm:$0xff]  ;;  %767 = vmatpush.msra.mxu3 %v378_v30 }
  0x41   :  { %v242_v32 = vld [vmem:[#allocation6 + $0x2e0] sm:$0xff]  ;;  %709 = vmatpush.msra.mxu0 %v178_v31 }
  0x42   :  { %v306_v33 = vld [vmem:[#allocation6 + $0x4e0] sm:$0xff]  ;;  %729 = vmatpush.msra.mxu1 %v242_v32 }
  0x43   :  { %v374_v34 = vld [vmem:[#allocation6 + $0x700] sm:$0xff]  ;;  %749 = vmatpush.msra.mxu2 %v306_v33 }
  0x44   :  { %v174_v35 = vld [vmem:[#allocation6 + $0xc0] sm:$0xff]  ;;  %768 = vmatpush.msra.mxu3 %v374_v34 }
  0x45   :  { %v238_v36 = vld [vmem:[#allocation6 + $0x2c0] sm:$0xff]  ;;  %710 = vmatpush.msra.mxu0 %v174_v35 }
  0x46   :  { %v302_v37 = vld [vmem:[#allocation6 + $0x4c0] sm:$0xff]  ;;  %730 = vmatpush.msra.mxu1 %v238_v36 }
  0x47   :  { %v370_v38 = vld [vmem:[#allocation6 + $0x6e0] sm:$0xff]  ;;  %750 = vmatpush.msra.mxu2 %v302_v37  ;;  %v143_v37 = vld [vmem:[#allocation3 + $0x8] sm:$0xff] }
  0x48   :  { %v170_v39 = vld [vmem:[#allocation6 + $0xa0] sm:$0xff]  ;;  %769 = vmatpush.msra.mxu3 %v370_v38  ;;  %v145_v38 = vld [vmem:[#allocation3 + $0x18] sm:$0xff]  ;;  %678 = vst [vmem:[#allocation1 + $0x20] ss:$4 sm:$0xff] %v143_v37  ;;  %v319_v37 = vld [vmem:[#allocation6 + $0x548] sm:$0xff] }
  0x49   :  { %v234_v40 = vld [vmem:[#allocation6 + $0x2a0] sm:$0xff]  ;;  %711 = vmatpush.msra.mxu0 %v170_v39  ;;  %680 = vst [vmem:[#allocation1 + $0x21] ss:$4 sm:$0xff] %v145_v38  ;;  %v387_v38 = vld [vmem:[#allocation6 + $0x768] sm:$0xff] }
  0x4a   :  { %v298_v41 = vld [vmem:[#allocation6 + $0x4a0] sm:$0xff]  ;;  %731 = vmatpush.msra.mxu1 %v234_v40 }
  0x4b   :  { %v366_v42 = vld [vmem:[#allocation6 + $0x6c0] sm:$0xff]  ;;  %751 = vmatpush.msra.mxu2 %v298_v41  ;;  %v147_v41 = vld [vmem:[#allocation3 + $0x28] sm:$0xff] }
  0x4c   :  { %v166_v43 = vld [vmem:[#allocation6 + $0x80] sm:$0xff]  ;;  %770 = vmatpush.msra.mxu3 %v366_v42  ;;  %682 = vst [vmem:[#allocation1 + $0x22] ss:$4 sm:$0xff] %v147_v41  ;;  %v315_v41 = vld [vmem:[#allocation6 + $0x528] sm:$0xff] }
  0x4d   :  { %v230_v44 = vld [vmem:[#allocation6 + $0x280] sm:$0xff]  ;;  %712 = vmatpush.msra.mxu0 %v166_v43 }
  0x4e   :  { %v294_v45 = vld [vmem:[#allocation6 + $0x480] sm:$0xff]  ;;  %732 = vmatpush.msra.mxu1 %v230_v44 }
  0x4f   :  { %v362_v46 = vld [vmem:[#allocation6 + $0x6a0] sm:$0xff]  ;;  %752 = vmatpush.msra.mxu2 %v294_v45 }
  0x50   :  { %v162_v47 = vld [vmem:[#allocation6 + $0x60] sm:$0xff]  ;;  %771 = vmatpush.msra.mxu3 %v362_v46  ;;  %v149_v46 = vld [vmem:[#allocation3 + $0x38] sm:$0xff] }
  0x51   :  { %v226_v48 = vld [vmem:[#allocation6 + $0x260] sm:$0xff]  ;;  %713 = vmatpush.msra.mxu0 %v162_v47  ;;  %684 = vst [vmem:[#allocation1 + $0x23] ss:$4 sm:$0xff] %v149_v46  ;;  %v379_v46 = vld [vmem:[#allocation6 + $0x728] sm:$0xff] }
  0x52   :  { %v290_v49 = vld [vmem:[#allocation6 + $0x460] sm:$0xff]  ;;  %733 = vmatpush.msra.mxu1 %v226_v48 }
  0x53   :  { %v358_v50 = vld [vmem:[#allocation6 + $0x680] sm:$0xff]  ;;  %753 = vmatpush.msra.mxu2 %v290_v49 }
  0x54   :  { %v158_v51 = vld [vmem:[#allocation6 + $0x40] sm:$0xff]  ;;  %772 = vmatpush.msra.mxu3 %v358_v50 }
  0x55   :  { %v222_v52 = vld [vmem:[#allocation6 + $0x240] sm:$0xff]  ;;  %714 = vmatpush.msra.mxu0 %v158_v51 }
  0x56   :  { %v286_v53 = vld [vmem:[#allocation6 + $0x440] sm:$0xff]  ;;  %734 = vmatpush.msra.mxu1 %v222_v52 }
  0x57   :  { %v354_v54 = vld [vmem:[#allocation6 + $0x660] sm:$0xff]  ;;  %754 = vmatpush.msra.mxu2 %v286_v53 }
  0x58   :  { %v154_v55 = vld [vmem:[#allocation6 + $0x20] sm:$0xff]  ;;  %773 = vmatpush.msra.mxu3 %v354_v54  ;;  %v2116_v24 = vld.sshfl [vmem:[#allocation1 + $0x20] sm:$0xff pattern:$0x73625140] }
  0x59   :  { %v218_v56 = vld [vmem:[#allocation6 + $0x220] sm:$0xff]  ;;  %715 = vmatpush.msra.mxu0 %v154_v55 }
  0x5a   :  { %v282_v57 = vld [vmem:[#allocation6 + $0x420] sm:$0xff]  ;;  %735 = vmatpush.msra.mxu1 %v218_v56 }
  0x5b   :  { %v350_v58 = vld [vmem:[#allocation6 + $0x640] sm:$0xff]  ;;  %755 = vmatpush.msra.mxu2 %v282_v57 }
  0x5c   :  { %v150_v59 = vld [vmem:[#allocation6] sm:$0xff]  ;;  %774 = vmatpush.msra.mxu3 %v350_v58 }
  0x5d   :  { %v214_v60 = vld [vmem:[#allocation6 + $0x200] sm:$0xff]  ;;  %716 = vmatpush.msra.mxu0 %v150_v59 }
  0x5e   :  { %v278_v61 = vld [vmem:[#allocation6 + $0x400] sm:$0xff]  ;;  %736 = vmatpush.msra.mxu1 %v214_v60 }
  0x5f   :  { %v346_v62 = vld [vmem:[#allocation6 + $0x620] sm:$0xff]  ;;  %756 = vmatpush.msra.mxu2 %v278_v61 }
  0x60   :  { %v466_v63 = vld [vmem:[#allocation6 + $0x9e0] sm:$0xff]  ;;  %775 = vmatpush.msra.mxu3 %v346_v62 }
  0x61   :  { %v530_v0 = vld [vmem:[#allocation6 + $0xbe0] sm:$0xff]  ;;  %781 = vmatpush.msrb.mxu0 %v466_v63 }
  0x62   :  { %v594_v1 = vld [vmem:[#allocation6 + $0xde0] sm:$0xff]  ;;  %801 = vmatpush.msrb.mxu1 %v530_v0 }
  0x63   :  { %v342_v2 = vld [vmem:[#allocation6 + $0x600] sm:$0xff]  ;;  %821 = vmatpush.msrb.mxu2 %v594_v1 }
  0x64   :  { %v462_v3 = vld [vmem:[#allocation6 + $0x9c0] sm:$0xff]  ;;  %776 = vmatpush.msra.mxu3 %v342_v2 }
  0x65   :  { %v526_v4 = vld [vmem:[#allocation6 + $0xbc0] sm:$0xff]  ;;  %782 = vmatpush.msrb.mxu0 %v462_v3 }
  0x66   :  { %v590_v5 = vld [vmem:[#allocation6 + $0xdc0] sm:$0xff]  ;;  %802 = vmatpush.msrb.mxu1 %v526_v4 }
  0x67   :  { %v658_v6 = vld [vmem:[#allocation6 + $0xfe0] sm:$0xff]  ;;  %822 = vmatpush.msrb.mxu2 %v590_v5 }
  0x68   :  { %v458_v7 = vld [vmem:[#allocation6 + $0x9a0] sm:$0xff]  ;;  %841 = vmatpush.msrb.mxu3 %v658_v6 }
  0x69   :  { %v522_v8 = vld [vmem:[#allocation6 + $0xba0] sm:$0xff]  ;;  %783 = vmatpush.msrb.mxu0 %v458_v7 }
  0x6a   :  { %v586_v9 = vld [vmem:[#allocation6 + $0xda0] sm:$0xff]  ;;  %803 = vmatpush.msrb.mxu1 %v522_v8 }
  0x6b   :  { %v654_v10 = vld [vmem:[#allocation6 + $0xfc0] sm:$0xff]  ;;  %823 = vmatpush.msrb.mxu2 %v586_v9 }
  0x6c   :  { %v454_v11 = vld [vmem:[#allocation6 + $0x980] sm:$0xff]  ;;  %842 = vmatpush.msrb.mxu3 %v654_v10 }
  0x6d   :  { %v518_v12 = vld [vmem:[#allocation6 + $0xb80] sm:$0xff]  ;;  %784 = vmatpush.msrb.mxu0 %v454_v11  ;;  %v211_v11 = vld [vmem:[#allocation6 + $0x1e8] sm:$0xff] }
  0x6e   :  { %v582_v13 = vld [vmem:[#allocation6 + $0xd80] sm:$0xff]  ;;  %804 = vmatpush.msrb.mxu1 %v518_v12  ;;  %v275_v12 = vld [vmem:[#allocation6 + $0x3e8] sm:$0xff] }
  0x6f   :  { %v650_v14 = vld [vmem:[#allocation6 + $0xfa0] sm:$0xff]  ;;  %824 = vmatpush.msrb.mxu2 %v582_v13  ;;  %v339_v13 = vld [vmem:[#allocation6 + $0x5e8] sm:$0xff] }
  0x70   :  { %v450_v15 = vld [vmem:[#allocation6 + $0x960] sm:$0xff]  ;;  %843 = vmatpush.msrb.mxu3 %v650_v14 }
  0x71   :  { %v514_v16 = vld [vmem:[#allocation6 + $0xb60] sm:$0xff]  ;;  %785 = vmatpush.msrb.mxu0 %v450_v15  ;;  %v207_v15 = vld [vmem:[#allocation6 + $0x1c8] sm:$0xff] }
  0x72   :  { %v578_v17 = vld [vmem:[#allocation6 + $0xd60] sm:$0xff]  ;;  %805 = vmatpush.msrb.mxu1 %v514_v16  ;;  %v271_v16 = vld [vmem:[#allocation6 + $0x3c8] sm:$0xff] }
  0x73   :  { %v646_v18 = vld [vmem:[#allocation6 + $0xf80] sm:$0xff]  ;;  %825 = vmatpush.msrb.mxu2 %v578_v17  ;;  %v335_v17 = vld [vmem:[#allocation6 + $0x5c8] sm:$0xff] }
  0x74   :  { %v446_v19 = vld [vmem:[#allocation6 + $0x940] sm:$0xff]  ;;  %844 = vmatpush.msrb.mxu3 %v646_v18  ;;  %v403_v18 = vld [vmem:[#allocation6 + $0x7e8] sm:$0xff] }
  0x75   :  { %v510_v20 = vld [vmem:[#allocation6 + $0xb40] sm:$0xff]  ;;  %786 = vmatpush.msrb.mxu0 %v446_v19  ;;  %v2114_v19 = vld.sshfl [vmem:[#allocation1 + $0x30] sm:$0xff pattern:$0x73625140] }
  0x76   :  { %v142_v21 = vld [vmem:[#allocation3] sm:$0xff]  ;;  %806 = vmatpush.msrb.mxu1 %v510_v20  ;;  %v203_v20 = vld [vmem:[#allocation6 + $0x1a8] sm:$0xff] }
  0x77   :  { %v146_v23 = vld [vmem:[#allocation3 + $0x20] sm:$0xff]  ;;  %670 = vst [vmem:[#allocation1] ss:$4 sm:$0xff] %v142_v21  ;;  %v267_v21 = vld [vmem:[#allocation6 + $0x3a8] sm:$0xff] }
  0x78   :  { %v574_v25 = vld [vmem:[#allocation6 + $0xd40] sm:$0xff]  ;;  %674 = vst [vmem:[#allocation1 + $0x2] ss:$4 sm:$0xff] %v146_v23  ;;  %v399_v23 = vld [vmem:[#allocation6 + $0x7c8] sm:$0xff] }
  0x79   :  { %v642_v26 = vld [vmem:[#allocation6 + $0xf60] sm:$0xff]  ;;  %826 = vmatpush.msrb.mxu2 %v574_v25  ;;  %v2119_v25 = vld.sshfl [vmem:[#allocation1 + $0x38] sm:$0xff pattern:$0x73625140] }
  0x7a   :  { %v442_v27 = vld [vmem:[#allocation6 + $0x920] sm:$0xff]  ;;  %845 = vmatpush.msrb.mxu3 %v642_v26  ;;  %v199_v26 = vld [vmem:[#allocation6 + $0x188] sm:$0xff] }
  0x7b   :  { %v506_v28 = vld [vmem:[#allocation6 + $0xb20] sm:$0xff]  ;;  %787 = vmatpush.msrb.mxu0 %v442_v27  ;;  %v263_v27 = vld [vmem:[#allocation6 + $0x388] sm:$0xff] }
  0x7c   :  { %v570_v29 = vld [vmem:[#allocation6 + $0xd20] sm:$0xff]  ;;  %807 = vmatpush.msrb.mxu1 %v506_v28  ;;  %v327_v28 = vld [vmem:[#allocation6 + $0x588] sm:$0xff] }
  0x7d   :  { %v638_v30 = vld [vmem:[#allocation6 + $0xf40] sm:$0xff]  ;;  %827 = vmatpush.msrb.mxu2 %v570_v29  ;;  %v395_v29 = vld [vmem:[#allocation6 + $0x7a8] sm:$0xff] }
  0x7e   :  { %v438_v31 = vld [vmem:[#allocation6 + $0x900] sm:$0xff]  ;;  %846 = vmatpush.msrb.mxu3 %v638_v30 }
  0x7f   :  { %v502_v32 = vld [vmem:[#allocation6 + $0xb00] sm:$0xff]  ;;  %788 = vmatpush.msrb.mxu0 %v438_v31  ;;  %v2102_v63 = vld.sshfl [vmem:[#allocation1 + $0x10] sm:$0xff pattern:$0x73625140] }
  0x80   :  { %v566_v33 = vld [vmem:[#allocation6 + $0xd00] sm:$0xff]  ;;  %808 = vmatpush.msrb.mxu1 %v502_v32  ;;  %v2104_v4 = vld.sshfl [vmem:[#allocation1] sm:$0xff pattern:$0x73625140]  ;;  %757 = vmatmul.f32.vlgmr.msra.gmra.mxu2 %v2102_v63  ;;  %v195_v31 = vld [vmem:[#allocation6 + $0x168] sm:$0xff] }
  0x81   :  { %v634_v34 = vld [vmem:[#allocation6 + $0xf20] sm:$0xff]  ;;  %828 = vmatpush.msrb.mxu2 %v566_v33  ;;  %v2107_v5 = vld.sshfl [vmem:[#allocation1 + $0x18] sm:$0xff pattern:$0x73625140]  ;;  %717 = vmatmul.f32.vlgmr.msra.gmra.mxu0 %v2104_v4  ;;  %v259_v32 = vld [vmem:[#allocation6 + $0x368] sm:$0xff] }
  0x82   :  { %v434_v35 = vld [vmem:[#allocation6 + $0x8e0] sm:$0xff]  ;;  %847 = vmatpush.msrb.mxu3 %v634_v34  ;;  %v323_v33 = vld [vmem:[#allocation6 + $0x568] sm:$0xff] }
  0x83   :  { %v498_v36 = vld [vmem:[#allocation6 + $0xae0] sm:$0xff]  ;;  %789 = vmatpush.msrb.mxu0 %v434_v35  ;;  %777 = vmatmul.f32.vlgmr.msra.gmra.mxu3 %v2107_v5  ;;  %v391_v34 = vld [vmem:[#allocation6 + $0x788] sm:$0xff] }
  0x84   :  { %v562_v39 = vld [vmem:[#allocation6 + $0xce0] sm:$0xff]  ;;  %809 = vmatpush.msrb.mxu1 %v498_v36  ;;  %v191_v35 = vld [vmem:[#allocation6 + $0x148] sm:$0xff] }
  0x85   :  { %v630_v40 = vld [vmem:[#allocation6 + $0xf00] sm:$0xff]  ;;  %829 = vmatpush.msrb.mxu2 %v562_v39  ;;  %v255_v36 = vld [vmem:[#allocation6 + $0x348] sm:$0xff] }
  0x86   :  { %v430_v42 = vld [vmem:[#allocation6 + $0x8c0] sm:$0xff]  ;;  %848 = vmatpush.msrb.mxu3 %v630_v40  ;;  %v187_v39 = vld [vmem:[#allocation6 + $0x128] sm:$0xff] }
  0x87   :  { %v494_v43 = vld [vmem:[#allocation6 + $0xac0] sm:$0xff]  ;;  %790 = vmatpush.msrb.mxu0 %v430_v42  ;;  %v251_v40 = vld [vmem:[#allocation6 + $0x328] sm:$0xff] }
  0x88   :  { %v558_v44 = vld [vmem:[#allocation6 + $0xcc0] sm:$0xff]  ;;  %810 = vmatpush.msrb.mxu1 %v494_v43  ;;  %v383_v42 = vld [vmem:[#allocation6 + $0x748] sm:$0xff] }
  0x89   :  { %v626_v45 = vld [vmem:[#allocation6 + $0xee0] sm:$0xff]  ;;  %830 = vmatpush.msrb.mxu2 %v558_v44  ;;  %v183_v43 = vld [vmem:[#allocation6 + $0x108] sm:$0xff] }
  0x8a   :  { %v426_v47 = vld [vmem:[#allocation6 + $0x8a0] sm:$0xff]  ;;  %849 = vmatpush.msrb.mxu3 %v626_v45  ;;  %v247_v44 = vld [vmem:[#allocation6 + $0x308] sm:$0xff] }
  0x8b   :  { %v490_v48 = vld [vmem:[#allocation6 + $0xaa0] sm:$0xff]  ;;  %791 = vmatpush.msrb.mxu0 %v426_v47  ;;  %v311_v45 = vld [vmem:[#allocation6 + $0x508] sm:$0xff] }
  0x8c   :  { %v554_v49 = vld [vmem:[#allocation6 + $0xca0] sm:$0xff]  ;;  %811 = vmatpush.msrb.mxu1 %v490_v48  ;;  %v179_v47 = vld [vmem:[#allocation6 + $0xe8] sm:$0xff] }
  0x8d   :  { %v622_v50 = vld [vmem:[#allocation6 + $0xec0] sm:$0xff]  ;;  %831 = vmatpush.msrb.mxu2 %v554_v49  ;;  %v243_v48 = vld [vmem:[#allocation6 + $0x2e8] sm:$0xff] }
  0x8e   :  { %v422_v51 = vld [vmem:[#allocation6 + $0x880] sm:$0xff]  ;;  %850 = vmatpush.msrb.mxu3 %v622_v50  ;;  %v307_v49 = vld [vmem:[#allocation6 + $0x4e8] sm:$0xff] }
  0x8f   :  { %v486_v52 = vld [vmem:[#allocation6 + $0xa80] sm:$0xff]  ;;  %792 = vmatpush.msrb.mxu0 %v422_v51  ;;  %v375_v50 = vld [vmem:[#allocation6 + $0x708] sm:$0xff] }
  0x90   :  { %v550_v53 = vld [vmem:[#allocation6 + $0xc80] sm:$0xff]  ;;  %812 = vmatpush.msrb.mxu1 %v486_v52  ;;  %v175_v51 = vld [vmem:[#allocation6 + $0xc8] sm:$0xff] }
  0x91   :  { %v618_v54 = vld [vmem:[#allocation6 + $0xea0] sm:$0xff]  ;;  %832 = vmatpush.msrb.mxu2 %v550_v53  ;;  %v239_v52 = vld [vmem:[#allocation6 + $0x2c8] sm:$0xff] }
  0x92   :  { %v418_v55 = vld [vmem:[#allocation6 + $0x860] sm:$0xff]  ;;  %851 = vmatpush.msrb.mxu3 %v618_v54  ;;  %v303_v53 = vld [vmem:[#allocation6 + $0x4c8] sm:$0xff] }
  0x93   :  { %v482_v56 = vld [vmem:[#allocation6 + $0xa60] sm:$0xff]  ;;  %793 = vmatpush.msrb.mxu0 %v418_v55  ;;  %v371_v54 = vld [vmem:[#allocation6 + $0x6e8] sm:$0xff] }
  0x94   :  { %v546_v57 = vld [vmem:[#allocation6 + $0xc60] sm:$0xff]  ;;  %813 = vmatpush.msrb.mxu1 %v482_v56  ;;  %v171_v55 = vld [vmem:[#allocation6 + $0xa8] sm:$0xff] }
  0x95   :  { %v614_v58 = vld [vmem:[#allocation6 + $0xe80] sm:$0xff]  ;;  %833 = vmatpush.msrb.mxu2 %v546_v57  ;;  %v235_v56 = vld [vmem:[#allocation6 + $0x2a8] sm:$0xff] }
  0x96   :  { %v414_v59 = vld [vmem:[#allocation6 + $0x840] sm:$0xff]  ;;  %852 = vmatpush.msrb.mxu3 %v614_v58  ;;  %v299_v57 = vld [vmem:[#allocation6 + $0x4a8] sm:$0xff] }
  0x97   :  { %v478_v60 = vld [vmem:[#allocation6 + $0xa40] sm:$0xff]  ;;  %794 = vmatpush.msrb.mxu0 %v414_v59  ;;  %v367_v58 = vld [vmem:[#allocation6 + $0x6c8] sm:$0xff] }
  0x98   :  { %v542_v61 = vld [vmem:[#allocation6 + $0xc40] sm:$0xff]  ;;  %814 = vmatpush.msrb.mxu1 %v478_v60  ;;  %v167_v59 = vld [vmem:[#allocation6 + $0x88] sm:$0xff] }
  0x99   :  { %v610_v62 = vld [vmem:[#allocation6 + $0xe60] sm:$0xff]  ;;  %834 = vmatpush.msrb.mxu2 %v542_v61  ;;  %v231_v60 = vld [vmem:[#allocation6 + $0x288] sm:$0xff] }
  0x9a   :  { %v410_v0 = vld [vmem:[#allocation6 + $0x820] sm:$0xff]  ;;  %853 = vmatpush.msrb.mxu3 %v610_v62  ;;  %v295_v61 = vld [vmem:[#allocation6 + $0x488] sm:$0xff] }
  0x9b   :  { %v474_v1 = vld [vmem:[#allocation6 + $0xa20] sm:$0xff]  ;;  %795 = vmatpush.msrb.mxu0 %v410_v0  ;;  %v363_v62 = vld [vmem:[#allocation6 + $0x6a8] sm:$0xff] }
  0x9c   :  { %v538_v2 = vld [vmem:[#allocation6 + $0xc20] sm:$0xff]  ;;  %815 = vmatpush.msrb.mxu1 %v474_v1  ;;  %v163_v0 = vld [vmem:[#allocation6 + $0x68] sm:$0xff] }
  0x9d   :  { %v606_v3 = vld [vmem:[#allocation6 + $0xe40] sm:$0xff]  ;;  %835 = vmatpush.msrb.mxu2 %v538_v2  ;;  %v227_v1 = vld [vmem:[#allocation6 + $0x268] sm:$0xff] }
  0x9e   :  { %v406_v6 = vld [vmem:[#allocation6 + $0x800] sm:$0xff]  ;;  %854 = vmatpush.msrb.mxu3 %v606_v3  ;;  %v291_v2 = vld [vmem:[#allocation6 + $0x468] sm:$0xff] }
  0x9f   :  { %v470_v7 = vld [vmem:[#allocation6 + $0xa00] sm:$0xff]  ;;  %796 = vmatpush.msrb.mxu0 %v406_v6  ;;  %v359_v3 = vld [vmem:[#allocation6 + $0x688] sm:$0xff] }
  0xa0   :  { %v534_v8 = vld [vmem:[#allocation6 + $0xc00] sm:$0xff]  ;;  %816 = vmatpush.msrb.mxu1 %v470_v7  ;;  %797 = vmatmul.f32.vlgmr.msrb.gmra.mxu0 %v2116_v24  ;;  %v159_v6 = vld [vmem:[#allocation6 + $0x48] sm:$0xff] }
  0xa1   :  { %v602_v9 = vld [vmem:[#allocation6 + $0xe20] sm:$0xff]  ;;  %836 = vmatpush.msrb.mxu2 %v534_v8  ;;  %861 = vmatpush.msra.mxu0 %v211_v11  ;;  %v223_v7 = vld [vmem:[#allocation6 + $0x248] sm:$0xff] }
  0xa2   :  { %v2110_v10 = vld.sshfl [vmem:[#allocation1 + $0x8] sm:$0xff pattern:$0x73625140]  ;;  %855 = vmatpush.msrb.mxu3 %v602_v9  ;;  %837 = vmatmul.f32.vlgmr.msrb.gmra.mxu2 %v2114_v19  ;;  %v287_v8 = vld [vmem:[#allocation6 + $0x448] sm:$0xff] }
  0xa3   :  { %v598_v14 = vld [vmem:[#allocation6 + $0xe00] sm:$0xff]  ;;  %737 = vmatmul.f32.vlgmr.msra.gmra.mxu1 %v2110_v10  ;;  %901 = vmatpush.msra.mxu2 %v339_v13  ;;  %v355_v9 = vld [vmem:[#allocation6 + $0x668] sm:$0xff] }
  0xa4   :  { %881 = vmatpush.msra.mxu1 %v275_v12  ;;  %856 = vmatpush.msrb.mxu3 %v598_v14  ;;  %v2122_v30 = vld.sshfl [vmem:[#allocation1 + $0x28] sm:$0xff pattern:$0x73625140]  ;;  %v155_v11 = vld [vmem:[#allocation6 + $0x28] sm:$0xff] }
  0xa5   :  { %862 = vmatpush.msra.mxu0 %v207_v15  ;;  %902 = vmatpush.msra.mxu2 %v335_v17  ;;  %v219_v12 = vld [vmem:[#allocation6 + $0x228] sm:$0xff] }
  0xa6   :  { %882 = vmatpush.msra.mxu1 %v271_v16  ;;  %921 = vmatpush.msra.mxu3 %v403_v18  ;;  %v283_v13 = vld [vmem:[#allocation6 + $0x428] sm:$0xff] }
  0xa7   :  { %863 = vmatpush.msra.mxu0 %v203_v20  ;;  %903 = vmatpush.msra.mxu2 %v331_v22  ;;  %v351_v14 = vld [vmem:[#allocation6 + $0x648] sm:$0xff] }
  0xa8   :  { %883 = vmatpush.msra.mxu1 %v267_v21  ;;  %922 = vmatpush.msra.mxu3 %v399_v23  ;;  %v151_v15 = vld [vmem:[#allocation6 + $0x8] sm:$0xff] }
  0xa9   :  { %857 = vmatmul.f32.vlgmr.msrb.gmra.mxu3 %v2119_v25  ;;  %864 = vmatpush.msra.mxu0 %v199_v26  ;;  %v215_v16 = vld [vmem:[#allocation6 + $0x208] sm:$0xff] }
  0xaa   :  { %884 = vmatpush.msra.mxu1 %v263_v27  ;;  %904 = vmatpush.msra.mxu2 %v327_v28  ;;  %v279_v17 = vld [vmem:[#allocation6 + $0x408] sm:$0xff] }
  0xab   :  { %923 = vmatpush.msra.mxu3 %v395_v29  ;;  %817 = vmatmul.f32.vlgmr.msrb.gmra.mxu1 %v2122_v30  ;;  %v347_v18 = vld [vmem:[#allocation6 + $0x628] sm:$0xff] }
  0xac   :  { %865 = vmatpush.msra.mxu0 %v195_v31  ;;  %885 = vmatpush.msra.mxu1 %v259_v32  ;;  %v467_v20 = vld [vmem:[#allocation6 + $0x9e8] sm:$0xff] }
  0xad   :  { %905 = vmatpush.msra.mxu2 %v323_v33  ;;  %924 = vmatpush.msra.mxu3 %v391_v34  ;;  %v531_v21 = vld [vmem:[#allocation6 + $0xbe8] sm:$0xff] }
  0xae   :  { %866 = vmatpush.msra.mxu0 %v191_v35  ;;  %886 = vmatpush.msra.mxu1 %v255_v36  ;;  %v595_v22 = vld [vmem:[#allocation6 + $0xde8] sm:$0xff] }
  0xaf   :  { %906 = vmatpush.msra.mxu2 %v319_v37  ;;  %925 = vmatpush.msra.mxu3 %v387_v38  ;;  %v343_v23 = vld [vmem:[#allocation6 + $0x608] sm:$0xff] }
  0xb0   :  { %867 = vmatpush.msra.mxu0 %v187_v39  ;;  %887 = vmatpush.msra.mxu1 %v251_v40  ;;  %v463_v26 = vld [vmem:[#allocation6 + $0x9c8] sm:$0xff] }
  0xb1   :  { %907 = vmatpush.msra.mxu2 %v315_v41  ;;  %926 = vmatpush.msra.mxu3 %v383_v42  ;;  %v527_v27 = vld [vmem:[#allocation6 + $0xbc8] sm:$0xff] }
  0xb2   :  { %868 = vmatpush.msra.mxu0 %v183_v43  ;;  %888 = vmatpush.msra.mxu1 %v247_v44  ;;  %v591_v28 = vld [vmem:[#allocation6 + $0xdc8] sm:$0xff] }
  0xb3   :  { %908 = vmatpush.msra.mxu2 %v311_v45  ;;  %927 = vmatpush.msra.mxu3 %v379_v46  ;;  %v659_v29 = vld [vmem:[#allocation6 + $0xfe8] sm:$0xff] }
  0xb4   :  { %869 = vmatpush.msra.mxu0 %v179_v47  ;;  %889 = vmatpush.msra.mxu1 %v243_v48  ;;  %v459_v31 = vld [vmem:[#allocation6 + $0x9a8] sm:$0xff] }
  0xb5   :  { %909 = vmatpush.msra.mxu2 %v307_v49  ;;  %928 = vmatpush.msra.mxu3 %v375_v50  ;;  %v523_v32 = vld [vmem:[#allocation6 + $0xba8] sm:$0xff] }
  0xb6   :  { %870 = vmatpush.msra.mxu0 %v175_v51  ;;  %890 = vmatpush.msra.mxu1 %v239_v52  ;;  %v587_v33 = vld [vmem:[#allocation6 + $0xda8] sm:$0xff] }
  0xb7   :  { %910 = vmatpush.msra.mxu2 %v303_v53  ;;  %929 = vmatpush.msra.mxu3 %v371_v54  ;;  %v655_v34 = vld [vmem:[#allocation6 + $0xfc8] sm:$0xff] }
  0xb8   :  { %871 = vmatpush.msra.mxu0 %v171_v55  ;;  %891 = vmatpush.msra.mxu1 %v235_v56  ;;  %v455_v35 = vld [vmem:[#allocation6 + $0x988] sm:$0xff] }
  0xb9   :  { %911 = vmatpush.msra.mxu2 %v299_v57  ;;  %930 = vmatpush.msra.mxu3 %v367_v58  ;;  %v519_v36 = vld [vmem:[#allocation6 + $0xb88] sm:$0xff] }
  0xba   :  { %872 = vmatpush.msra.mxu0 %v167_v59  ;;  %892 = vmatpush.msra.mxu1 %v231_v60  ;;  %v583_v37 = vld [vmem:[#allocation6 + $0xd88] sm:$0xff] }
  0xbb   :  { %912 = vmatpush.msra.mxu2 %v295_v61  ;;  %931 = vmatpush.msra.mxu3 %v363_v62  ;;  %v651_v38 = vld [vmem:[#allocation6 + $0xfa8] sm:$0xff] }
  0xbc   :  { %873 = vmatpush.msra.mxu0 %v163_v0  ;;  %893 = vmatpush.msra.mxu1 %v227_v1  ;;  %v451_v39 = vld [vmem:[#allocation6 + $0x968] sm:$0xff] }
  0xbd   :  { %913 = vmatpush.msra.mxu2 %v291_v2  ;;  %932 = vmatpush.msra.mxu3 %v359_v3  ;;  %v515_v40 = vld [vmem:[#allocation6 + $0xb68] sm:$0xff] }
  0xbe   :  { %874 = vmatpush.msra.mxu0 %v159_v6  ;;  %894 = vmatpush.msra.mxu1 %v223_v7  ;;  %v579_v41 = vld [vmem:[#allocation6 + $0xd68] sm:$0xff] }
  0xbf   :  { %914 = vmatpush.msra.mxu2 %v287_v8  ;;  %933 = vmatpush.msra.mxu3 %v355_v9  ;;  %v647_v42 = vld [vmem:[#allocation6 + $0xf88] sm:$0xff] }
  0xc0   :  { %875 = vmatpush.msra.mxu0 %v155_v11  ;;  %895 = vmatpush.msra.mxu1 %v219_v12  ;;  %v447_v43 = vld [vmem:[#allocation6 + $0x948] sm:$0xff] }
  0xc1   :  { %915 = vmatpush.msra.mxu2 %v283_v13  ;;  %934 = vmatpush.msra.mxu3 %v351_v14  ;;  %v511_v44 = vld [vmem:[#allocation6 + $0xb48] sm:$0xff] }
  0xc2   :  { %876 = vmatpush.msra.mxu0 %v151_v15  ;;  %896 = vmatpush.msra.mxu1 %v215_v16  ;;  %v575_v45 = vld [vmem:[#allocation6 + $0xd48] sm:$0xff] }
  0xc3   :  { %916 = vmatpush.msra.mxu2 %v279_v17  ;;  %935 = vmatpush.msra.mxu3 %v347_v18  ;;  %v643_v46 = vld [vmem:[#allocation6 + $0xf68] sm:$0xff] }
  0xc4   :  { %941 = vmatpush.msrb.mxu0 %v467_v20  ;;  %961 = vmatpush.msrb.mxu1 %v531_v21  ;;  %v443_v47 = vld [vmem:[#allocation6 + $0x928] sm:$0xff] }
  0xc5   :  { %981 = vmatpush.msrb.mxu2 %v595_v22  ;;  %936 = vmatpush.msra.mxu3 %v343_v23  ;;  %v507_v48 = vld [vmem:[#allocation6 + $0xb28] sm:$0xff] }
  0xc6   :  { %942 = vmatpush.msrb.mxu0 %v463_v26  ;;  %962 = vmatpush.msrb.mxu1 %v527_v27  ;;  %v571_v49 = vld [vmem:[#allocation6 + $0xd28] sm:$0xff] }
  0xc7   :  { %982 = vmatpush.msrb.mxu2 %v591_v28  ;;  %1001 = vmatpush.msrb.mxu3 %v659_v29  ;;  %v639_v50 = vld [vmem:[#allocation6 + $0xf48] sm:$0xff] }
  0xc8   :  { %943 = vmatpush.msrb.mxu0 %v459_v31  ;;  %963 = vmatpush.msrb.mxu1 %v523_v32  ;;  %v439_v51 = vld [vmem:[#allocation6 + $0x908] sm:$0xff]  ;;  %v212_v31 = vld [vmem:[#allocation6 + $0x1f0] sm:$0xff] }
  0xc9   :  { %983 = vmatpush.msrb.mxu2 %v587_v33  ;;  %1002 = vmatpush.msrb.mxu3 %v655_v34  ;;  %v503_v52 = vld [vmem:[#allocation6 + $0xb08] sm:$0xff]  ;;  %v276_v32 = vld [vmem:[#allocation6 + $0x3f0] sm:$0xff] }
  0xca   :  { %944 = vmatpush.msrb.mxu0 %v455_v35  ;;  %964 = vmatpush.msrb.mxu1 %v519_v36  ;;  %v567_v53 = vld [vmem:[#allocation6 + $0xd08] sm:$0xff]  ;;  %v340_v33 = vld [vmem:[#allocation6 + $0x5f0] sm:$0xff] }
  0xcb   :  { %984 = vmatpush.msrb.mxu2 %v583_v37  ;;  %1003 = vmatpush.msrb.mxu3 %v651_v38  ;;  %v635_v54 = vld [vmem:[#allocation6 + $0xf28] sm:$0xff]  ;;  %v272_v35 = vld [vmem:[#allocation6 + $0x3d0] sm:$0xff] }
  0xcc   :  { %945 = vmatpush.msrb.mxu0 %v451_v39  ;;  %965 = vmatpush.msrb.mxu1 %v515_v40  ;;  %v435_v55 = vld [vmem:[#allocation6 + $0x8e8] sm:$0xff]  ;;  %v336_v36 = vld [vmem:[#allocation6 + $0x5d0] sm:$0xff] }
  0xcd   :  { %985 = vmatpush.msrb.mxu2 %v579_v41  ;;  %1004 = vmatpush.msrb.mxu3 %v647_v42  ;;  %v499_v56 = vld [vmem:[#allocation6 + $0xae8] sm:$0xff]  ;;  %v404_v37 = vld [vmem:[#allocation6 + $0x7f0] sm:$0xff] }
  0xce   :  { %946 = vmatpush.msrb.mxu0 %v447_v43  ;;  %966 = vmatpush.msrb.mxu1 %v511_v44  ;;  %v563_v57 = vld [vmem:[#allocation6 + $0xce8] sm:$0xff]  ;;  %v332_v38 = vld [vmem:[#allocation6 + $0x5b0] sm:$0xff] }
  0xcf   :  { %986 = vmatpush.msrb.mxu2 %v575_v45  ;;  %1005 = vmatpush.msrb.mxu3 %v643_v46  ;;  %v631_v58 = vld [vmem:[#allocation6 + $0xf08] sm:$0xff]  ;;  %v400_v39 = vld [vmem:[#allocation6 + $0x7d0] sm:$0xff] }
  0xd0   :  { %947 = vmatpush.msrb.mxu0 %v443_v47  ;;  %967 = vmatpush.msrb.mxu1 %v507_v48  ;;  %v431_v59 = vld [vmem:[#allocation6 + $0x8c8] sm:$0xff]  ;;  %v264_v40 = vld [vmem:[#allocation6 + $0x390] sm:$0xff] }
  0xd1   :  { %987 = vmatpush.msrb.mxu2 %v571_v49  ;;  %1006 = vmatpush.msrb.mxu3 %v639_v50  ;;  %v495_v60 = vld [vmem:[#allocation6 + $0xac8] sm:$0xff]  ;;  %v328_v41 = vld [vmem:[#allocation6 + $0x590] sm:$0xff] }
  0xd2   :  { %948 = vmatpush.msrb.mxu0 %v439_v51  ;;  %968 = vmatpush.msrb.mxu1 %v503_v52  ;;  %v559_v61 = vld [vmem:[#allocation6 + $0xcc8] sm:$0xff]  ;;  %v396_v42 = vld [vmem:[#allocation6 + $0x7b0] sm:$0xff] }
  0xd3   :  { %988 = vmatpush.msrb.mxu2 %v567_v53  ;;  %1007 = vmatpush.msrb.mxu3 %v635_v54  ;;  %v627_v62 = vld [vmem:[#allocation6 + $0xee8] sm:$0xff]  ;;  %v196_v43 = vld [vmem:[#allocation6 + $0x170] sm:$0xff] }
  0xd4   :  { %949 = vmatpush.msrb.mxu0 %v435_v55  ;;  %969 = vmatpush.msrb.mxu1 %v499_v56  ;;  %v427_v0 = vld [vmem:[#allocation6 + $0x8a8] sm:$0xff]  ;;  %v260_v44 = vld [vmem:[#allocation6 + $0x370] sm:$0xff] }
  0xd5   :  { %989 = vmatpush.msrb.mxu2 %v563_v57  ;;  %1008 = vmatpush.msrb.mxu3 %v631_v58  ;;  %v491_v1 = vld [vmem:[#allocation6 + $0xaa8] sm:$0xff]  ;;  %v324_v45 = vld [vmem:[#allocation6 + $0x570] sm:$0xff] }
  0xd6   :  { %950 = vmatpush.msrb.mxu0 %v431_v59  ;;  %970 = vmatpush.msrb.mxu1 %v495_v60  ;;  %v555_v2 = vld [vmem:[#allocation6 + $0xca8] sm:$0xff]  ;;  %v392_v46 = vld [vmem:[#allocation6 + $0x790] sm:$0xff] }
  0xd7   :  { %v623_v3 = vld [vmem:[#allocation6 + $0xec8] sm:$0xff]  ;;  %990 = vmatpush.msrb.mxu2 %v559_v61  ;;  %1009 = vmatpush.msrb.mxu3 %v627_v62  ;;  %v256_v47 = vld [vmem:[#allocation6 + $0x350] sm:$0xff] }
  0xd8   :  { %v423_v6 = vld [vmem:[#allocation6 + $0x888] sm:$0xff]  ;;  %951 = vmatpush.msrb.mxu0 %v427_v0  ;;  %971 = vmatpush.msrb.mxu1 %v491_v1  ;;  %v320_v48 = vld [vmem:[#allocation6 + $0x550] sm:$0xff] }
  0xd9   :  { %v487_v7 = vld [vmem:[#allocation6 + $0xa88] sm:$0xff]  ;;  %991 = vmatpush.msrb.mxu2 %v555_v2  ;;  %1010 = vmatpush.msrb.mxu3 %v623_v3  ;;  %v388_v49 = vld [vmem:[#allocation6 + $0x770] sm:$0xff] }
  0xda   :  { %v551_v8 = vld [vmem:[#allocation6 + $0xc88] sm:$0xff]  ;;  %952 = vmatpush.msrb.mxu0 %v423_v6  ;;  %972 = vmatpush.msrb.mxu1 %v487_v7  ;;  %v316_v50 = vld [vmem:[#allocation6 + $0x530] sm:$0xff] }
  0xdb   :  { %v619_v9 = vld [vmem:[#allocation6 + $0xea8] sm:$0xff]  ;;  %992 = vmatpush.msrb.mxu2 %v551_v8  ;;  %877 = vmatmul.f32.vlgmr.msra.gmra.mxu0 %v2104_v4  ;;  %v204_v4 = vld [vmem:[#allocation6 + $0x1b0] sm:$0xff] }
  0xdc   :  { %v419_v11 = vld [vmem:[#allocation6 + $0x868] sm:$0xff]  ;;  %1011 = vmatpush.msrb.mxu3 %v619_v9  ;;  %917 = vmatmul.f32.vlgmr.msra.gmra.mxu2 %v2102_v63  ;;  %v208_v63 = vld [vmem:[#allocation6 + $0x1d0] sm:$0xff] }
  0xdd   :  { %v483_v12 = vld [vmem:[#allocation6 + $0xa68] sm:$0xff]  ;;  %953 = vmatpush.msrb.mxu0 %v419_v11  ;;  %937 = vmatmul.f32.vlgmr.msra.gmra.mxu3 %v2107_v5  ;;  %v268_v5 = vld [vmem:[#allocation6 + $0x3b0] sm:$0xff] }
  0xde   :  { %v547_v13 = vld [vmem:[#allocation6 + $0xc68] sm:$0xff]  ;;  %973 = vmatpush.msrb.mxu1 %v483_v12  ;;  %v384_v51 = vld [vmem:[#allocation6 + $0x750] sm:$0xff] }
  0xdf   :  { %v615_v14 = vld [vmem:[#allocation6 + $0xe88] sm:$0xff]  ;;  %993 = vmatpush.msrb.mxu2 %v547_v13  ;;  %897 = vmatmul.f32.vlgmr.msra.gmra.mxu1 %v2110_v10  ;;  %v200_v10 = vld [vmem:[#allocation6 + $0x190] sm:$0xff] }
  0xe0   :  { %v415_v15 = vld [vmem:[#allocation6 + $0x848] sm:$0xff]  ;;  %1012 = vmatpush.msrb.mxu3 %v615_v14  ;;  %v184_v52 = vld [vmem:[#allocation6 + $0x110] sm:$0xff] }
  0xe1   :  { %v479_v16 = vld [vmem:[#allocation6 + $0xa48] sm:$0xff]  ;;  %954 = vmatpush.msrb.mxu0 %v415_v15  ;;  %v248_v53 = vld [vmem:[#allocation6 + $0x310] sm:$0xff] }
  0xe2   :  { %v543_v17 = vld [vmem:[#allocation6 + $0xc48] sm:$0xff]  ;;  %974 = vmatpush.msrb.mxu1 %v479_v16  ;;  %v380_v54 = vld [vmem:[#allocation6 + $0x730] sm:$0xff] }
  0xe3   :  { %v611_v18 = vld [vmem:[#allocation6 + $0xe68] sm:$0xff]  ;;  %994 = vmatpush.msrb.mxu2 %v543_v17  ;;  %v180_v55 = vld [vmem:[#allocation6 + $0xf0] sm:$0xff] }
  0xe4   :  { %v411_v20 = vld [vmem:[#allocation6 + $0x828] sm:$0xff]  ;;  %1013 = vmatpush.msrb.mxu3 %v611_v18  ;;  %v244_v56 = vld [vmem:[#allocation6 + $0x2f0] sm:$0xff] }
  0xe5   :  { %v475_v21 = vld [vmem:[#allocation6 + $0xa28] sm:$0xff]  ;;  %955 = vmatpush.msrb.mxu0 %v411_v20  ;;  %v308_v57 = vld [vmem:[#allocation6 + $0x4f0] sm:$0xff] }
  0xe6   :  { %v539_v22 = vld [vmem:[#allocation6 + $0xc28] sm:$0xff]  ;;  %975 = vmatpush.msrb.mxu1 %v475_v21  ;;  %v376_v58 = vld [vmem:[#allocation6 + $0x710] sm:$0xff] }
  0xe7   :  { %v607_v23 = vld [vmem:[#allocation6 + $0xe48] sm:$0xff]  ;;  %995 = vmatpush.msrb.mxu2 %v539_v22  ;;  %v176_v59 = vld [vmem:[#allocation6 + $0xd0] sm:$0xff] }
  0xe8   :  { %v407_v26 = vld [vmem:[#allocation6 + $0x808] sm:$0xff]  ;;  %1014 = vmatpush.msrb.mxu3 %v607_v23  ;;  %v240_v60 = vld [vmem:[#allocation6 + $0x2d0] sm:$0xff] }
  0xe9   :  { %v471_v27 = vld [vmem:[#allocation6 + $0xa08] sm:$0xff]  ;;  %956 = vmatpush.msrb.mxu0 %v407_v26  ;;  %v304_v61 = vld [vmem:[#allocation6 + $0x4d0] sm:$0xff] }
  0xea   :  { %v535_v28 = vld [vmem:[#allocation6 + $0xc08] sm:$0xff]  ;;  %976 = vmatpush.msrb.mxu1 %v471_v27  ;;  %957 = vmatmul.f32.vlgmr.msrb.gmra.mxu0 %v2116_v24  ;;  %v188_v24 = vld [vmem:[#allocation6 + $0x130] sm:$0xff] }
  0xeb   :  { %v603_v29 = vld [vmem:[#allocation6 + $0xe28] sm:$0xff]  ;;  %996 = vmatpush.msrb.mxu2 %v535_v28  ;;  %1021 = vmatpush.msra.mxu0 %v212_v31  ;;  %v372_v62 = vld [vmem:[#allocation6 + $0x6f0] sm:$0xff] }
  0xec   :  { %v599_v34 = vld [vmem:[#allocation6 + $0xe08] sm:$0xff]  ;;  %1015 = vmatpush.msrb.mxu3 %v603_v29  ;;  %1041 = vmatpush.msra.mxu1 %v276_v32  ;;  %v172_v0 = vld [vmem:[#allocation6 + $0xb0] sm:$0xff] }
  0xed   :  { %1061 = vmatpush.msra.mxu2 %v340_v33  ;;  %1022 = vmatpush.msra.mxu0 %v208_v63  ;;  %v236_v1 = vld [vmem:[#allocation6 + $0x2b0] sm:$0xff] }
  0xee   :  { %1016 = vmatpush.msrb.mxu3 %v599_v34  ;;  %1042 = vmatpush.msra.mxu1 %v272_v35  ;;  %v300_v2 = vld [vmem:[#allocation6 + $0x4b0] sm:$0xff] }
  0xef   :  { %1062 = vmatpush.msra.mxu2 %v336_v36  ;;  %1023 = vmatpush.msra.mxu0 %v204_v4  ;;  %v368_v3 = vld [vmem:[#allocation6 + $0x6d0] sm:$0xff] }
  0xf0   :  { %1081 = vmatpush.msra.mxu3 %v404_v37  ;;  %997 = vmatmul.f32.vlgmr.msrb.gmra.mxu2 %v2114_v19  ;;  %v192_v19 = vld [vmem:[#allocation6 + $0x150] sm:$0xff] }
  0xf1   :  { %1043 = vmatpush.msra.mxu1 %v268_v5  ;;  %1063 = vmatpush.msra.mxu2 %v332_v38  ;;  %v168_v6 = vld [vmem:[#allocation6 + $0x90] sm:$0xff] }
  0xf2   :  { %1082 = vmatpush.msra.mxu3 %v400_v39  ;;  %1024 = vmatpush.msra.mxu0 %v200_v10  ;;  %v232_v7 = vld [vmem:[#allocation6 + $0x290] sm:$0xff] }
  0xf3   :  { %1017 = vmatmul.f32.vlgmr.msrb.gmra.mxu3 %v2119_v25  ;;  %1044 = vmatpush.msra.mxu1 %v264_v40  ;;  %v252_v25 = vld [vmem:[#allocation6 + $0x330] sm:$0xff] }
  0xf4   :  { %1064 = vmatpush.msra.mxu2 %v328_v41  ;;  %1083 = vmatpush.msra.mxu3 %v396_v42  ;;  %v296_v8 = vld [vmem:[#allocation6 + $0x490] sm:$0xff] }
  0xf5   :  { %977 = vmatmul.f32.vlgmr.msrb.gmra.mxu1 %v2122_v30  ;;  %1025 = vmatpush.msra.mxu0 %v196_v43  ;;  %v312_v30 = vld [vmem:[#allocation6 + $0x510] sm:$0xff] }
  0xf6   :  { %1045 = vmatpush.msra.mxu1 %v260_v44  ;;  %1065 = vmatpush.msra.mxu2 %v324_v45  ;;  %v364_v9 = vld [vmem:[#allocation6 + $0x6b0] sm:$0xff] }
  0xf7   :  { %1084 = vmatpush.msra.mxu3 %v392_v46  ;;  %1026 = vmatpush.msra.mxu0 %v192_v19  ;;  %v164_v11 = vld [vmem:[#allocation6 + $0x70] sm:$0xff] }
  0xf8   :  { %1046 = vmatpush.msra.mxu1 %v256_v47  ;;  %1066 = vmatpush.msra.mxu2 %v320_v48  ;;  %v228_v12 = vld [vmem:[#allocation6 + $0x270] sm:$0xff] }
  0xf9   :  { %1085 = vmatpush.msra.mxu3 %v388_v49  ;;  %1027 = vmatpush.msra.mxu0 %v188_v24  ;;  %v292_v13 = vld [vmem:[#allocation6 + $0x470] sm:$0xff] }
  0xfa   :  { %1047 = vmatpush.msra.mxu1 %v252_v25  ;;  %1067 = vmatpush.msra.mxu2 %v316_v50  ;;  %v360_v14 = vld [vmem:[#allocation6 + $0x690] sm:$0xff] }
  0xfb   :  { %1086 = vmatpush.msra.mxu3 %v384_v51  ;;  %1028 = vmatpush.msra.mxu0 %v184_v52  ;;  %v160_v15 = vld [vmem:[#allocation6 + $0x50] sm:$0xff] }
  0xfc   :  { %1048 = vmatpush.msra.mxu1 %v248_v53  ;;  %1068 = vmatpush.msra.mxu2 %v312_v30  ;;  %v224_v16 = vld [vmem:[#allocation6 + $0x250] sm:$0xff] }
  0xfd   :  { %1087 = vmatpush.msra.mxu3 %v380_v54  ;;  %1029 = vmatpush.msra.mxu0 %v180_v55  ;;  %v288_v17 = vld [vmem:[#allocation6 + $0x450] sm:$0xff] }
  0xfe   :  { %1049 = vmatpush.msra.mxu1 %v244_v56  ;;  %1069 = vmatpush.msra.mxu2 %v308_v57  ;;  %v356_v18 = vld [vmem:[#allocation6 + $0x670] sm:$0xff] }
  0xff   :  { %1088 = vmatpush.msra.mxu3 %v376_v58  ;;  %1030 = vmatpush.msra.mxu0 %v176_v59  ;;  %v156_v20 = vld [vmem:[#allocation6 + $0x30] sm:$0xff] }
 0x100   :  { %1050 = vmatpush.msra.mxu1 %v240_v60  ;;  %1070 = vmatpush.msra.mxu2 %v304_v61  ;;  %v220_v21 = vld [vmem:[#allocation6 + $0x230] sm:$0xff] }
 0x101   :  { %1089 = vmatpush.msra.mxu3 %v372_v62  ;;  %1031 = vmatpush.msra.mxu0 %v172_v0  ;;  %v284_v22 = vld [vmem:[#allocation6 + $0x430] sm:$0xff] }
 0x102   :  { %1051 = vmatpush.msra.mxu1 %v236_v1  ;;  %1071 = vmatpush.msra.mxu2 %v300_v2  ;;  %v352_v23 = vld [vmem:[#allocation6 + $0x650] sm:$0xff] }
 0x103   :  { %1090 = vmatpush.msra.mxu3 %v368_v3  ;;  %1032 = vmatpush.msra.mxu0 %v168_v6  ;;  %v152_v26 = vld [vmem:[#allocation6 + $0x10] sm:$0xff] }
 0x104   :  { %1052 = vmatpush.msra.mxu1 %v232_v7  ;;  %1072 = vmatpush.msra.mxu2 %v296_v8  ;;  %v216_v27 = vld [vmem:[#allocation6 + $0x210] sm:$0xff] }
 0x105   :  { %1091 = vmatpush.msra.mxu3 %v364_v9  ;;  %1033 = vmatpush.msra.mxu0 %v164_v11  ;;  %v280_v28 = vld [vmem:[#allocation6 + $0x410] sm:$0xff] }
 0x106   :  { %1053 = vmatpush.msra.mxu1 %v228_v12  ;;  %1073 = vmatpush.msra.mxu2 %v292_v13  ;;  %v348_v29 = vld [vmem:[#allocation6 + $0x630] sm:$0xff] }
 0x107   :  { %1092 = vmatpush.msra.mxu3 %v360_v14  ;;  %1034 = vmatpush.msra.mxu0 %v160_v15  ;;  %v468_v31 = vld [vmem:[#allocation6 + $0x9f0] sm:$0xff]  ;;  %v2134_v15 = vld.sshfl [vmem:[#allocation1 + $0x10] sm:$0xff pattern:$0x73625140] }
 0x108   :  { %1054 = vmatpush.msra.mxu1 %v224_v16  ;;  %1074 = vmatpush.msra.mxu2 %v288_v17  ;;  %v532_v32 = vld [vmem:[#allocation6 + $0xbf0] sm:$0xff] }
 0x109   :  { %1093 = vmatpush.msra.mxu3 %v356_v18  ;;  %1035 = vmatpush.msra.mxu0 %v156_v20  ;;  %v596_v33 = vld [vmem:[#allocation6 + $0xdf0] sm:$0xff]  ;;  %v2137_v20 = vld.sshfl [vmem:[#allocation1] sm:$0xff pattern:$0x73625140] }
 0x10a   :  { %1055 = vmatpush.msra.mxu1 %v220_v21  ;;  %1075 = vmatpush.msra.mxu2 %v284_v22  ;;  %v344_v34 = vld [vmem:[#allocation6 + $0x610] sm:$0xff] }
 0x10b   :  { %1094 = vmatpush.msra.mxu3 %v352_v23  ;;  %1036 = vmatpush.msra.mxu0 %v152_v26  ;;  %v464_v63 = vld [vmem:[#allocation6 + $0x9d0] sm:$0xff] }
 0x10c   :  { %1056 = vmatpush.msra.mxu1 %v216_v27  ;;  %1076 = vmatpush.msra.mxu2 %v280_v28  ;;  %v528_v35 = vld [vmem:[#allocation6 + $0xbd0] sm:$0xff] }
 0x10d   :  { %1095 = vmatpush.msra.mxu3 %v348_v29  ;;  %1101 = vmatpush.msrb.mxu0 %v468_v31  ;;  %v592_v36 = vld [vmem:[#allocation6 + $0xdd0] sm:$0xff]  ;;  %v2143_v29 = vld.sshfl [vmem:[#allocation1 + $0x8] sm:$0xff pattern:$0x73625140] }
 0x10e   :  { %1121 = vmatpush.msrb.mxu1 %v532_v32  ;;  %v660_v37 = vld [vmem:[#allocation6 + $0xff0] sm:$0xff]  ;;  %1141 = vmatpush.msrb.mxu2 %v596_v33 }
 0x10f   :  { %1096 = vmatpush.msra.mxu3 %v344_v34  ;;  %v460_v4 = vld [vmem:[#allocation6 + $0x9b0] sm:$0xff]  ;;  %1102 = vmatpush.msrb.mxu0 %v464_v63  ;;  %v213_v63 = vld [vmem:[#allocation6 + $0x1f8] sm:$0xff] }
 0x110   :  { %v524_v5 = vld [vmem:[#allocation6 + $0xbb0] sm:$0xff]  ;;  %1122 = vmatpush.msrb.mxu1 %v528_v35  ;;  %1142 = vmatpush.msrb.mxu2 %v592_v36  ;;  %v277_v35 = vld [vmem:[#allocation6 + $0x3f8] sm:$0xff] }
 0x111   :  { %v588_v38 = vld [vmem:[#allocation6 + $0xdb0] sm:$0xff]  ;;  %1161 = vmatpush.msrb.mxu3 %v660_v37  ;;  %1103 = vmatpush.msrb.mxu0 %v460_v4  ;;  %v341_v36 = vld [vmem:[#allocation6 + $0x5f8] sm:$0xff]  ;;  %v2146_v4 = vld.sshfl [vmem:[#allocation1 + $0x30] sm:$0xff pattern:$0x73625140] }
 0x112   :  { %v656_v39 = vld [vmem:[#allocation6 + $0xfd0] sm:$0xff]  ;;  %1123 = vmatpush.msrb.mxu1 %v524_v5  ;;  %1143 = vmatpush.msrb.mxu2 %v588_v38  ;;  %v209_v5 = vld [vmem:[#allocation6 + $0x1d8] sm:$0xff] }
 0x113   :  { %v456_v10 = vld [vmem:[#allocation6 + $0x990] sm:$0xff]  ;;  %1162 = vmatpush.msrb.mxu3 %v656_v39  ;;  %1077 = vmatmul.f32.vlgmr.msra.gmra.mxu2 %v2134_v15  ;;  %v273_v38 = vld [vmem:[#allocation6 + $0x3d8] sm:$0xff] }
 0x114   :  { %v520_v40 = vld [vmem:[#allocation6 + $0xb90] sm:$0xff]  ;;  %1104 = vmatpush.msrb.mxu0 %v456_v10  ;;  %1057 = vmatmul.f32.vlgmr.msra.gmra.mxu1 %v2143_v29  ;;  %v337_v39 = vld [vmem:[#allocation6 + $0x5d8] sm:$0xff] }
 0x115   :  { %v584_v41 = vld [vmem:[#allocation6 + $0xd90] sm:$0xff]  ;;  %1124 = vmatpush.msrb.mxu1 %v520_v40  ;;  %1037 = vmatmul.f32.vlgmr.msra.gmra.mxu0 %v2137_v20  ;;  %v2149_v10 = vld.sshfl [vmem:[#allocation1 + $0x20] sm:$0xff pattern:$0x73625140] }
 0x116   :  { %v652_v42 = vld [vmem:[#allocation6 + $0xfb0] sm:$0xff]  ;;  %1144 = vmatpush.msrb.mxu2 %v584_v41  ;;  %v405_v40 = vld [vmem:[#allocation6 + $0x7f8] sm:$0xff] }
 0x117   :  { %v452_v43 = vld [vmem:[#allocation6 + $0x970] sm:$0xff]  ;;  %1163 = vmatpush.msrb.mxu3 %v652_v42  ;;  %v205_v42 = vld [vmem:[#allocation6 + $0x1b8] sm:$0xff] }
 0x118   :  { %v516_v44 = vld [vmem:[#allocation6 + $0xb70] sm:$0xff]  ;;  %1105 = vmatpush.msrb.mxu0 %v452_v43  ;;  %v269_v43 = vld [vmem:[#allocation6 + $0x3b8] sm:$0xff] }
 0x119   :  { %v580_v45 = vld [vmem:[#allocation6 + $0xd70] sm:$0xff]  ;;  %1125 = vmatpush.msrb.mxu1 %v516_v44  ;;  %v333_v44 = vld [vmem:[#allocation6 + $0x5b8] sm:$0xff] }
 0x11a   :  { %v648_v46 = vld [vmem:[#allocation6 + $0xf90] sm:$0xff]  ;;  %1145 = vmatpush.msrb.mxu2 %v580_v45  ;;  %v401_v45 = vld [vmem:[#allocation6 + $0x7d8] sm:$0xff] }
 0x11b   :  { %v448_v19 = vld [vmem:[#allocation6 + $0x950] sm:$0xff]  ;;  %1164 = vmatpush.msrb.mxu3 %v648_v46  ;;  %v2155_v46 = vld.sshfl [vmem:[#allocation1 + $0x28] sm:$0xff pattern:$0x73625140] }
 0x11c   :  { %v512_v47 = vld [vmem:[#allocation6 + $0xb50] sm:$0xff]  ;;  %1106 = vmatpush.msrb.mxu0 %v448_v19  ;;  %v201_v19 = vld [vmem:[#allocation6 + $0x198] sm:$0xff] }
 0x11d   :  { %v576_v48 = vld [vmem:[#allocation6 + $0xd50] sm:$0xff]  ;;  %1126 = vmatpush.msrb.mxu1 %v512_v47  ;;  %v265_v47 = vld [vmem:[#allocation6 + $0x398] sm:$0xff] }
 0x11e   :  { %v644_v49 = vld [vmem:[#allocation6 + $0xf70] sm:$0xff]  ;;  %1146 = vmatpush.msrb.mxu2 %v576_v48  ;;  %v329_v48 = vld [vmem:[#allocation6 + $0x598] sm:$0xff] }
 0x11f   :  { %v444_v24 = vld [vmem:[#allocation6 + $0x930] sm:$0xff]  ;;  %1165 = vmatpush.msrb.mxu3 %v644_v49  ;;  %v397_v49 = vld [vmem:[#allocation6 + $0x7b8] sm:$0xff] }
 0x120   :  { %v508_v25 = vld [vmem:[#allocation6 + $0xb30] sm:$0xff]  ;;  %1107 = vmatpush.msrb.mxu0 %v444_v24  ;;  %v197_v24 = vld [vmem:[#allocation6 + $0x178] sm:$0xff] }
 0x121   :  { %v572_v50 = vld [vmem:[#allocation6 + $0xd30] sm:$0xff]  ;;  %1127 = vmatpush.msrb.mxu1 %v508_v25  ;;  %v261_v25 = vld [vmem:[#allocation6 + $0x378] sm:$0xff] }
 0x122   :  { %v640_v51 = vld [vmem:[#allocation6 + $0xf50] sm:$0xff]  ;;  %1147 = vmatpush.msrb.mxu2 %v572_v50  ;;  %v325_v50 = vld [vmem:[#allocation6 + $0x578] sm:$0xff] }
 0x123   :  { %v440_v52 = vld [vmem:[#allocation6 + $0x910] sm:$0xff]  ;;  %1166 = vmatpush.msrb.mxu3 %v640_v51  ;;  %v393_v51 = vld [vmem:[#allocation6 + $0x798] sm:$0xff] }
 0x124   :  { %v504_v53 = vld [vmem:[#allocation6 + $0xb10] sm:$0xff]  ;;  %1108 = vmatpush.msrb.mxu0 %v440_v52  ;;  %v193_v52 = vld [vmem:[#allocation6 + $0x158] sm:$0xff] }
 0x125   :  { %v568_v30 = vld [vmem:[#allocation6 + $0xd10] sm:$0xff]  ;;  %1128 = vmatpush.msrb.mxu1 %v504_v53  ;;  %v257_v53 = vld [vmem:[#allocation6 + $0x358] sm:$0xff] }
 0x126   :  { %v636_v54 = vld [vmem:[#allocation6 + $0xf30] sm:$0xff]  ;;  %1148 = vmatpush.msrb.mxu2 %v568_v30  ;;  %v321_v30 = vld [vmem:[#allocation6 + $0x558] sm:$0xff] }
 0x127   :  { %v436_v55 = vld [vmem:[#allocation6 + $0x8f0] sm:$0xff]  ;;  %1167 = vmatpush.msrb.mxu3 %v636_v54  ;;  %v389_v54 = vld [vmem:[#allocation6 + $0x778] sm:$0xff] }
 0x128   :  { %v500_v56 = vld [vmem:[#allocation6 + $0xaf0] sm:$0xff]  ;;  %1109 = vmatpush.msrb.mxu0 %v436_v55  ;;  %v189_v55 = vld [vmem:[#allocation6 + $0x138] sm:$0xff] }
 0x129   :  { %v564_v57 = vld [vmem:[#allocation6 + $0xcf0] sm:$0xff]  ;;  %1129 = vmatpush.msrb.mxu1 %v500_v56  ;;  %v253_v56 = vld [vmem:[#allocation6 + $0x338] sm:$0xff] }
 0x12a   :  { %v632_v58 = vld [vmem:[#allocation6 + $0xf10] sm:$0xff]  ;;  %1149 = vmatpush.msrb.mxu2 %v564_v57  ;;  %v317_v57 = vld [vmem:[#allocation6 + $0x538] sm:$0xff] }
 0x12b   :  { %v432_v59 = vld [vmem:[#allocation6 + $0x8d0] sm:$0xff]  ;;  %1168 = vmatpush.msrb.mxu3 %v632_v58  ;;  %v385_v58 = vld [vmem:[#allocation6 + $0x758] sm:$0xff] }
 0x12c   :  { %v496_v60 = vld [vmem:[#allocation6 + $0xad0] sm:$0xff]  ;;  %1110 = vmatpush.msrb.mxu0 %v432_v59  ;;  %v185_v59 = vld [vmem:[#allocation6 + $0x118] sm:$0xff] }
 0x12d   :  { %v560_v61 = vld [vmem:[#allocation6 + $0xcd0] sm:$0xff]  ;;  %1130 = vmatpush.msrb.mxu1 %v496_v60  ;;  %v249_v60 = vld [vmem:[#allocation6 + $0x318] sm:$0xff] }
 0x12e   :  { %v628_v62 = vld [vmem:[#allocation6 + $0xef0] sm:$0xff]  ;;  %1150 = vmatpush.msrb.mxu2 %v560_v61  ;;  %v313_v61 = vld [vmem:[#allocation6 + $0x518] sm:$0xff] }
 0x12f   :  { %v428_v0 = vld [vmem:[#allocation6 + $0x8b0] sm:$0xff]  ;;  %1169 = vmatpush.msrb.mxu3 %v628_v62  ;;  %v381_v62 = vld [vmem:[#allocation6 + $0x738] sm:$0xff] }
 0x130   :  { %v492_v1 = vld [vmem:[#allocation6 + $0xab0] sm:$0xff]  ;;  %1111 = vmatpush.msrb.mxu0 %v428_v0  ;;  %v181_v0 = vld [vmem:[#allocation6 + $0xf8] sm:$0xff] }
 0x131   :  { %v556_v2 = vld [vmem:[#allocation6 + $0xcb0] sm:$0xff]  ;;  %1131 = vmatpush.msrb.mxu1 %v492_v1  ;;  %v245_v1 = vld [vmem:[#allocation6 + $0x2f8] sm:$0xff] }
 0x132   :  { %v624_v3 = vld [vmem:[#allocation6 + $0xed0] sm:$0xff]  ;;  %1151 = vmatpush.msrb.mxu2 %v556_v2  ;;  %v309_v2 = vld [vmem:[#allocation6 + $0x4f8] sm:$0xff] }
 0x133   :  { %v424_v6 = vld [vmem:[#allocation6 + $0x890] sm:$0xff]  ;;  %1170 = vmatpush.msrb.mxu3 %v624_v3  ;;  %v377_v3 = vld [vmem:[#allocation6 + $0x718] sm:$0xff] }
 0x134   :  { %v488_v7 = vld [vmem:[#allocation6 + $0xa90] sm:$0xff]  ;;  %1112 = vmatpush.msrb.mxu0 %v424_v6  ;;  %v177_v6 = vld [vmem:[#allocation6 + $0xd8] sm:$0xff] }
 0x135   :  { %v552_v8 = vld [vmem:[#allocation6 + $0xc90] sm:$0xff]  ;;  %1132 = vmatpush.msrb.mxu1 %v488_v7  ;;  %v241_v7 = vld [vmem:[#allocation6 + $0x2d8] sm:$0xff] }
 0x136   :  { %v620_v9 = vld [vmem:[#allocation6 + $0xeb0] sm:$0xff]  ;;  %1152 = vmatpush.msrb.mxu2 %v552_v8  ;;  %v305_v8 = vld [vmem:[#allocation6 + $0x4d8] sm:$0xff] }
 0x137   :  { %v420_v11 = vld [vmem:[#allocation6 + $0x870] sm:$0xff]  ;;  %1171 = vmatpush.msrb.mxu3 %v620_v9  ;;  %v373_v9 = vld [vmem:[#allocation6 + $0x6f8] sm:$0xff] }
 0x138   :  { %v484_v12 = vld [vmem:[#allocation6 + $0xa70] sm:$0xff]  ;;  %1113 = vmatpush.msrb.mxu0 %v420_v11  ;;  %v173_v11 = vld [vmem:[#allocation6 + $0xb8] sm:$0xff] }
 0x139   :  { %v548_v13 = vld [vmem:[#allocation6 + $0xc70] sm:$0xff]  ;;  %1133 = vmatpush.msrb.mxu1 %v484_v12  ;;  %v237_v12 = vld [vmem:[#allocation6 + $0x2b8] sm:$0xff] }
 0x13a   :  { %v616_v14 = vld [vmem:[#allocation6 + $0xe90] sm:$0xff]  ;;  %1153 = vmatpush.msrb.mxu2 %v548_v13  ;;  %v301_v13 = vld [vmem:[#allocation6 + $0x4b8] sm:$0xff] }
 0x13b   :  { %v416_v16 = vld [vmem:[#allocation6 + $0x850] sm:$0xff]  ;;  %1172 = vmatpush.msrb.mxu3 %v616_v14  ;;  %v369_v14 = vld [vmem:[#allocation6 + $0x6d8] sm:$0xff] }
 0x13c   :  { %v480_v17 = vld [vmem:[#allocation6 + $0xa50] sm:$0xff]  ;;  %1114 = vmatpush.msrb.mxu0 %v416_v16  ;;  %v169_v16 = vld [vmem:[#allocation6 + $0x98] sm:$0xff] }
 0x13d   :  { %v544_v18 = vld [vmem:[#allocation6 + $0xc50] sm:$0xff]  ;;  %1134 = vmatpush.msrb.mxu1 %v480_v17  ;;  %v233_v17 = vld [vmem:[#allocation6 + $0x298] sm:$0xff] }
 0x13e   :  { %v612_v21 = vld [vmem:[#allocation6 + $0xe70] sm:$0xff]  ;;  %1154 = vmatpush.msrb.mxu2 %v544_v18  ;;  %v297_v18 = vld [vmem:[#allocation6 + $0x498] sm:$0xff] }
 0x13f   :  { %v2140_v22 = vld.sshfl [vmem:[#allocation1 + $0x18] sm:$0xff pattern:$0x73625140]  ;;  %1173 = vmatpush.msrb.mxu3 %v612_v21  ;;  %v365_v21 = vld [vmem:[#allocation6 + $0x6b8] sm:$0xff] }
 0x140   :  { %1097 = vmatmul.f32.vlgmr.msra.gmra.mxu3 %v2140_v22  ;;  %v412_v23 = vld [vmem:[#allocation6 + $0x830] sm:$0xff] }
 0x141   :  { %v476_v26 = vld [vmem:[#allocation6 + $0xa30] sm:$0xff]  ;;  %1115 = vmatpush.msrb.mxu0 %v412_v23  ;;  %v165_v23 = vld [vmem:[#allocation6 + $0x78] sm:$0xff] }
 0x142   :  { %v540_v27 = vld [vmem:[#allocation6 + $0xc30] sm:$0xff]  ;;  %1135 = vmatpush.msrb.mxu1 %v476_v26  ;;  %v229_v26 = vld [vmem:[#allocation6 + $0x278] sm:$0xff] }
 0x143   :  { %v608_v28 = vld [vmem:[#allocation6 + $0xe50] sm:$0xff]  ;;  %1155 = vmatpush.msrb.mxu2 %v540_v27  ;;  %v293_v27 = vld [vmem:[#allocation6 + $0x478] sm:$0xff] }
 0x144   :  { %v408_v31 = vld [vmem:[#allocation6 + $0x810] sm:$0xff]  ;;  %1174 = vmatpush.msrb.mxu3 %v608_v28  ;;  %v361_v28 = vld [vmem:[#allocation6 + $0x698] sm:$0xff] }
 0x145   :  { %v472_v32 = vld [vmem:[#allocation6 + $0xa10] sm:$0xff]  ;;  %1116 = vmatpush.msrb.mxu0 %v408_v31  ;;  %v161_v31 = vld [vmem:[#allocation6 + $0x58] sm:$0xff] }
 0x146   :  { %v536_v33 = vld [vmem:[#allocation6 + $0xc10] sm:$0xff]  ;;  %1136 = vmatpush.msrb.mxu1 %v472_v32  ;;  %1117 = vmatmul.f32.vlgmr.msrb.gmra.mxu0 %v2149_v10  ;;  %v225_v32 = vld [vmem:[#allocation6 + $0x258] sm:$0xff] }
 0x147   :  { %v604_v34 = vld [vmem:[#allocation6 + $0xe30] sm:$0xff]  ;;  %1156 = vmatpush.msrb.mxu2 %v536_v33  ;;  %1181 = vmatpush.msra.mxu0 %v213_v63  ;;  %v289_v33 = vld [vmem:[#allocation6 + $0x458] sm:$0xff] }
 0x148   :  { %1175 = vmatpush.msrb.mxu3 %v604_v34  ;;  %v600_v37 = vld [vmem:[#allocation6 + $0xe10] sm:$0xff]  ;;  %1157 = vmatmul.f32.vlgmr.msrb.gmra.mxu2 %v2146_v4  ;;  %v357_v34 = vld [vmem:[#allocation6 + $0x678] sm:$0xff] }
 0x149   :  { %1201 = vmatpush.msra.mxu1 %v277_v35  ;;  %1221 = vmatpush.msra.mxu2 %v341_v36  ;;  %v2152_v41 = vld.sshfl [vmem:[#allocation1 + $0x38] sm:$0xff pattern:$0x73625140]  ;;  %v157_v63 = vld [vmem:[#allocation6 + $0x38] sm:$0xff] }
 0x14a   :  { %1176 = vmatpush.msrb.mxu3 %v600_v37  ;;  %1182 = vmatpush.msra.mxu0 %v209_v5  ;;  %v221_v35 = vld [vmem:[#allocation6 + $0x238] sm:$0xff] }
 0x14b   :  { %1177 = vmatmul.f32.vlgmr.msrb.gmra.mxu3 %v2152_v41  ;;  %1202 = vmatpush.msra.mxu1 %v273_v38  ;;  %v285_v36 = vld [vmem:[#allocation6 + $0x438] sm:$0xff] }
 0x14c   :  { %1222 = vmatpush.msra.mxu2 %v337_v39  ;;  %1241 = vmatpush.msra.mxu3 %v405_v40  ;;  %v353_v37 = vld [vmem:[#allocation6 + $0x658] sm:$0xff] }
 0x14d   :  { %1137 = vmatmul.f32.vlgmr.msrb.gmra.mxu1 %v2155_v46  ;;  %1183 = vmatpush.msra.mxu0 %v205_v42  ;;  %v153_v5 = vld [vmem:[#allocation6 + $0x18] sm:$0xff] }
 0x14e   :  { %1203 = vmatpush.msra.mxu1 %v269_v43  ;;  %1223 = vmatpush.msra.mxu2 %v333_v44  ;;  %v217_v38 = vld [vmem:[#allocation6 + $0x218] sm:$0xff] }
 0x14f   :  { %1242 = vmatpush.msra.mxu3 %v401_v45  ;;  %1184 = vmatpush.msra.mxu0 %v201_v19  ;;  %v281_v39 = vld [vmem:[#allocation6 + $0x418] sm:$0xff] }
 0x150   :  { %1204 = vmatpush.msra.mxu1 %v265_v47  ;;  %1224 = vmatpush.msra.mxu2 %v329_v48  ;;  %v349_v40 = vld [vmem:[#allocation6 + $0x638] sm:$0xff] }
 0x151   :  { %1243 = vmatpush.msra.mxu3 %v397_v49  ;;  %1185 = vmatpush.msra.mxu0 %v197_v24  ;;  %v469_v42 = vld [vmem:[#allocation6 + $0x9f8] sm:$0xff] }
 0x152   :  { %1205 = vmatpush.msra.mxu1 %v261_v25  ;;  %1225 = vmatpush.msra.mxu2 %v325_v50  ;;  %v533_v43 = vld [vmem:[#allocation6 + $0xbf8] sm:$0xff] }
 0x153   :  { %1244 = vmatpush.msra.mxu3 %v393_v51  ;;  %1186 = vmatpush.msra.mxu0 %v193_v52  ;;  %v597_v44 = vld [vmem:[#allocation6 + $0xdf8] sm:$0xff] }
 0x154   :  { %1206 = vmatpush.msra.mxu1 %v257_v53  ;;  %1226 = vmatpush.msra.mxu2 %v321_v30  ;;  %v345_v45 = vld [vmem:[#allocation6 + $0x618] sm:$0xff] }
 0x155   :  { %1245 = vmatpush.msra.mxu3 %v389_v54  ;;  %1187 = vmatpush.msra.mxu0 %v189_v55  ;;  %v465_v19 = vld [vmem:[#allocation6 + $0x9d8] sm:$0xff] }
 0x156   :  { %1207 = vmatpush.msra.mxu1 %v253_v56  ;;  %1227 = vmatpush.msra.mxu2 %v317_v57  ;;  %v529_v47 = vld [vmem:[#allocation6 + $0xbd8] sm:$0xff] }
 0x157   :  { %1246 = vmatpush.msra.mxu3 %v385_v58  ;;  %1188 = vmatpush.msra.mxu0 %v185_v59  ;;  %v593_v48 = vld [vmem:[#allocation6 + $0xdd8] sm:$0xff] }
 0x158   :  { %1208 = vmatpush.msra.mxu1 %v249_v60  ;;  %1228 = vmatpush.msra.mxu2 %v313_v61  ;;  %v661_v49 = vld [vmem:[#allocation6 + $0xff8] sm:$0xff]  ;;  %v2158_v61 = vpop.f32.mrf.mxu1 }
 0x159   :  { %1247 = vmatpush.msra.mxu3 %v381_v62  ;;  %1189 = vmatpush.msra.mxu0 %v181_v0  ;;  %v461_v24 = vld [vmem:[#allocation6 + $0x9b8] sm:$0xff] }
 0x15a   :  { %1209 = vmatpush.msra.mxu1 %v245_v1  ;;  %1229 = vmatpush.msra.mxu2 %v309_v2  ;;  %v525_v25 = vld [vmem:[#allocation6 + $0xbb8] sm:$0xff] }
 0x15b   :  { %1248 = vmatpush.msra.mxu3 %v377_v3  ;;  %1190 = vmatpush.msra.mxu0 %v177_v6  ;;  %v589_v50 = vld [vmem:[#allocation6 + $0xdb8] sm:$0xff]  ;;  %v2160_v3 = vpop.f32.mrf.mxu0 }
 0x15c   :  { %1210 = vmatpush.msra.mxu1 %v241_v7  ;;  %1230 = vmatpush.msra.mxu2 %v305_v8  ;;  %v657_v51 = vld [vmem:[#allocation6 + $0xfd8] sm:$0xff] }
 0x15d   :  { %1249 = vmatpush.msra.mxu3 %v373_v9  ;;  %1191 = vmatpush.msra.mxu0 %v173_v11  ;;  %v457_v52 = vld [vmem:[#allocation6 + $0x998] sm:$0xff]  ;;  %v2162_v11 = vpop.f32.mrf.mxu2 }
 0x15e   :  { %1211 = vmatpush.msra.mxu1 %v237_v12  ;;  %1231 = vmatpush.msra.mxu2 %v301_v13  ;;  %v521_v53 = vld [vmem:[#allocation6 + $0xb98] sm:$0xff] }
 0x15f   :  { %1250 = vmatpush.msra.mxu3 %v369_v14  ;;  %1192 = vmatpush.msra.mxu0 %v169_v16  ;;  %v585_v30 = vld [vmem:[#allocation6 + $0xd98] sm:$0xff] }
 0x160   :  { %1212 = vmatpush.msra.mxu1 %v233_v17  ;;  %1232 = vmatpush.msra.mxu2 %v297_v18  ;;  %v653_v54 = vld [vmem:[#allocation6 + $0xfb8] sm:$0xff] }
 0x161   :  { %1251 = vmatpush.msra.mxu3 %v365_v21  ;;  %1193 = vmatpush.msra.mxu0 %v165_v23  ;;  %v453_v55 = vld [vmem:[#allocation6 + $0x978] sm:$0xff] }
 0x162   :  { %1213 = vmatpush.msra.mxu1 %v229_v26  ;;  %1233 = vmatpush.msra.mxu2 %v293_v27  ;;  %v517_v56 = vld [vmem:[#allocation6 + $0xb78] sm:$0xff]  ;;  %v2164_v26 = vpop.f32.mrf.mxu3 }
 0x163   :  { %1252 = vmatpush.msra.mxu3 %v361_v28  ;;  %1194 = vmatpush.msra.mxu0 %v161_v31  ;;  %v581_v57 = vld [vmem:[#allocation6 + $0xd78] sm:$0xff] }
 0x164   :  { %1214 = vmatpush.msra.mxu1 %v225_v32  ;;  %1234 = vmatpush.msra.mxu2 %v289_v33  ;;  %v649_v58 = vld [vmem:[#allocation6 + $0xf98] sm:$0xff]  ;;  %v2166_v33 = vpop.f32.mrf.mxu1 }
 0x165   :  { %1253 = vmatpush.msra.mxu3 %v357_v34  ;;  %1195 = vmatpush.msra.mxu0 %v157_v63  ;;  %v449_v59 = vld [vmem:[#allocation6 + $0x958] sm:$0xff] }
 0x166   :  { %1215 = vmatpush.msra.mxu1 %v221_v35  ;;  %1235 = vmatpush.msra.mxu2 %v285_v36  ;;  %v513_v60 = vld [vmem:[#allocation6 + $0xb58] sm:$0xff]  ;;  %v2168_v36 = vpop.f32.mrf.mxu0 }
 0x167   :  { %1254 = vmatpush.msra.mxu3 %v353_v37  ;;  %1196 = vmatpush.msra.mxu0 %v153_v5  ;;  %v577_v62 = vld [vmem:[#allocation6 + $0xd58] sm:$0xff] }
 0x168   :  { %1216 = vmatpush.msra.mxu1 %v217_v38  ;;  %1236 = vmatpush.msra.mxu2 %v281_v39  ;;  %v645_v0 = vld [vmem:[#allocation6 + $0xf78] sm:$0xff]  ;;  %v2170_v39 = vpop.f32.mrf.mxu2 }
 0x169   :  { %1255 = vmatpush.msra.mxu3 %v349_v40  ;;  %1261 = vmatpush.msrb.mxu0 %v469_v42  ;;  %v445_v1 = vld [vmem:[#allocation6 + $0x938] sm:$0xff] }
 0x16a   :  { %1281 = vmatpush.msrb.mxu1 %v533_v43  ;;  %1301 = vmatpush.msrb.mxu2 %v597_v44  ;;  %v509_v2 = vld [vmem:[#allocation6 + $0xb38] sm:$0xff] }
 0x16b   :  { %1256 = vmatpush.msra.mxu3 %v345_v45  ;;  %1262 = vmatpush.msrb.mxu0 %v465_v19  ;;  %v573_v6 = vld [vmem:[#allocation6 + $0xd38] sm:$0xff] }
 0x16c   :  { %1282 = vmatpush.msrb.mxu1 %v529_v47  ;;  %1302 = vmatpush.msrb.mxu2 %v593_v48  ;;  %v641_v7 = vld [vmem:[#allocation6 + $0xf58] sm:$0xff]  ;;  %v2175_v47 = vpop.f32.mrf.mxu3 }
 0x16d   :  { %1321 = vmatpush.msrb.mxu3 %v661_v49  ;;  %1263 = vmatpush.msrb.mxu0 %v461_v24  ;;  %v441_v8 = vld [vmem:[#allocation6 + $0x918] sm:$0xff]  ;;  %v898_v49 = vpop.f32.mrf.mxu1 }
 0x16e   :  { %1283 = vmatpush.msrb.mxu1 %v525_v25  ;;  %1303 = vmatpush.msrb.mxu2 %v589_v50  ;;  %v505_v9 = vld [vmem:[#allocation6 + $0xb18] sm:$0xff] }
 0x16f   :  { %1322 = vmatpush.msrb.mxu3 %v657_v51  ;;  %1264 = vmatpush.msrb.mxu0 %v457_v52  ;;  %v569_v12 = vld [vmem:[#allocation6 + $0xd18] sm:$0xff]  ;;  %v878_v51 = vpop.f32.mrf.mxu0 }
 0x170   :  { %1284 = vmatpush.msrb.mxu1 %v521_v53  ;;  %1304 = vmatpush.msrb.mxu2 %v585_v30  ;;  %v637_v13 = vld [vmem:[#allocation6 + $0xf38] sm:$0xff]  ;;  %v899_v30 = vadd.f32 %v898_v49, %v878_v51 }
 0x171   :  { %1323 = vmatpush.msrb.mxu3 %v653_v54  ;;  %1265 = vmatpush.msrb.mxu0 %v453_v55  ;;  %v437_v14 = vld [vmem:[#allocation6 + $0x8f8] sm:$0xff] }
 0x172   :  { %1285 = vmatpush.msrb.mxu1 %v517_v56  ;;  %1305 = vmatpush.msrb.mxu2 %v581_v57  ;;  %v501_v16 = vld [vmem:[#allocation6 + $0xaf8] sm:$0xff] }
 0x173   :  { %1324 = vmatpush.msrb.mxu3 %v649_v58  ;;  %1266 = vmatpush.msrb.mxu0 %v449_v59  ;;  %v565_v17 = vld [vmem:[#allocation6 + $0xcf8] sm:$0xff] }
 0x174   :  { %1286 = vmatpush.msrb.mxu1 %v513_v60  ;;  %1306 = vmatpush.msrb.mxu2 %v577_v62  ;;  %v633_v18 = vld [vmem:[#allocation6 + $0xf18] sm:$0xff]  ;;  %v938_v62 = vpop.f32.mrf.mxu3 }
 0x175   :  { %1325 = vmatpush.msrb.mxu3 %v645_v0  ;;  %1267 = vmatpush.msrb.mxu0 %v445_v1  ;;  %v433_v21 = vld [vmem:[#allocation6 + $0x8d8] sm:$0xff]  ;;  %v1438_v0 = vld [vmem:[#allocation9 + $0x1e0] sm:$0xff] }
 0x176   :  { %1287 = vmatpush.msrb.mxu1 %v509_v2  ;;  %1307 = vmatpush.msrb.mxu2 %v573_v6  ;;  %v497_v23 = vld [vmem:[#allocation6 + $0xad8] sm:$0xff] }
 0x177   :  { %1326 = vmatpush.msrb.mxu3 %v641_v7  ;;  %1268 = vmatpush.msrb.mxu0 %v441_v8  ;;  %v561_v27 = vld [vmem:[#allocation6 + $0xcd8] sm:$0xff]  ;;  %v958_v8 = vpop.f32.mrf.mxu0 }
 0x178   :  { %1288 = vmatpush.msrb.mxu1 %v505_v9  ;;  %1308 = vmatpush.msrb.mxu2 %v569_v12  ;;  %v629_v28 = vld [vmem:[#allocation6 + $0xef8] sm:$0xff]  ;;  %v1434_v9 = vld [vmem:[#allocation9 + $0x1c0] sm:$0xff] }
 0x179   :  { %1327 = vmatpush.msrb.mxu3 %v637_v13  ;;  %1269 = vmatpush.msrb.mxu0 %v437_v14  ;;  %v429_v31 = vld [vmem:[#allocation6 + $0x8b8] sm:$0xff] }
 0x17a   :  { %1289 = vmatpush.msrb.mxu1 %v501_v16  ;;  %1309 = vmatpush.msrb.mxu2 %v565_v17  ;;  %v493_v32 = vld [vmem:[#allocation6 + $0xab8] sm:$0xff]  ;;  %v978_v16 = vpop.f32.mrf.mxu1  ;;  %v1398_v17 = vld [vmem:[#allocation9 + $0xa0] sm:$0xff] }
 0x17b   :  { %1328 = vmatpush.msrb.mxu3 %v633_v18  ;;  %1270 = vmatpush.msrb.mxu0 %v433_v21  ;;  %v557_v34 = vld [vmem:[#allocation6 + $0xcb8] sm:$0xff]  ;;  %v1430_v18 = vld [vmem:[#allocation9 + $0x1a0] sm:$0xff] }
 0x17c   :  { %1290 = vmatpush.msrb.mxu1 %v497_v23  ;;  %v625_v63 = vld [vmem:[#allocation6 + $0xed8] sm:$0xff]  ;;  %1310 = vmatpush.msrb.mxu2 %v561_v27 }
 0x17d   :  { %1329 = vmatpush.msrb.mxu3 %v629_v28  ;;  %v425_v35 = vld [vmem:[#allocation6 + $0x898] sm:$0xff]  ;;  %1271 = vmatpush.msrb.mxu0 %v429_v31  ;;  %v1462_v31 = vld [vmem:[#allocation9 + $0x2a0] sm:$0xff] }
 0x17e   :  { %1291 = vmatpush.msrb.mxu1 %v493_v32  ;;  %v489_v37 = vld [vmem:[#allocation6 + $0xa98] sm:$0xff]  ;;  %1311 = vmatpush.msrb.mxu2 %v557_v34  ;;  %v1394_v34 = vld [vmem:[#allocation9 + $0x80] sm:$0xff] }
 0x17f   :  { %v553_v5 = vld [vmem:[#allocation6 + $0xc98] sm:$0xff]  ;;  %1330 = vmatpush.msrb.mxu3 %v625_v63  ;;  %1237 = vmatmul.f32.vlgmr.msra.gmra.mxu2 %v2134_v15  ;;  %v1426_v63 = vld [vmem:[#allocation9 + $0x180] sm:$0xff] }
 0x180   :  { %v621_v38 = vld [vmem:[#allocation6 + $0xeb8] sm:$0xff]  ;;  %1272 = vmatpush.msrb.mxu0 %v425_v35  ;;  %1292 = vmatpush.msrb.mxu1 %v489_v37 }
 0x181   :  { %v421_v40 = vld [vmem:[#allocation6 + $0x878] sm:$0xff]  ;;  %1312 = vmatpush.msrb.mxu2 %v553_v5  ;;  %1331 = vmatpush.msrb.mxu3 %v621_v38 }
 0x182   :  { %v485_v42 = vld [vmem:[#allocation6 + $0xa78] sm:$0xff]  ;;  %1197 = vmatmul.f32.vlgmr.msra.gmra.mxu0 %v2137_v20  ;;  %1257 = vmatmul.f32.vlgmr.msra.gmra.mxu3 %v2140_v22  ;;  %v739_v20 = vadd.f32 %v2158_v61, %v2160_v3  ;;  %v1406_v61 = vld [vmem:[#allocation9 + $0xe0] sm:$0xff] }
 0x183   :  { %v549_v43 = vld [vmem:[#allocation6 + $0xc78] sm:$0xff]  ;;  %1273 = vmatpush.msrb.mxu0 %v421_v40  ;;  %1293 = vmatpush.msrb.mxu1 %v485_v42  ;;  %v1458_v40 = vld [vmem:[#allocation9 + $0x280] sm:$0xff]  ;;  %v1018_v42 = vpop.f32.mrf.mxu3 }
 0x184   :  { %v617_v44 = vld [vmem:[#allocation6 + $0xe98] sm:$0xff]  ;;  %1313 = vmatpush.msrb.mxu2 %v549_v43  ;;  %1217 = vmatmul.f32.vlgmr.msra.gmra.mxu1 %v2143_v29  ;;  %v918_v29 = vpop.f32.mrf.mxu2  ;;  %v759_v56 = vadd.f32 %v2162_v11, %v739_v20  ;;  %v1390_v43 = vld [vmem:[#allocation9 + $0x60] sm:$0xff] }
 0x185   :  { %v417_v45 = vld [vmem:[#allocation6 + $0x858] sm:$0xff]  ;;  %1332 = vmatpush.msrb.mxu3 %v617_v44  ;;  %v919_v60 = vadd.f32 %v918_v29, %v899_v30  ;;  %v1422_v44 = vld [vmem:[#allocation9 + $0x160] sm:$0xff] }
 0x186   :  { %v481_v19 = vld [vmem:[#allocation6 + $0xa58] sm:$0xff]  ;;  %1274 = vmatpush.msrb.mxu0 %v417_v45  ;;  %v779_v2 = vadd.f32 %v2164_v26, %v759_v56  ;;  %v1386_v20 = vld [vmem:[#allocation9 + $0x40] sm:$0xff] }
 0x187   :  { %v545_v15 = vld [vmem:[#allocation6 + $0xc58] sm:$0xff]  ;;  %1294 = vmatpush.msrb.mxu1 %v481_v19  ;;  %v939_v7 = vadd.f32 %v938_v62, %v919_v60  ;;  %v1450_v30 = vld [vmem:[#allocation9 + $0x240] sm:$0xff] }
 0x188   :  { %v613_v48 = vld [vmem:[#allocation6 + $0xe78] sm:$0xff]  ;;  %1314 = vmatpush.msrb.mxu2 %v545_v15  ;;  %v799_v12 = vadd.f32 %v2168_v36, %v779_v2  ;;  %v1446_v60 = vld [vmem:[#allocation9 + $0x220] sm:$0xff] }
 0x189   :  { %v413_v24 = vld [vmem:[#allocation6 + $0x838] sm:$0xff]  ;;  %1333 = vmatpush.msrb.mxu3 %v613_v48  ;;  %v1410_v62 = vld [vmem:[#allocation9 + $0x100] sm:$0xff] }
 0x18a   :  { %v477_v25 = vld [vmem:[#allocation6 + $0xa38] sm:$0xff]  ;;  %1275 = vmatpush.msrb.mxu0 %v413_v24  ;;  %v819_v23 = vadd.f32 %v2166_v33, %v799_v12  ;;  %v2189_v33 = vld [vmem:[#allocation8] sm:$0xf]  ;;  %v1403_v12 = vld [vmem:[#allocation9 + $0xc8] sm:$0xff] }
 0x18b   :  { %v541_v22 = vld [vmem:[#allocation6 + $0xc38] sm:$0xff]  ;;  %1295 = vmatpush.msrb.mxu1 %v477_v25  ;;  %v1359_v49 = vperm.slane %v2189_v33, 1  ;;  %v1454_v25 = vld [vmem:[#allocation9 + $0x260] sm:$0xff] }
 0x18c   :  { %v609_v50 = vld [vmem:[#allocation6 + $0xe58] sm:$0xff]  ;;  %1315 = vmatpush.msrb.mxu2 %v541_v22  ;;  %v998_v32 = vpop.f32.mrf.mxu2  ;;  %v839_v36 = vadd.f32 %v2170_v39, %v819_v23  ;;  %v1358_v39 = vperm.slane %v2189_v33, 0  ;;  %v1418_v22 = vld [vmem:[#allocation9 + $0x140] sm:$0xff] }
 0x18d   :  { %v409_v52 = vld [vmem:[#allocation6 + $0x818] sm:$0xff]  ;;  %1334 = vmatpush.msrb.mxu3 %v609_v50 }
 0x18e   :  { %v473_v53 = vld [vmem:[#allocation6 + $0xa18] sm:$0xff]  ;;  %1276 = vmatpush.msrb.mxu0 %v409_v52  ;;  %v859_v19 = vadd.f32 %v2175_v47, %v839_v36 }
 0x18f   :  { %v537_v54 = vld [vmem:[#allocation6 + $0xc18] sm:$0xff]  ;;  %1296 = vmatpush.msrb.mxu1 %v473_v53  ;;  %1277 = vmatmul.f32.vlgmr.msrb.gmra.mxu0 %v2149_v10  ;;  %v1470_v10 = vld [vmem:[#allocation9 + $0x2e0] sm:$0xff] }
 0x190   :  { %v605_v55 = vld [vmem:[#allocation6 + $0xe38] sm:$0xff]  ;;  %1316 = vmatpush.msrb.mxu2 %v537_v54  ;;  %1297 = vmatmul.f32.vlgmr.msrb.gmra.mxu1 %v2155_v46  ;;  %v959_v46 = vadd.f32 %v958_v8, %v939_v7  ;;  %v1366_v51 = vadd.f32 %v1358_v39, %v859_v19  ;;  %v1382_v54 = vld [vmem:[#allocation9 + $0x20] sm:$0xff]  ;;  %v1407_v7 = vld [vmem:[#allocation9 + $0xe8] sm:$0xff] }
 0x191   :  { %v1408_v57 = vld [vmem:[#allocation9 + $0xf0] sm:$0xff]  ;;  %1335 = vmatpush.msrb.mxu3 %v605_v55  ;;  %1317 = vmatmul.f32.vlgmr.msrb.gmra.mxu2 %v2146_v4  ;;  %v1402_v4 = vld [vmem:[#allocation9 + $0xc0] sm:$0xff]  ;;  %v1405_v8 = vld [vmem:[#allocation9 + $0xd8] sm:$0xff] }
 0x192   :  { %v1440_v58 = vld [vmem:[#allocation9 + $0x1f0] sm:$0xff]  ;;  %1512 = vmatpush.msra.mxu0 %v1408_v57  ;;  %v979_v27 = vadd.f32 %v978_v16, %v959_v46  ;;  %v1414_v55 = vld [vmem:[#allocation9 + $0x120] sm:$0xff]  ;;  %v1370_v56 = vmul.f32 0.2, %v1366_v51  ;;  %v1435_v46 = vld [vmem:[#allocation9 + $0x1c8] sm:$0xff] }
 0x193   :  { %v601_v59 = vld [vmem:[#allocation6 + $0xe18] sm:$0xff]  ;;  %1532 = vmatpush.msra.mxu1 %v1440_v58  ;;  %v1387_v39 = vld [vmem:[#allocation9 + $0x48] sm:$0xff] }
 0x194   :  { %v1472_v1 = vld [vmem:[#allocation9 + $0x2f0] sm:$0xff]  ;;  %1336 = vmatpush.msrb.mxu3 %v601_v59  ;;  %1513 = vmatpush.msra.mxu0 %v1406_v61  ;;  %v999_v5 = vadd.f32 %v998_v32, %v979_v27  ;;  %v1378_v61 = vld [vmem:[#allocation9] sm:$0xff]  ;;  %v1433_v16 = vld [vmem:[#allocation9 + $0x1b8] sm:$0xff] }
 0x195   :  { %v1404_v3 = vld [vmem:[#allocation9 + $0xd0] sm:$0xff]  ;;  %1337 = vmatmul.f32.vlgmr.msrb.gmra.mxu3 %v2152_v41  ;;  %1533 = vmatpush.msra.mxu1 %v1438_v0  ;;  %v1466_v41 = vld [vmem:[#allocation9 + $0x2c0] sm:$0xff]  ;;  %v2194_v0 = vmax.f32 %v1366_v51, %v1370_v56  ;;  %v1397_v23 = vld [vmem:[#allocation9 + $0x98] sm:$0xff] }
 0x196   :  { %v1436_v6 = vld [vmem:[#allocation9 + $0x1d0] sm:$0xff]  ;;  %1552 = vmatpush.msra.mxu2 %v1472_v1  ;;  %1514 = vmatpush.msra.mxu0 %v1404_v3  ;;  %v1019_v48 = vadd.f32 %v1018_v42, %v999_v5  ;;  %v1409_v1 = vld [vmem:[#allocation9 + $0xf8] sm:$0xff]  ;;  %v1459_v5 = vld [vmem:[#allocation9 + $0x288] sm:$0xff] }
 0x197   :  { %v1468_v11 = vld [vmem:[#allocation9 + $0x2d0] sm:$0xff]  ;;  %1534 = vmatpush.msra.mxu1 %v1436_v6  ;;  %v1441_v3 = vld [vmem:[#allocation9 + $0x1f8] sm:$0xff]  ;;  %v1494_v56 = vld [vmem:[#allocation9 + $0x3a0] sm:$0xff] }
 0x198   :  { %v1400_v13 = vld [vmem:[#allocation9 + $0xb0] sm:$0xff]  ;;  %1553 = vmatpush.msra.mxu2 %v1470_v10  ;;  %1515 = vmatpush.msra.mxu0 %v1402_v4  ;;  %v1367_v52 = vadd.f32 %v1359_v49, %v1019_v48  ;;  %v1439_v10 = vld [vmem:[#allocation9 + $0x1e8] sm:$0xff]  ;;  %v1442_v4 = vld [vmem:[#allocation9 + $0x200] sm:$0xff] }
 0x199   :  { %v1432_v14 = vld [vmem:[#allocation9 + $0x1b0] sm:$0xff]  ;;  %1535 = vmatpush.msra.mxu1 %v1434_v9  ;;  %v1473_v9 = vld [vmem:[#allocation9 + $0x2f8] sm:$0xff]  ;;  %v1455_v48 = vld [vmem:[#allocation9 + $0x268] sm:$0xff] }
 0x19a   :  { %1554 = vmatpush.msra.mxu2 %v1468_v11  ;;  %1516 = vmatpush.msra.mxu0 %v1400_v13  ;;  %v1464_v21 = vld [vmem:[#allocation9 + $0x2b0] sm:$0xff]  ;;  %v1371_v58 = vmul.f32 0.2, %v1367_v52  ;;  %v1437_v11 = vld [vmem:[#allocation9 + $0x1d8] sm:$0xff]  ;;  %v1471_v13 = vld [vmem:[#allocation9 + $0x2e8] sm:$0xff] }
 0x19b   :  { %1536 = vmatpush.msra.mxu1 %v1432_v14  ;;  %v1396_v26 = vld [vmem:[#allocation9 + $0x90] sm:$0xff]  ;;  %v1401_v14 = vld [vmem:[#allocation9 + $0xb8] sm:$0xff]  ;;  %v1419_v49 = vld [vmem:[#allocation9 + $0x148] sm:$0xff] }
 0x19c   :  { %1555 = vmatpush.msra.mxu2 %v1466_v41  ;;  %1517 = vmatpush.msra.mxu0 %v1398_v17  ;;  %v1428_v28 = vld [vmem:[#allocation9 + $0x190] sm:$0xff]  ;;  %v2196_v2 = vmax.f32 %v1367_v52, %v1371_v58  ;;  %v1469_v41 = vld [vmem:[#allocation9 + $0x2d8] sm:$0xff]  ;;  %v1399_v17 = vld [vmem:[#allocation9 + $0xa8] sm:$0xff] }
 0x19d   :  { %1537 = vmatpush.msra.mxu1 %v1430_v18  ;;  %v1460_v35 = vld [vmem:[#allocation9 + $0x290] sm:$0xff]  ;;  %v1467_v18 = vld [vmem:[#allocation9 + $0x2c8] sm:$0xff]  ;;  %v1429_v27 = vld [vmem:[#allocation9 + $0x198] sm:$0xff] }
 0x19e   :  { %1556 = vmatpush.msra.mxu2 %v1464_v21  ;;  %1518 = vmatpush.msra.mxu0 %v1396_v26  ;;  %v1392_v37 = vld [vmem:[#allocation9 + $0x70] sm:$0xff]  ;;  %v1431_v21 = vld [vmem:[#allocation9 + $0x1a8] sm:$0xff]  ;;  %v1465_v26 = vld [vmem:[#allocation9 + $0x2b8] sm:$0xff] }
 0x19f   :  { %1538 = vmatpush.msra.mxu1 %v1428_v28  ;;  %v1424_v38 = vld [vmem:[#allocation9 + $0x170] sm:$0xff]  ;;  %v1395_v28 = vld [vmem:[#allocation9 + $0x88] sm:$0xff]  ;;  %v1425_v36 = vld [vmem:[#allocation9 + $0x178] sm:$0xff] }
 0x1a0   :  { %1557 = vmatpush.msra.mxu2 %v1462_v31  ;;  %1519 = vmatpush.msra.mxu0 %v1394_v34  ;;  %v1456_v45 = vld [vmem:[#allocation9 + $0x270] sm:$0xff]  ;;  %v1463_v31 = vld [vmem:[#allocation9 + $0x2a8] sm:$0xff]  ;;  %v1389_v42 = vld [vmem:[#allocation9 + $0x58] sm:$0xff] }
 0x1a1   :  { %1539 = vmatpush.msra.mxu1 %v1426_v63  ;;  %v1388_v15 = vld [vmem:[#allocation9 + $0x50] sm:$0xff]  ;;  %v1427_v34 = vld [vmem:[#allocation9 + $0x188] sm:$0xff]  ;;  %v1393_v63 = vld [vmem:[#allocation9 + $0x78] sm:$0xff] }
 0x1a2   :  { %1558 = vmatpush.msra.mxu2 %v1460_v35  ;;  %1520 = vmatpush.msra.mxu0 %v1392_v37  ;;  %v1420_v24 = vld [vmem:[#allocation9 + $0x150] sm:$0xff]  ;;  %v1461_v35 = vld [vmem:[#allocation9 + $0x298] sm:$0xff]  ;;  %v1391_v37 = vld [vmem:[#allocation9 + $0x68] sm:$0xff] }
 0x1a3   :  { %1540 = vmatpush.msra.mxu1 %v1424_v38  ;;  %v1452_v50 = vld [vmem:[#allocation9 + $0x250] sm:$0xff]  ;;  %v1423_v38 = vld [vmem:[#allocation9 + $0x168] sm:$0xff]  ;;  %v1417_v51 = vld [vmem:[#allocation9 + $0x138] sm:$0xff] }
 0x1a4   :  { %1559 = vmatpush.msra.mxu2 %v1458_v40  ;;  %1521 = vmatpush.msra.mxu0 %v1390_v43  ;;  %v1384_v47 = vld [vmem:[#allocation9 + $0x30] sm:$0xff]  ;;  %v1038_v40 = vpop.f32.mrf.mxu0  ;;  %v1457_v43 = vld [vmem:[#allocation9 + $0x278] sm:$0xff] }
 0x1a5   :  { %1541 = vmatpush.msra.mxu1 %v1422_v44  ;;  %v1416_v53 = vld [vmem:[#allocation9 + $0x130] sm:$0xff]  ;;  %v1421_v44 = vld [vmem:[#allocation9 + $0x158] sm:$0xff] }
 0x1a6   :  { %1560 = vmatpush.msra.mxu2 %v1456_v45  ;;  %1522 = vmatpush.msra.mxu0 %v1388_v15  ;;  %v1448_v29 = vld [vmem:[#allocation9 + $0x230] sm:$0xff]  ;;  %v1502_v45 = vld [vmem:[#allocation9 + $0x3e0] sm:$0xff]  ;;  %v1058_v15 = vpop.f32.mrf.mxu1  ;;  %v1449_v58 = vld [vmem:[#allocation9 + $0x238] sm:$0xff] }
 0x1a7   :  { %1542 = vmatpush.msra.mxu1 %v1420_v24  ;;  %v1380_v57 = vld [vmem:[#allocation9 + $0x10] sm:$0xff]  ;;  %v1059_v24 = vadd.f32 %v1058_v15, %v1038_v40  ;;  %v1487_v40 = vld [vmem:[#allocation9 + $0x368] sm:$0xff] }
 0x1a8   :  { %1561 = vmatpush.msra.mxu2 %v1454_v25  ;;  %1523 = vmatpush.msra.mxu0 %v1386_v20  ;;  %v1412_v59 = vld [vmem:[#allocation9 + $0x110] sm:$0xff]  ;;  %v1078_v25 = vpop.f32.mrf.mxu2  ;;  %v1498_v20 = vld [vmem:[#allocation9 + $0x3c0] sm:$0xff]  ;;  %v1475_v15 = vld [vmem:[#allocation9 + $0x308] sm:$0xff] }
 0x1a9   :  { %1543 = vmatpush.msra.mxu1 %v1418_v22  ;;  %v1444_v6 = vld [vmem:[#allocation9 + $0x210] sm:$0xff]  ;;  %v1385_v22 = vld [vmem:[#allocation9 + $0x38] sm:$0xff] }
 0x1aa   :  { %1562 = vmatpush.msra.mxu2 %v1452_v50  ;;  %1524 = vmatpush.msra.mxu0 %v1384_v47  ;;  %v1504_v32 = vld [vmem:[#allocation9 + $0x3f0] sm:$0xff]  ;;  %v1453_v50 = vld [vmem:[#allocation9 + $0x258] sm:$0xff]  ;;  %v1079_v47 = vadd.f32 %v1078_v25, %v1059_v24 }
 0x1ab   :  { %1544 = vmatpush.msra.mxu1 %v1416_v53  ;;  %1572 = vmatpush.msra.mxu3 %v1504_v32  ;;  %v1500_v19 = vld [vmem:[#allocation9 + $0x3d0] sm:$0xff]  ;;  %v1383_v53 = vld [vmem:[#allocation9 + $0x28] sm:$0xff] }
 0x1ac   :  { %1563 = vmatpush.msra.mxu2 %v1450_v30  ;;  %1525 = vmatpush.msra.mxu0 %v1382_v54  ;;  %v1496_v52 = vld [vmem:[#allocation9 + $0x3b0] sm:$0xff]  ;;  %v1451_v54 = vld [vmem:[#allocation9 + $0x248] sm:$0xff] }
 0x1ad   :  { %1545 = vmatpush.msra.mxu1 %v1414_v55  ;;  %1573 = vmatpush.msra.mxu3 %v1502_v45  ;;  %v1415_v55 = vld [vmem:[#allocation9 + $0x128] sm:$0xff] }
 0x1ae   :  { %1564 = vmatpush.msra.mxu2 %v1448_v29  ;;  %1526 = vmatpush.msra.mxu0 %v1380_v57  ;;  %v1381_v57 = vld [vmem:[#allocation9 + $0x18] sm:$0xff]  ;;  %v1503_v32 = vld [vmem:[#allocation9 + $0x3e8] sm:$0xff] }
 0x1af   :  { %1546 = vmatpush.msra.mxu1 %v1412_v59  ;;  %1574 = vmatpush.msra.mxu3 %v1500_v19  ;;  %v1413_v59 = vld [vmem:[#allocation9 + $0x118] sm:$0xff]  ;;  %v1479_v45 = vld [vmem:[#allocation9 + $0x328] sm:$0xff] }
 0x1b0   :  { %1565 = vmatpush.msra.mxu2 %v1446_v60  ;;  %1527 = vmatpush.msra.mxu0 %v1378_v61  ;;  %v1492_v61 = vld [vmem:[#allocation9 + $0x390] sm:$0xff] }
 0x1b1   :  { %1547 = vmatpush.msra.mxu1 %v1410_v62  ;;  %1528 = vmatmul.f32.vlgmr.msra.gmra.mxu0 %v2194_v0  ;;  %v1379_v62 = vld [vmem:[#allocation9 + $0x8] sm:$0xff] }
 0x1b2   :  { %1548 = vmatmul.f32.vlgmr.msra.gmra.mxu1 %v2196_v2  ;;  %1592 = vmatpush.msrb.mxu0 %v1409_v1 }
 0x1b3   :  { %1612 = vmatpush.msrb.mxu1 %v1441_v3  ;;  %1566 = vmatpush.msra.mxu2 %v1444_v6  ;;  %v1447_v3 = vld [vmem:[#allocation9 + $0x228] sm:$0xff] }
 0x1b4   :  { %1593 = vmatpush.msrb.mxu0 %v1407_v7  ;;  %1575 = vmatpush.msra.mxu3 %v1498_v20  ;;  %v1411_v6 = vld [vmem:[#allocation9 + $0x108] sm:$0xff] }
 0x1b5   :  { %1613 = vmatpush.msrb.mxu1 %v1439_v10  ;;  %1567 = vmatpush.msra.mxu2 %v1442_v4  ;;  %v1445_v10 = vld [vmem:[#allocation9 + $0x218] sm:$0xff] }
 0x1b6   :  { %1594 = vmatpush.msrb.mxu0 %v1405_v8  ;;  %1576 = vmatpush.msra.mxu3 %v1496_v52 }
 0x1b7   :  { %1632 = vmatpush.msrb.mxu2 %v1473_v9  ;;  %1614 = vmatpush.msrb.mxu1 %v1437_v11  ;;  %v1490_v9 = vld [vmem:[#allocation9 + $0x380] sm:$0xff]  ;;  %v1443_v11 = vld [vmem:[#allocation9 + $0x208] sm:$0xff] }
 0x1b8   :  { %1595 = vmatpush.msrb.mxu0 %v1403_v12  ;;  %1577 = vmatpush.msra.mxu3 %v1494_v56 }
 0x1b9   :  { %1633 = vmatpush.msrb.mxu2 %v1471_v13  ;;  %1615 = vmatpush.msrb.mxu1 %v1435_v46  ;;  %v1360_v13 = vperm.slane %v2189_v33, 2  ;;  %v1488_v46 = vld [vmem:[#allocation9 + $0x370] sm:$0xff] }
 0x1ba   :  { %1596 = vmatpush.msrb.mxu0 %v1401_v14  ;;  %1578 = vmatpush.msra.mxu3 %v1492_v61  ;;  %v1707_v61 = vld [vmem:[#allocation12 + $0xf8] sm:$0xff] }
 0x1bb   :  { %1634 = vmatpush.msrb.mxu2 %v1469_v41  ;;  %1616 = vmatpush.msrb.mxu1 %v1433_v16  ;;  %v1486_v16 = vld [vmem:[#allocation9 + $0x360] sm:$0xff] }
 0x1bc   :  { %1597 = vmatpush.msrb.mxu0 %v1399_v17  ;;  %1579 = vmatpush.msra.mxu3 %v1490_v9  ;;  %v1685_v9 = vld [vmem:[#allocation12 + $0x48] sm:$0xff] }
 0x1bd   :  { %1635 = vmatpush.msrb.mxu2 %v1467_v18  ;;  %1617 = vmatpush.msrb.mxu1 %v1431_v21  ;;  %v1484_v18 = vld [vmem:[#allocation9 + $0x350] sm:$0xff] }
 0x1be   :  { %1598 = vmatpush.msrb.mxu0 %v1397_v23  ;;  %1580 = vmatpush.msra.mxu3 %v1488_v46  ;;  %v1482_v23 = vld [vmem:[#allocation9 + $0x340] sm:$0xff] }
 0x1bf   :  { %1636 = vmatpush.msrb.mxu2 %v1465_v26  ;;  %1618 = vmatpush.msrb.mxu1 %v1429_v27  ;;  %v1480_v26 = vld [vmem:[#allocation9 + $0x330] sm:$0xff]  ;;  %v1683_v46 = vld [vmem:[#allocation12 + $0x38] sm:$0xff] }
 0x1c0   :  { %1599 = vmatpush.msrb.mxu0 %v1395_v28  ;;  %1581 = vmatpush.msra.mxu3 %v1486_v16  ;;  %v1476_v27 = vld [vmem:[#allocation9 + $0x310] sm:$0xff]  ;;  %v1474_v28 = vld [vmem:[#allocation9 + $0x300] sm:$0xff] }
 0x1c1   :  { %1637 = vmatpush.msrb.mxu2 %v1463_v31  ;;  %1619 = vmatpush.msrb.mxu1 %v1427_v34  ;;  %v1505_v31 = vld [vmem:[#allocation9 + $0x3f8] sm:$0xff]  ;;  %v1680_v16 = vld [vmem:[#allocation12 + $0x20] sm:$0xff] }
 0x1c2   :  { %1600 = vmatpush.msrb.mxu0 %v1393_v63  ;;  %1582 = vmatpush.msra.mxu3 %v1484_v18  ;;  %v1501_v34 = vld [vmem:[#allocation9 + $0x3d8] sm:$0xff]  ;;  %v1499_v63 = vld [vmem:[#allocation9 + $0x3c8] sm:$0xff] }
 0x1c3   :  { %1638 = vmatpush.msrb.mxu2 %v1461_v35  ;;  %1620 = vmatpush.msrb.mxu1 %v1425_v36  ;;  %v1098_v30 = vpop.f32.mrf.mxu3  ;;  %v1118_v60 = vpop.f32.mrf.mxu0  ;;  %v1497_v35 = vld [vmem:[#allocation9 + $0x3b8] sm:$0xff]  ;;  %v1495_v36 = vld [vmem:[#allocation9 + $0x3a8] sm:$0xff] }
 0x1c4   :  { %1601 = vmatpush.msrb.mxu0 %v1391_v37  ;;  %v1099_v29 = vadd.f32 %v1098_v30, %v1079_v47  ;;  %1583 = vmatpush.msra.mxu3 %v1482_v23  ;;  %v1493_v37 = vld [vmem:[#allocation9 + $0x398] sm:$0xff] }
 0x1c5   :  { %1639 = vmatpush.msrb.mxu2 %v1459_v5  ;;  %1621 = vmatpush.msrb.mxu1 %v1423_v38  ;;  %v1491_v5 = vld [vmem:[#allocation9 + $0x388] sm:$0xff]  ;;  %v1489_v38 = vld [vmem:[#allocation9 + $0x378] sm:$0xff] }
 0x1c6   :  { %1602 = vmatpush.msrb.mxu0 %v1389_v42  ;;  %v1119_v1 = vadd.f32 %v1118_v60, %v1099_v29  ;;  %1584 = vmatpush.msra.mxu3 %v1480_v26  ;;  %v1485_v42 = vld [vmem:[#allocation9 + $0x358] sm:$0xff]  ;;  %v1697_v26 = vld [vmem:[#allocation12 + $0xa8] sm:$0xff] }
 0x1c7   :  { %1640 = vmatpush.msrb.mxu2 %v1457_v43  ;;  %1622 = vmatpush.msrb.mxu1 %v1421_v44  ;;  %v1483_v43 = vld [vmem:[#allocation9 + $0x348] sm:$0xff]  ;;  %v1481_v44 = vld [vmem:[#allocation9 + $0x338] sm:$0xff] }
 0x1c8   :  { %1603 = vmatpush.msrb.mxu0 %v1387_v39  ;;  %v1477_v39 = vld [vmem:[#allocation9 + $0x318] sm:$0xff] }
 0x1c9   :  { %1641 = vmatpush.msrb.mxu2 %v1455_v48  ;;  %1623 = vmatpush.msrb.mxu1 %v1419_v49  ;;  %v1690_v60 = vld [vmem:[#allocation12 + $0x70] sm:$0xff]  ;;  %v1699_v18 = vld [vmem:[#allocation12 + $0xb8] sm:$0xff] }
 0x1ca   :  { %1604 = vmatpush.msrb.mxu0 %v1385_v22  ;;  %v1138_v7 = vpop.f32.mrf.mxu1  ;;  %v1698_v23 = vld [vmem:[#allocation12 + $0xb0] sm:$0xff] }
 0x1cb   :  { %1642 = vmatpush.msrb.mxu2 %v1453_v50  ;;  %1624 = vmatpush.msrb.mxu1 %v1417_v51  ;;  %v1139_v4 = vadd.f32 %v1138_v7, %v1119_v1  ;;  %v1158_v8 = vpop.f32.mrf.mxu2  ;;  %v1706_v1 = vld [vmem:[#allocation12 + $0xf0] sm:$0xff]  ;;  %v1687_v7 = vld [vmem:[#allocation12 + $0x58] sm:$0xff] }
 0x1cc   :  { %1605 = vmatpush.msrb.mxu0 %v1383_v53 }
 0x1cd   :  { %1643 = vmatpush.msrb.mxu2 %v1451_v54  ;;  %1625 = vmatpush.msrb.mxu1 %v1415_v55  ;;  %v1159_v12 = vadd.f32 %v1158_v8, %v1139_v4  ;;  %v1361_v54 = vperm.slane %v2189_v33, 3  ;;  %v1704_v33 = vld [vmem:[#allocation12 + $0xe0] sm:$0xff]  ;;  %v1686_v4 = vld [vmem:[#allocation12 + $0x50] sm:$0xff] }
 0x1ce   :  { %1606 = vmatpush.msrb.mxu0 %v1381_v57  ;;  %v1178_v14 = vpop.f32.mrf.mxu3  ;;  %v1702_v8 = vld [vmem:[#allocation12 + $0xd0] sm:$0xff] }
 0x1cf   :  { %1644 = vmatpush.msrb.mxu2 %v1449_v58  ;;  %1626 = vmatpush.msrb.mxu1 %v1413_v59  ;;  %v1179_v41 = vadd.f32 %v1178_v14, %v1159_v12  ;;  %v1691_v59 = vld [vmem:[#allocation12 + $0x78] sm:$0xff]  ;;  %v1684_v12 = vld [vmem:[#allocation12 + $0x40] sm:$0xff]  ;;  %v1682_v14 = vld [vmem:[#allocation12 + $0x30] sm:$0xff] }
 0x1d0   :  { %1607 = vmatpush.msrb.mxu0 %v1379_v62  ;;  %v1689_v62 = vld [vmem:[#allocation12 + $0x68] sm:$0xff] }
 0x1d1   :  { %1645 = vmatpush.msrb.mxu2 %v1447_v3  ;;  %1627 = vmatpush.msrb.mxu1 %v1411_v6  ;;  %v1368_v17 = vadd.f32 %v1360_v13, %v1179_v41  ;;  %v1705_v3 = vld [vmem:[#allocation12 + $0xe8] sm:$0xff]  ;;  %v1688_v6 = vld [vmem:[#allocation12 + $0x60] sm:$0xff] }
 0x1d2   :  { %1608 = vmatmul.f32.vlgmr.msrb.gmra.mxu0 %v2194_v0  ;;  %1628 = vmatmul.f32.vlgmr.msrb.gmra.mxu1 %v2196_v2  ;;  %v1478_v2 = vld [vmem:[#allocation9 + $0x320] sm:$0xff]  ;;  %v1681_v41 = vld [vmem:[#allocation12 + $0x28] sm:$0xff] }
 0x1d3   :  { %1646 = vmatpush.msrb.mxu2 %v1445_v10  ;;  %v1372_v21 = vmul.f32 0.2, %v1368_v17  ;;  %1585 = vmatpush.msra.mxu3 %v1478_v2  ;;  %v1703_v10 = vld [vmem:[#allocation12 + $0xd8] sm:$0xff]  ;;  %v1700_v13 = vld [vmem:[#allocation12 + $0xc0] sm:$0xff] }
 0x1d4   :  { %1712 = vmatpush.msra.mxu0 %v1691_v59  ;;  %1732 = vmatpush.msra.mxu1 %v1707_v61  ;;  %v1676_v2 = vld [vmem:[#allocation12] sm:$0xff] }
 0x1d5   :  { %1647 = vmatpush.msrb.mxu2 %v1443_v11  ;;  %v1376_v0 = vmax.f32 %v1368_v17, %v1372_v21  ;;  %1586 = vmatpush.msra.mxu3 %v1476_v27  ;;  %v1701_v11 = vld [vmem:[#allocation12 + $0xc8] sm:$0xff]  ;;  %v1679_v17 = vld [vmem:[#allocation12 + $0x18] sm:$0xff]  ;;  %v1678_v21 = vld [vmem:[#allocation12 + $0x10] sm:$0xff] }
 0x1d6   :  { %1713 = vmatpush.msra.mxu0 %v1690_v60  ;;  %1733 = vmatpush.msra.mxu1 %v1706_v1  ;;  %v1696_v27 = vld [vmem:[#allocation12 + $0xa0] sm:$0xff] }
 0x1d7   :  { %1568 = vmatmul.f32.vlgmr.msra.gmra.mxu2 %v1376_v0  ;;  %1587 = vmatpush.msra.mxu3 %v1474_v28  ;;  %v1695_v28 = vld [vmem:[#allocation12 + $0x98] sm:$0xff] }
 0x1d8   :  { %1714 = vmatpush.msra.mxu0 %v1689_v62  ;;  %1734 = vmatpush.msra.mxu1 %v1705_v3 }
 0x1d9   :  { %1652 = vmatpush.msrb.mxu3 %v1505_v31  ;;  %v1694_v31 = vld [vmem:[#allocation12 + $0x90] sm:$0xff] }
 0x1da   :  { %1715 = vmatpush.msra.mxu0 %v1688_v6  ;;  %1735 = vmatpush.msra.mxu1 %v1704_v33 }
 0x1db   :  { %1653 = vmatpush.msrb.mxu3 %v1503_v32  ;;  %v1693_v32 = vld [vmem:[#allocation12 + $0x88] sm:$0xff] }
 0x1dc   :  { %1716 = vmatpush.msra.mxu0 %v1687_v7  ;;  %1736 = vmatpush.msra.mxu1 %v1703_v10 }
 0x1dd   :  { %1654 = vmatpush.msrb.mxu3 %v1501_v34  ;;  %v1692_v34 = vld [vmem:[#allocation12 + $0x80] sm:$0xff] }
 0x1de   :  { %1717 = vmatpush.msra.mxu0 %v1686_v4  ;;  %1737 = vmatpush.msra.mxu1 %v1702_v8 }
 0x1df   :  { %1648 = vmatmul.f32.vlgmr.msrb.gmra.mxu2 %v1376_v0  ;;  %1655 = vmatpush.msrb.mxu3 %v1499_v63  ;;  %v1677_v0 = vld [vmem:[#allocation12 + $0x8] sm:$0xff]  ;;  %v1506_v63 = vld [vmem:[#allocation11] sm:$0x3] }
 0x1e0   :  { %1718 = vmatpush.msra.mxu0 %v1685_v9  ;;  %1738 = vmatpush.msra.mxu1 %v1701_v11 }
 0x1e1   :  { %1656 = vmatpush.msrb.mxu3 %v1497_v35  ;;  %v1508_v35 = vperm.slane %v1506_v63, 0 }
 0x1e2   :  { %1719 = vmatpush.msra.mxu0 %v1684_v12  ;;  %1739 = vmatpush.msra.mxu1 %v1700_v13 }
 0x1e3   :  { %1657 = vmatpush.msrb.mxu3 %v1495_v36 }
 0x1e4   :  { %1720 = vmatpush.msra.mxu0 %v1683_v46  ;;  %1740 = vmatpush.msra.mxu1 %v1699_v18 }
 0x1e5   :  { %1658 = vmatpush.msrb.mxu3 %v1493_v37 }
 0x1e6   :  { %1721 = vmatpush.msra.mxu0 %v1682_v14  ;;  %1741 = vmatpush.msra.mxu1 %v1698_v23 }
 0x1e7   :  { %1659 = vmatpush.msrb.mxu3 %v1491_v5 }
 0x1e8   :  { %1722 = vmatpush.msra.mxu0 %v1681_v41  ;;  %1742 = vmatpush.msra.mxu1 %v1697_v26 }
 0x1e9   :  { %1660 = vmatpush.msrb.mxu3 %v1489_v38 }
 0x1ea   :  { %1723 = vmatpush.msra.mxu0 %v1680_v16  ;;  %1743 = vmatpush.msra.mxu1 %v1696_v27 }
 0x1eb   :  { %1661 = vmatpush.msrb.mxu3 %v1487_v40 }
 0x1ec   :  { %1724 = vmatpush.msra.mxu0 %v1679_v17  ;;  %1744 = vmatpush.msra.mxu1 %v1695_v28 }
 0x1ed   :  { %1662 = vmatpush.msrb.mxu3 %v1485_v42  ;;  %v1509_v42 = vperm.slane %v1506_v63, 1 }
 0x1ee   :  { %1725 = vmatpush.msra.mxu0 %v1678_v21  ;;  %1745 = vmatpush.msra.mxu1 %v1694_v31 }
 0x1ef   :  { %1663 = vmatpush.msrb.mxu3 %v1483_v43 }
 0x1f0   :  { %1726 = vmatpush.msra.mxu0 %v1677_v0  ;;  %1746 = vmatpush.msra.mxu1 %v1693_v32 }
 0x1f1   :  { %1664 = vmatpush.msrb.mxu3 %v1481_v44 }
 0x1f2   :  { %1727 = vmatpush.msra.mxu0 %v1676_v2  ;;  %1747 = vmatpush.msra.mxu1 %v1692_v34 }
 0x1f3   :  { %1665 = vmatpush.msrb.mxu3 %v1479_v45 }
 0x1f5   :  { %1666 = vmatpush.msrb.mxu3 %v1477_v39 }
 0x1f7   :  { %1667 = vmatpush.msrb.mxu3 %v1475_v15 }
 0x1ff   :  { %v1198_v19 = vpop.f32.mrf.mxu0 }
 0x201   :  { %v1218_v48 = vpop.f32.mrf.mxu1 }
 0x202   :  { %v1219_v49 = vadd.f32 %v1218_v48, %v1198_v19  ;;  %v1238_v24 = vpop.f32.mrf.mxu2 }
 0x204   :  { %v1239_v25 = vadd.f32 %v1238_v24, %v1219_v49 }
 0x205   :  { %v1258_v20 = vpop.f32.mrf.mxu3 }
 0x206   :  { %v1259_v22 = vadd.f32 %v1258_v20, %v1239_v25 }
 0x20c   :  { %v1278_v50 = vpop.f32.mrf.mxu0 }
 0x20d   :  { %v1279_v51 = vadd.f32 %v1278_v50, %v1259_v22  ;;  %v1298_v47 = vpop.f32.mrf.mxu1 }
 0x20f   :  { %v1299_v52 = vadd.f32 %v1298_v47, %v1279_v51 }
 0x214   :  { %v1318_v53 = vpop.f32.mrf.mxu2 }
 0x215   :  { %v1319_v30 = vadd.f32 %v1318_v53, %v1299_v52  ;;  %v1810_v52 = vld [vmem:[#allocation14] ss:$0 sm:$0xff] }
 0x218   :  { %v1338_v55 = vpop.f32.mrf.mxu3 }
 0x219   :  { %v1339_v29 = vadd.f32 %v1338_v55, %v1319_v30 }
 0x21b   :  { %v1369_v56 = vadd.f32 %v1361_v54, %v1339_v29 }
 0x21d   :  { %v1373_v57 = vmul.f32 0.2, %v1369_v56 }
 0x21f   :  { %v1377_v58 = vmax.f32 %v1369_v56, %v1373_v57 }
 0x221   :  { %1588 = vmatmul.f32.vlgmr.msra.gmra.mxu3 %v1377_v58 }
 0x229   :  { %1668 = vmatmul.f32.vlgmr.msrb.gmra.mxu3 %v1377_v58 }
 0x22e   :  { %v1529_v36 = vpop.f32.mrf.mxu0 }
 0x22f   :  { %v1530_v37 = vadd.f32 %v1529_v36, %v1508_v35  ;;  %v1549_v38 = vpop.f32.mrf.mxu1 }
 0x231   :  { %v1550_v40 = vadd.f32 %v1549_v38, %v1530_v37 }
 0x24f   :  { %v1609_v43 = vpop.f32.mrf.mxu0  ;;  %v1629_v48 = vpop.f32.mrf.mxu1 }
 0x250   :  { %v1610_v19 = vadd.f32 %v1609_v43, %v1509_v42 }
 0x252   :  { %v1630_v24 = vadd.f32 %v1629_v48, %v1610_v19 }
 0x25a   :  { %v1569_v5 = vpop.f32.mrf.mxu2 }
 0x25b   :  { %v1570_v44 = vadd.f32 %v1569_v5, %v1550_v40 }
 0x262   :  { %v1649_v49 = vpop.f32.mrf.mxu2 }
 0x263   :  { %v1650_v20 = vadd.f32 %v1649_v49, %v1630_v24 }
 0x2a4   :  { %v1589_v45 = vpop.f32.mrf.mxu3 }
 0x2a5   :  { %v1590_v39 = vadd.f32 %v1589_v45, %v1570_v44 }
 0x2a7   :  { %v1672_v15 = vmul.f32 0.2, %v1590_v39 }
 0x2a9   :  { %v1674_v25 = vmax.f32 %v1590_v39, %v1672_v15 }
 0x2ab   :  { %1728 = vmatmul.f32.vlgmr.msra.gmra.mxu0 %v1674_v25 }
 0x2ac   :  { %v1669_v22 = vpop.f32.mrf.mxu3 }
 0x2ad   :  { %v1670_v50 = vadd.f32 %v1669_v22, %v1650_v20 }
 0x2af   :  { %v1673_v51 = vmul.f32 0.2, %v1670_v50 }
 0x2b1   :  { %v1675_v47 = vmax.f32 %v1670_v50, %v1673_v51 }
 0x2b3   :  { %1748 = vmatmul.f32.vlgmr.msra.gmra.mxu1 %v1675_v47 }
 0x328   :  { %v1729_v53 = vpop.f32.mrf.mxu0 }
 0x329   :  { %v1730_v30 = vadd.f32 %v1810_v52, %v1729_v53 }
 0x330   :  { %v1749_v54 = vpop.f32.mrf.mxu1 }
 0x331   :  { %v1750_v55 = vadd.f32 %v1749_v54, %v1730_v30 }
 0x333   :  { %v1794_v29 = vmul.f32 -1.442695, %v1750_v55 }
 0x335   :  { %1811 = vpow2.f32 %v1794_v29 }
 0x33b   :  { %v1812_v56 = vpop.eup %1811 }
 0x33c   :  { %v1755_v57 = vadd.f32 1.0, %v1812_v56 }
 0x33e   :  { %1813 = vrcp.f32 %v1755_v57  ;;  %v1767_v61 = vand.u32 2147483648, %v1755_v57  ;;  %v1765_v1 = vand.u32 2147483647, %v1755_v57  ;;  %vm1761_vm1 = vweird.f32 %v1755_v57 }
 0x340   :  { %v1768_v6 = vor.u32 1.1754944e-38, %v1767_v61  ;;  %vm1766_vm3 = vcmp.eq.f32.partialorder %v1765_v1, 8.507059e+37 }
 0x344   :  { %v1814_v58 = vpop.eup %1813 }
 0x345   :  { %v1757_v59 = vmul.f32 %v1814_v58, %v1755_v57  ;;  %vm1762_vm0 = vweird.f32 %v1814_v58 }
 0x346   :  { %vm1763_vm2 = vmor %vm1761_vm1, %vm1762_vm0 }
 0x347   :  { %v1758_v60 = vsub.f32 1.0, %v1757_v59 }
 0x349   :  { %v1759_v62 = vmul.f32 %v1814_v58, %v1758_v60 }
 0x34b   :  { %v1760_v3 = vadd.f32 %v1814_v58, %v1759_v62 }
 0x34d   :  { %v1764_v33 = vsel %vm1763_vm2, %v1814_v58, %v1760_v3 }
 0x34e   :  { %v1769_v7 = vsel %vm1766_vm3, %v1768_v6, %v1764_v33 }
 0x34f   :  { %1771 = vst [vmem:[#allocation15] sm:$0xff] %v1769_v7 }
 0x350   :  { %1775 = vsyncadd [#allocation5], 96  ;;  %s1778_s1 = sshll.u32 %s2216_s7, 4  ;;  %s2038_s15 = smov [#allocation15]   ;;  %s1779_s1 = int_to_ptr.hbm [resolvable:$true] %s1778_s1 }
 0x351   :  { %s1776_s16 = sshll.u32 %s2038_s15, 4  ;;  %s2039_s17 = smov 2   ;;  %s1777_s16 = int_to_ptr.vmem [resolvable:$true] %s1776_s16 }
 0x352   :  { %1784 = dma.vmem_to_hbm [thread:$0]  %s1777_s16, 32, %s1779_s1, [#allocation5], %s2027_s30, %s2027_s30, %s2039_s17  }
 0x353   :  { %2023 = dma.done.wait [#allocation5], 128  }
 0x354   :  { %2024 = vsyncadd [#allocation5], 4294967168 }
 0x355   :  { %1789 = vsyncpa [#allocation4], 1 }
 0x356   :  { %1790 = vsyncpa [#allocation7], 1 }
 0x357   :  { %1791 = vsyncpa [#allocation10], 1 }
 0x358   :  { %1792 = vsyncpa [#allocation13], 1 }
 0x359   :  { %1793 = vsyncpa [#allocation5], 1 }

// kernel: tpu_custom_call.1
= control target key start
LH: loop header
LB: loop body
LE: loop exit
PB: predicated region body
PF: predicated region fallthrough
CT: control target
= control target key end

     0   :  { %12 = vsyncpa [#allocation4], 0  ;;  %s2209_s0 = inlined_call_operand.hbm [shape: f32[2,1024], index: 0, kind: input, shape index: {}]   ;;  %s2210_s1 = inlined_call_operand.hbm [shape: f32[1024,512], index: 1, kind: input, shape index: {}]   ;;  %s2211_s2 = inlined_call_operand.hbm [shape: f32[1,512], index: 2, kind: input, shape index: {}]   ;;  %s2212_s3 = inlined_call_operand.hbm [shape: f32[512,256], index: 3, kind: input, shape index: {}]   ;;  %s2213_s4 = inlined_call_operand.hbm [shape: f32[1,256], index: 4, kind: input, shape index: {}]   ;;  %s2214_s5 = inlined_call_operand.hbm [shape: f32[256,128], index: 5, kind: input, shape index: {}]   ;;  %s2215_s6 = inlined_call_operand.hbm [shape: f32[1,128], index: 6, kind: input, shape index: {}]   ;;  %s2216_s7 = inlined_call_operand.hbm [shape: f32[2,128], index: 7, kind: output, shape index: {}]  }
   0x1   :  { %13 = vsyncpa [#allocation7], 0 }
   0x2   :  { %14 = vsyncpa [#allocation10], 0 }
   0x3   :  { %15 = vsyncpa [#allocation13], 0 }
   0x4   :  { %16 = vsyncpa [#allocation5], 0  ;;  %s34_s26 = sshll.u32 %s2210_s1, 4  ;;  %s35_s26 = int_to_ptr.hbm [resolvable:$true] %s34_s26 }
   0x5   :  { %20 = vsyncadd [#allocation4], 768  ;;  %s2025_s27 = smov [#allocation6]   ;;  %s2026_s29 = smov 512  }
   0x6   :  { %s36_s28 = sshll.u32 %s2025_s27, 4  ;;  %s2027_s30 = smov 32   ;;  %s37_s28 = int_to_ptr.vmem [resolvable:$true] %s36_s28 }
   0x7   :  { %42 = dma.hbm_to_vmem [thread:$0]  %s35_s26, 65536, %s37_s28, [#allocation7], %s2026_s29, %s2026_s29, %s2027_s30  }
   0x8   :  { %s58_s10 = sshll.u32 %s2212_s3, 4  ;;  %s2028_s11 = smov [#allocation9]   ;;  %s59_s10 = int_to_ptr.hbm [resolvable:$true] %s58_s10 }
   0x9   :  { %s60_s12 = sshll.u32 %s2028_s11, 4  ;;  %s82_s1 = sshll.u32 %s2214_s5, 4  ;;  %s61_s12 = int_to_ptr.vmem [resolvable:$true] %s60_s12  ;;  %s83_s1 = int_to_ptr.hbm [resolvable:$true] %s82_s1 }
   0xa   :  { %s2029_s15 = smov 256   ;;  %s2030_s16 = smov 16  }
   0xb   :  { %66 = dma.hbm_to_vmem [thread:$0]  %s59_s10, 16384, %s61_s12, [#allocation10], %s2029_s15, %s2029_s15, %s2030_s16  }
   0xc   :  { %s2031_s17 = smov [#allocation12]   ;;  %s21_s21 = sshll.u32 %s2209_s0, 4  ;;  %s22_s21 = int_to_ptr.hbm [resolvable:$true] %s21_s21 }
   0xd   :  { %s84_s18 = sshll.u32 %s2031_s17, 4  ;;  %s2032_s3 = smov 128   ;;  %s85_s18 = int_to_ptr.vmem [resolvable:$true] %s84_s18 }
   0xe   :  { %s2033_s22 = smov 8   ;;  %s2034_s23 = smov [#allocation3]  }
   0xf   :  { %90 = dma.hbm_to_vmem [thread:$0]  %s83_s1, 4096, %s85_s18, [#allocation13], %s2032_s3, %s2032_s3, %s2033_s22  }
  0x10   :  { %s23_s24 = sshll.u32 %s2034_s23, 4  ;;  %s48_s26 = sshll.u32 %s2211_s2, 4  ;;  %s24_s24 = int_to_ptr.vmem [resolvable:$true] %s23_s24  ;;  %s49_s26 = int_to_ptr.hbm [resolvable:$true] %s48_s26 }
  0x11   :  { %29 = dma.hbm_to_vmem [thread:$0]  %s22_s21, 256, %s24_s24, [#allocation4], %s2029_s15, %s2029_s15, %s2030_s16  }
  0x12   :  { %s72_s29 = sshll.u32 %s2213_s4, 4  ;;  %s2035_s8 = smov [#allocation8]   ;;  %s73_s29 = int_to_ptr.hbm [resolvable:$true] %s72_s29 }
  0x13   :  { %s50_s9 = sshll.u32 %s2035_s8, 4  ;;  %s2036_s0 = smov [#allocation11]   ;;  %s51_s9 = int_to_ptr.vmem [resolvable:$true] %s50_s9 }
  0x14   :  { %53 = dma.hbm_to_vmem [thread:$0]  %s49_s26, 64, %s51_s9, [#allocation7]  }
  0x15   :  { %s74_s10 = sshll.u32 %s2036_s0, 4  ;;  %s96_s13 = sshll.u32 %s2215_s6, 4  ;;  %s75_s10 = int_to_ptr.vmem [resolvable:$true] %s74_s10  ;;  %s97_s13 = int_to_ptr.hbm [resolvable:$true] %s96_s13 }
  0x16   :  { %77 = dma.hbm_to_vmem [thread:$0]  %s73_s29, 32, %s75_s10, [#allocation10]  }
  0x17   :  { %s2037_s2 = smov [#allocation14]  }
  0x18   :  { %s98_s14 = sshll.u32 %s2037_s2, 4  ;;  %s99_s14 = int_to_ptr.vmem [resolvable:$true] %s98_s14 }
  0x19   :  { %101 = dma.hbm_to_vmem [thread:$0]  %s97_s13, 16, %s99_s14, [#allocation13]  }
  0x1a   :  { %2015 = dma.done.wait [#allocation4], 1024  }
  0x1b   :  { %2016 = vsyncadd [#allocation4], 4294966272 }
  0x1c   :  { %2017 = dma.done.wait [#allocation7], 65600  }
  0x1d   :  { %2018 = vsyncadd [#allocation7], 4294901696 }
  0x1e   :  { %2019 = dma.done.wait [#allocation10], 16416  }
  0x1f   :  { %2020 = vsyncadd [#allocation10], 4294950880 }
  0x20   :  { %2021 = dma.done.wait [#allocation13], 4112  }
  0x21   :  { %2022 = vsyncadd [#allocation13], 4294963184  ;;  %v210_v0 = vld [vmem:[#allocation6 + $0x1e0] sm:$0xff] }
  0x22   :  { %v274_v1 = vld [vmem:[#allocation6 + $0x3e0] sm:$0xff]  ;;  %701 = vmatpush.msra.mxu0 %v210_v0 }
  0x23   :  { %v338_v2 = vld [vmem:[#allocation6 + $0x5e0] sm:$0xff]  ;;  %721 = vmatpush.msra.mxu1 %v274_v1 }
  0x24   :  { %v206_v3 = vld [vmem:[#allocation6 + $0x1c0] sm:$0xff]  ;;  %741 = vmatpush.msra.mxu2 %v338_v2 }
  0x25   :  { %v270_v4 = vld [vmem:[#allocation6 + $0x3c0] sm:$0xff]  ;;  %702 = vmatpush.msra.mxu0 %v206_v3 }
  0x26   :  { %v334_v5 = vld [vmem:[#allocation6 + $0x5c0] sm:$0xff]  ;;  %722 = vmatpush.msra.mxu1 %v270_v4 }
  0x27   :  { %v402_v6 = vld [vmem:[#allocation6 + $0x7e0] sm:$0xff]  ;;  %742 = vmatpush.msra.mxu2 %v334_v5 }
  0x28   :  { %v202_v7 = vld [vmem:[#allocation6 + $0x1a0] sm:$0xff]  ;;  %761 = vmatpush.msra.mxu3 %v402_v6 }
  0x29   :  { %v266_v8 = vld [vmem:[#allocation6 + $0x3a0] sm:$0xff]  ;;  %703 = vmatpush.msra.mxu0 %v202_v7 }
  0x2a   :  { %v330_v9 = vld [vmem:[#allocation6 + $0x5a0] sm:$0xff]  ;;  %723 = vmatpush.msra.mxu1 %v266_v8 }
  0x2b   :  { %v398_v10 = vld [vmem:[#allocation6 + $0x7c0] sm:$0xff]  ;;  %743 = vmatpush.msra.mxu2 %v330_v9 }
  0x2c   :  { %v198_v11 = vld [vmem:[#allocation6 + $0x180] sm:$0xff]  ;;  %762 = vmatpush.msra.mxu3 %v398_v10 }
  0x2d   :  { %v262_v12 = vld [vmem:[#allocation6 + $0x380] sm:$0xff]  ;;  %704 = vmatpush.msra.mxu0 %v198_v11 }
  0x2e   :  { %v326_v13 = vld [vmem:[#allocation6 + $0x580] sm:$0xff]  ;;  %724 = vmatpush.msra.mxu1 %v262_v12 }
  0x2f   :  { %v394_v14 = vld [vmem:[#allocation6 + $0x7a0] sm:$0xff]  ;;  %744 = vmatpush.msra.mxu2 %v326_v13 }
  0x30   :  { %v194_v15 = vld [vmem:[#allocation6 + $0x160] sm:$0xff]  ;;  %763 = vmatpush.msra.mxu3 %v394_v14 }
  0x31   :  { %v258_v16 = vld [vmem:[#allocation6 + $0x360] sm:$0xff]  ;;  %705 = vmatpush.msra.mxu0 %v194_v15 }
  0x32   :  { %v322_v17 = vld [vmem:[#allocation6 + $0x560] sm:$0xff]  ;;  %725 = vmatpush.msra.mxu1 %v258_v16 }
  0x33   :  { %v390_v18 = vld [vmem:[#allocation6 + $0x780] sm:$0xff]  ;;  %745 = vmatpush.msra.mxu2 %v322_v17 }
  0x34   :  { %v190_v19 = vld [vmem:[#allocation6 + $0x140] sm:$0xff]  ;;  %764 = vmatpush.msra.mxu3 %v390_v18 }
  0x35   :  { %v254_v20 = vld [vmem:[#allocation6 + $0x340] sm:$0xff]  ;;  %706 = vmatpush.msra.mxu0 %v190_v19 }
  0x36   :  { %v318_v21 = vld [vmem:[#allocation6 + $0x540] sm:$0xff]  ;;  %726 = vmatpush.msra.mxu1 %v254_v20 }
  0x37   :  { %v386_v22 = vld [vmem:[#allocation6 + $0x760] sm:$0xff]  ;;  %746 = vmatpush.msra.mxu2 %v318_v21 }
  0x38   :  { %v186_v23 = vld [vmem:[#allocation6 + $0x120] sm:$0xff]  ;;  %765 = vmatpush.msra.mxu3 %v386_v22  ;;  %v144_v22 = vld [vmem:[#allocation3 + $0x10] sm:$0xff] }
  0x39   :  { %v250_v24 = vld [vmem:[#allocation6 + $0x320] sm:$0xff]  ;;  %707 = vmatpush.msra.mxu0 %v186_v23  ;;  %672 = vst [vmem:[#allocation1 + $0x1] ss:$4 sm:$0xff] %v144_v22  ;;  %v331_v22 = vld [vmem:[#allocation6 + $0x5a8] sm:$0xff] }
  0x3a   :  { %v314_v25 = vld [vmem:[#allocation6 + $0x520] sm:$0xff]  ;;  %727 = vmatpush.msra.mxu1 %v250_v24  ;;  %v148_v24 = vld [vmem:[#allocation3 + $0x30] sm:$0xff] }
  0x3b   :  { %v382_v26 = vld [vmem:[#allocation6 + $0x740] sm:$0xff]  ;;  %747 = vmatpush.msra.mxu2 %v314_v25  ;;  %676 = vst [vmem:[#allocation1 + $0x3] ss:$4 sm:$0xff] %v148_v24 }
  0x3c   :  { %v182_v27 = vld [vmem:[#allocation6 + $0x100] sm:$0xff]  ;;  %766 = vmatpush.msra.mxu3 %v382_v26 }
  0x3d   :  { %v246_v28 = vld [vmem:[#allocation6 + $0x300] sm:$0xff]  ;;  %708 = vmatpush.msra.mxu0 %v182_v27 }
  0x3e   :  { %v310_v29 = vld [vmem:[#allocation6 + $0x500] sm:$0xff]  ;;  %728 = vmatpush.msra.mxu1 %v246_v28 }
  0x3f   :  { %v378_v30 = vld [vmem:[#allocation6 + $0x720] sm:$0xff]  ;;  %748 = vmatpush.msra.mxu2 %v310_v29 }
  0x40   :  { %v178_v31 = vld [vmem:[#allocation6 + $0xe0] sm:$0xff]  ;;  %767 = vmatpush.msra.mxu3 %v378_v30 }
  0x41   :  { %v242_v32 = vld [vmem:[#allocation6 + $0x2e0] sm:$0xff]  ;;  %709 = vmatpush.msra.mxu0 %v178_v31 }
  0x42   :  { %v306_v33 = vld [vmem:[#allocation6 + $0x4e0] sm:$0xff]  ;;  %729 = vmatpush.msra.mxu1 %v242_v32 }
  0x43   :  { %v374_v34 = vld [vmem:[#allocation6 + $0x700] sm:$0xff]  ;;  %749 = vmatpush.msra.mxu2 %v306_v33 }
  0x44   :  { %v174_v35 = vld [vmem:[#allocation6 + $0xc0] sm:$0xff]  ;;  %768 = vmatpush.msra.mxu3 %v374_v34 }
  0x45   :  { %v238_v36 = vld [vmem:[#allocation6 + $0x2c0] sm:$0xff]  ;;  %710 = vmatpush.msra.mxu0 %v174_v35 }
  0x46   :  { %v302_v37 = vld [vmem:[#allocation6 + $0x4c0] sm:$0xff]  ;;  %730 = vmatpush.msra.mxu1 %v238_v36 }
  0x47   :  { %v370_v38 = vld [vmem:[#allocation6 + $0x6e0] sm:$0xff]  ;;  %750 = vmatpush.msra.mxu2 %v302_v37  ;;  %v143_v37 = vld [vmem:[#allocation3 + $0x8] sm:$0xff] }
  0x48   :  { %v170_v39 = vld [vmem:[#allocation6 + $0xa0] sm:$0xff]  ;;  %769 = vmatpush.msra.mxu3 %v370_v38  ;;  %v145_v38 = vld [vmem:[#allocation3 + $0x18] sm:$0xff]  ;;  %678 = vst [vmem:[#allocation1 + $0x20] ss:$4 sm:$0xff] %v143_v37  ;;  %v319_v37 = vld [vmem:[#allocation6 + $0x548] sm:$0xff] }
  0x49   :  { %v234_v40 = vld [vmem:[#allocation6 + $0x2a0] sm:$0xff]  ;;  %711 = vmatpush.msra.mxu0 %v170_v39  ;;  %680 = vst [vmem:[#allocation1 + $0x21] ss:$4 sm:$0xff] %v145_v38  ;;  %v387_v38 = vld [vmem:[#allocation6 + $0x768] sm:$0xff] }
  0x4a   :  { %v298_v41 = vld [vmem:[#allocation6 + $0x4a0] sm:$0xff]  ;;  %731 = vmatpush.msra.mxu1 %v234_v40 }
  0x4b   :  { %v366_v42 = vld [vmem:[#allocation6 + $0x6c0] sm:$0xff]  ;;  %751 = vmatpush.msra.mxu2 %v298_v41  ;;  %v147_v41 = vld [vmem:[#allocation3 + $0x28] sm:$0xff] }
  0x4c   :  { %v166_v43 = vld [vmem:[#allocation6 + $0x80] sm:$0xff]  ;;  %770 = vmatpush.msra.mxu3 %v366_v42  ;;  %682 = vst [vmem:[#allocation1 + $0x22] ss:$4 sm:$0xff] %v147_v41  ;;  %v315_v41 = vld [vmem:[#allocation6 + $0x528] sm:$0xff] }
  0x4d   :  { %v230_v44 = vld [vmem:[#allocation6 + $0x280] sm:$0xff]  ;;  %712 = vmatpush.msra.mxu0 %v166_v43 }
  0x4e   :  { %v294_v45 = vld [vmem:[#allocation6 + $0x480] sm:$0xff]  ;;  %732 = vmatpush.msra.mxu1 %v230_v44 }
  0x4f   :  { %v362_v46 = vld [vmem:[#allocation6 + $0x6a0] sm:$0xff]  ;;  %752 = vmatpush.msra.mxu2 %v294_v45 }
  0x50   :  { %v162_v47 = vld [vmem:[#allocation6 + $0x60] sm:$0xff]  ;;  %771 = vmatpush.msra.mxu3 %v362_v46  ;;  %v149_v46 = vld [vmem:[#allocation3 + $0x38] sm:$0xff] }
  0x51   :  { %v226_v48 = vld [vmem:[#allocation6 + $0x260] sm:$0xff]  ;;  %713 = vmatpush.msra.mxu0 %v162_v47  ;;  %684 = vst [vmem:[#allocation1 + $0x23] ss:$4 sm:$0xff] %v149_v46  ;;  %v379_v46 = vld [vmem:[#allocation6 + $0x728] sm:$0xff] }
  0x52   :  { %v290_v49 = vld [vmem:[#allocation6 + $0x460] sm:$0xff]  ;;  %733 = vmatpush.msra.mxu1 %v226_v48 }
  0x53   :  { %v358_v50 = vld [vmem:[#allocation6 + $0x680] sm:$0xff]  ;;  %753 = vmatpush.msra.mxu2 %v290_v49 }
  0x54   :  { %v158_v51 = vld [vmem:[#allocation6 + $0x40] sm:$0xff]  ;;  %772 = vmatpush.msra.mxu3 %v358_v50 }
  0x55   :  { %v222_v52 = vld [vmem:[#allocation6 + $0x240] sm:$0xff]  ;;  %714 = vmatpush.msra.mxu0 %v158_v51 }
  0x56   :  { %v286_v53 = vld [vmem:[#allocation6 + $0x440] sm:$0xff]  ;;  %734 = vmatpush.msra.mxu1 %v222_v52 }
  0x57   :  { %v354_v54 = vld [vmem:[#allocation6 + $0x660] sm:$0xff]  ;;  %754 = vmatpush.msra.mxu2 %v286_v53 }
  0x58   :  { %v154_v55 = vld [vmem:[#allocation6 + $0x20] sm:$0xff]  ;;  %773 = vmatpush.msra.mxu3 %v354_v54  ;;  %v2116_v24 = vld.sshfl [vmem:[#allocation1 + $0x20] sm:$0xff pattern:$0x73625140] }
  0x59   :  { %v218_v56 = vld [vmem:[#allocation6 + $0x220] sm:$0xff]  ;;  %715 = vmatpush.msra.mxu0 %v154_v55 }
  0x5a   :  { %v282_v57 = vld [vmem:[#allocation6 + $0x420] sm:$0xff]  ;;  %735 = vmatpush.msra.mxu1 %v218_v56 }
  0x5b   :  { %v350_v58 = vld [vmem:[#allocation6 + $0x640] sm:$0xff]  ;;  %755 = vmatpush.msra.mxu2 %v282_v57 }
  0x5c   :  { %v150_v59 = vld [vmem:[#allocation6] sm:$0xff]  ;;  %774 = vmatpush.msra.mxu3 %v350_v58 }
  0x5d   :  { %v214_v60 = vld [vmem:[#allocation6 + $0x200] sm:$0xff]  ;;  %716 = vmatpush.msra.mxu0 %v150_v59 }
  0x5e   :  { %v278_v61 = vld [vmem:[#allocation6 + $0x400] sm:$0xff]  ;;  %736 = vmatpush.msra.mxu1 %v214_v60 }
  0x5f   :  { %v346_v62 = vld [vmem:[#allocation6 + $0x620] sm:$0xff]  ;;  %756 = vmatpush.msra.mxu2 %v278_v61 }
  0x60   :  { %v466_v63 = vld [vmem:[#allocation6 + $0x9e0] sm:$0xff]  ;;  %775 = vmatpush.msra.mxu3 %v346_v62 }
  0x61   :  { %v530_v0 = vld [vmem:[#allocation6 + $0xbe0] sm:$0xff]  ;;  %781 = vmatpush.msrb.mxu0 %v466_v63 }
  0x62   :  { %v594_v1 = vld [vmem:[#allocation6 + $0xde0] sm:$0xff]  ;;  %801 = vmatpush.msrb.mxu1 %v530_v0 }
  0x63   :  { %v342_v2 = vld [vmem:[#allocation6 + $0x600] sm:$0xff]  ;;  %821 = vmatpush.msrb.mxu2 %v594_v1 }
  0x64   :  { %v462_v3 = vld [vmem:[#allocation6 + $0x9c0] sm:$0xff]  ;;  %776 = vmatpush.msra.mxu3 %v342_v2 }
  0x65   :  { %v526_v4 = vld [vmem:[#allocation6 + $0xbc0] sm:$0xff]  ;;  %782 = vmatpush.msrb.mxu0 %v462_v3 }
  0x66   :  { %v590_v5 = vld [vmem:[#allocation6 + $0xdc0] sm:$0xff]  ;;  %802 = vmatpush.msrb.mxu1 %v526_v4 }
  0x67   :  { %v658_v6 = vld [vmem:[#allocation6 + $0xfe0] sm:$0xff]  ;;  %822 = vmatpush.msrb.mxu2 %v590_v5 }
  0x68   :  { %v458_v7 = vld [vmem:[#allocation6 + $0x9a0] sm:$0xff]  ;;  %841 = vmatpush.msrb.mxu3 %v658_v6 }
  0x69   :  { %v522_v8 = vld [vmem:[#allocation6 + $0xba0] sm:$0xff]  ;;  %783 = vmatpush.msrb.mxu0 %v458_v7 }
  0x6a   :  { %v586_v9 = vld [vmem:[#allocation6 + $0xda0] sm:$0xff]  ;;  %803 = vmatpush.msrb.mxu1 %v522_v8 }
  0x6b   :  { %v654_v10 = vld [vmem:[#allocation6 + $0xfc0] sm:$0xff]  ;;  %823 = vmatpush.msrb.mxu2 %v586_v9 }
  0x6c   :  { %v454_v11 = vld [vmem:[#allocation6 + $0x980] sm:$0xff]  ;;  %842 = vmatpush.msrb.mxu3 %v654_v10 }
  0x6d   :  { %v518_v12 = vld [vmem:[#allocation6 + $0xb80] sm:$0xff]  ;;  %784 = vmatpush.msrb.mxu0 %v454_v11  ;;  %v211_v11 = vld [vmem:[#allocation6 + $0x1e8] sm:$0xff] }
  0x6e   :  { %v582_v13 = vld [vmem:[#allocation6 + $0xd80] sm:$0xff]  ;;  %804 = vmatpush.msrb.mxu1 %v518_v12  ;;  %v275_v12 = vld [vmem:[#allocation6 + $0x3e8] sm:$0xff] }
  0x6f   :  { %v650_v14 = vld [vmem:[#allocation6 + $0xfa0] sm:$0xff]  ;;  %824 = vmatpush.msrb.mxu2 %v582_v13  ;;  %v339_v13 = vld [vmem:[#allocation6 + $0x5e8] sm:$0xff] }
  0x70   :  { %v450_v15 = vld [vmem:[#allocation6 + $0x960] sm:$0xff]  ;;  %843 = vmatpush.msrb.mxu3 %v650_v14 }
  0x71   :  { %v514_v16 = vld [vmem:[#allocation6 + $0xb60] sm:$0xff]  ;;  %785 = vmatpush.msrb.mxu0 %v450_v15  ;;  %v207_v15 = vld [vmem:[#allocation6 + $0x1c8] sm:$0xff] }
  0x72   :  { %v578_v17 = vld [vmem:[#allocation6 + $0xd60] sm:$0xff]  ;;  %805 = vmatpush.msrb.mxu1 %v514_v16  ;;  %v271_v16 = vld [vmem:[#allocation6 + $0x3c8] sm:$0xff] }
  0x73   :  { %v646_v18 = vld [vmem:[#allocation6 + $0xf80] sm:$0xff]  ;;  %825 = vmatpush.msrb.mxu2 %v578_v17  ;;  %v335_v17 = vld [vmem:[#allocation6 + $0x5c8] sm:$0xff] }
  0x74   :  { %v446_v19 = vld [vmem:[#allocation6 + $0x940] sm:$0xff]  ;;  %844 = vmatpush.msrb.mxu3 %v646_v18  ;;  %v403_v18 = vld [vmem:[#allocation6 + $0x7e8] sm:$0xff] }
  0x75   :  { %v510_v20 = vld [vmem:[#allocation6 + $0xb40] sm:$0xff]  ;;  %786 = vmatpush.msrb.mxu0 %v446_v19  ;;  %v2114_v19 = vld.sshfl [vmem:[#allocation1 + $0x30] sm:$0xff pattern:$0x73625140] }
  0x76   :  { %v142_v21 = vld [vmem:[#allocation3] sm:$0xff]  ;;  %806 = vmatpush.msrb.mxu1 %v510_v20  ;;  %v203_v20 = vld [vmem:[#allocation6 + $0x1a8] sm:$0xff] }
  0x77   :  { %v146_v23 = vld [vmem:[#allocation3 + $0x20] sm:$0xff]  ;;  %670 = vst [vmem:[#allocation1] ss:$4 sm:$0xff] %v142_v21  ;;  %v267_v21 = vld [vmem:[#allocation6 + $0x3a8] sm:$0xff] }
  0x78   :  { %v574_v25 = vld [vmem:[#allocation6 + $0xd40] sm:$0xff]  ;;  %674 = vst [vmem:[#allocation1 + $0x2] ss:$4 sm:$0xff] %v146_v23  ;;  %v399_v23 = vld [vmem:[#allocation6 + $0x7c8] sm:$0xff] }
  0x79   :  { %v642_v26 = vld [vmem:[#allocation6 + $0xf60] sm:$0xff]  ;;  %826 = vmatpush.msrb.mxu2 %v574_v25  ;;  %v2119_v25 = vld.sshfl [vmem:[#allocation1 + $0x38] sm:$0xff pattern:$0x73625140] }
  0x7a   :  { %v442_v27 = vld [vmem:[#allocation6 + $0x920] sm:$0xff]  ;;  %845 = vmatpush.msrb.mxu3 %v642_v26  ;;  %v199_v26 = vld [vmem:[#allocation6 + $0x188] sm:$0xff] }
  0x7b   :  { %v506_v28 = vld [vmem:[#allocation6 + $0xb20] sm:$0xff]  ;;  %787 = vmatpush.msrb.mxu0 %v442_v27  ;;  %v263_v27 = vld [vmem:[#allocation6 + $0x388] sm:$0xff] }
  0x7c   :  { %v570_v29 = vld [vmem:[#allocation6 + $0xd20] sm:$0xff]  ;;  %807 = vmatpush.msrb.mxu1 %v506_v28  ;;  %v327_v28 = vld [vmem:[#allocation6 + $0x588] sm:$0xff] }
  0x7d   :  { %v638_v30 = vld [vmem:[#allocation6 + $0xf40] sm:$0xff]  ;;  %827 = vmatpush.msrb.mxu2 %v570_v29  ;;  %v395_v29 = vld [vmem:[#allocation6 + $0x7a8] sm:$0xff] }
  0x7e   :  { %v438_v31 = vld [vmem:[#allocation6 + $0x900] sm:$0xff]  ;;  %846 = vmatpush.msrb.mxu3 %v638_v30 }
  0x7f   :  { %v502_v32 = vld [vmem:[#allocation6 + $0xb00] sm:$0xff]  ;;  %788 = vmatpush.msrb.mxu0 %v438_v31  ;;  %v2102_v63 = vld.sshfl [vmem:[#allocation1 + $0x10] sm:$0xff pattern:$0x73625140] }
  0x80   :  { %v566_v33 = vld [vmem:[#allocation6 + $0xd00] sm:$0xff]  ;;  %808 = vmatpush.msrb.mxu1 %v502_v32  ;;  %v2104_v4 = vld.sshfl [vmem:[#allocation1] sm:$0xff pattern:$0x73625140]  ;;  %757 = vmatmul.f32.vlgmr.msra.gmra.mxu2 %v2102_v63  ;;  %v195_v31 = vld [vmem:[#allocation6 + $0x168] sm:$0xff] }
  0x81   :  { %v634_v34 = vld [vmem:[#allocation6 + $0xf20] sm:$0xff]  ;;  %828 = vmatpush.msrb.mxu2 %v566_v33  ;;  %v2107_v5 = vld.sshfl [vmem:[#allocation1 + $0x18] sm:$0xff pattern:$0x73625140]  ;;  %717 = vmatmul.f32.vlgmr.msra.gmra.mxu0 %v2104_v4  ;;  %v259_v32 = vld [vmem:[#allocation6 + $0x368] sm:$0xff] }
  0x82   :  { %v434_v35 = vld [vmem:[#allocation6 + $0x8e0] sm:$0xff]  ;;  %847 = vmatpush.msrb.mxu3 %v634_v34  ;;  %v323_v33 = vld [vmem:[#allocation6 + $0x568] sm:$0xff] }
  0x83   :  { %v498_v36 = vld [vmem:[#allocation6 + $0xae0] sm:$0xff]  ;;  %789 = vmatpush.msrb.mxu0 %v434_v35  ;;  %777 = vmatmul.f32.vlgmr.msra.gmra.mxu3 %v2107_v5  ;;  %v391_v34 = vld [vmem:[#allocation6 + $0x788] sm:$0xff] }
  0x84   :  { %v562_v39 = vld [vmem:[#allocation6 + $0xce0] sm:$0xff]  ;;  %809 = vmatpush.msrb.mxu1 %v498_v36  ;;  %v191_v35 = vld [vmem:[#allocation6 + $0x148] sm:$0xff] }
  0x85   :  { %v630_v40 = vld [vmem:[#allocation6 + $0xf00] sm:$0xff]  ;;  %829 = vmatpush.msrb.mxu2 %v562_v39  ;;  %v255_v36 = vld [vmem:[#allocation6 + $0x348] sm:$0xff] }
  0x86   :  { %v430_v42 = vld [vmem:[#allocation6 + $0x8c0] sm:$0xff]  ;;  %848 = vmatpush.msrb.mxu3 %v630_v40  ;;  %v187_v39 = vld [vmem:[#allocation6 + $0x128] sm:$0xff] }
  0x87   :  { %v494_v43 = vld [vmem:[#allocation6 + $0xac0] sm:$0xff]  ;;  %790 = vmatpush.msrb.mxu0 %v430_v42  ;;  %v251_v40 = vld [vmem:[#allocation6 + $0x328] sm:$0xff] }
  0x88   :  { %v558_v44 = vld [vmem:[#allocation6 + $0xcc0] sm:$0xff]  ;;  %810 = vmatpush.msrb.mxu1 %v494_v43  ;;  %v383_v42 = vld [vmem:[#allocation6 + $0x748] sm:$0xff] }
  0x89   :  { %v626_v45 = vld [vmem:[#allocation6 + $0xee0] sm:$0xff]  ;;  %830 = vmatpush.msrb.mxu2 %v558_v44  ;;  %v183_v43 = vld [vmem:[#allocation6 + $0x108] sm:$0xff] }
  0x8a   :  { %v426_v47 = vld [vmem:[#allocation6 + $0x8a0] sm:$0xff]  ;;  %849 = vmatpush.msrb.mxu3 %v626_v45  ;;  %v247_v44 = vld [vmem:[#allocation6 + $0x308] sm:$0xff] }
  0x8b   :  { %v490_v48 = vld [vmem:[#allocation6 + $0xaa0] sm:$0xff]  ;;  %791 = vmatpush.msrb.mxu0 %v426_v47  ;;  %v311_v45 = vld [vmem:[#allocation6 + $0x508] sm:$0xff] }
  0x8c   :  { %v554_v49 = vld [vmem:[#allocation6 + $0xca0] sm:$0xff]  ;;  %811 = vmatpush.msrb.mxu1 %v490_v48  ;;  %v179_v47 = vld [vmem:[#allocation6 + $0xe8] sm:$0xff] }
  0x8d   :  { %v622_v50 = vld [vmem:[#allocation6 + $0xec0] sm:$0xff]  ;;  %831 = vmatpush.msrb.mxu2 %v554_v49  ;;  %v243_v48 = vld [vmem:[#allocation6 + $0x2e8] sm:$0xff] }
  0x8e   :  { %v422_v51 = vld [vmem:[#allocation6 + $0x880] sm:$0xff]  ;;  %850 = vmatpush.msrb.mxu3 %v622_v50  ;;  %v307_v49 = vld [vmem:[#allocation6 + $0x4e8] sm:$0xff] }
  0x8f   :  { %v486_v52 = vld [vmem:[#allocation6 + $0xa80] sm:$0xff]  ;;  %792 = vmatpush.msrb.mxu0 %v422_v51  ;;  %v375_v50 = vld [vmem:[#allocation6 + $0x708] sm:$0xff] }
  0x90   :  { %v550_v53 = vld [vmem:[#allocation6 + $0xc80] sm:$0xff]  ;;  %812 = vmatpush.msrb.mxu1 %v486_v52  ;;  %v175_v51 = vld [vmem:[#allocation6 + $0xc8] sm:$0xff] }
  0x91   :  { %v618_v54 = vld [vmem:[#allocation6 + $0xea0] sm:$0xff]  ;;  %832 = vmatpush.msrb.mxu2 %v550_v53  ;;  %v239_v52 = vld [vmem:[#allocation6 + $0x2c8] sm:$0xff] }
  0x92   :  { %v418_v55 = vld [vmem:[#allocation6 + $0x860] sm:$0xff]  ;;  %851 = vmatpush.msrb.mxu3 %v618_v54  ;;  %v303_v53 = vld [vmem:[#allocation6 + $0x4c8] sm:$0xff] }
  0x93   :  { %v482_v56 = vld [vmem:[#allocation6 + $0xa60] sm:$0xff]  ;;  %793 = vmatpush.msrb.mxu0 %v418_v55  ;;  %v371_v54 = vld [vmem:[#allocation6 + $0x6e8] sm:$0xff] }
  0x94   :  { %v546_v57 = vld [vmem:[#allocation6 + $0xc60] sm:$0xff]  ;;  %813 = vmatpush.msrb.mxu1 %v482_v56  ;;  %v171_v55 = vld [vmem:[#allocation6 + $0xa8] sm:$0xff] }
  0x95   :  { %v614_v58 = vld [vmem:[#allocation6 + $0xe80] sm:$0xff]  ;;  %833 = vmatpush.msrb.mxu2 %v546_v57  ;;  %v235_v56 = vld [vmem:[#allocation6 + $0x2a8] sm:$0xff] }
  0x96   :  { %v414_v59 = vld [vmem:[#allocation6 + $0x840] sm:$0xff]  ;;  %852 = vmatpush.msrb.mxu3 %v614_v58  ;;  %v299_v57 = vld [vmem:[#allocation6 + $0x4a8] sm:$0xff] }
  0x97   :  { %v478_v60 = vld [vmem:[#allocation6 + $0xa40] sm:$0xff]  ;;  %794 = vmatpush.msrb.mxu0 %v414_v59  ;;  %v367_v58 = vld [vmem:[#allocation6 + $0x6c8] sm:$0xff] }
  0x98   :  { %v542_v61 = vld [vmem:[#allocation6 + $0xc40] sm:$0xff]  ;;  %814 = vmatpush.msrb.mxu1 %v478_v60  ;;  %v167_v59 = vld [vmem:[#allocation6 + $0x88] sm:$0xff] }
  0x99   :  { %v610_v62 = vld [vmem:[#allocation6 + $0xe60] sm:$0xff]  ;;  %834 = vmatpush.msrb.mxu2 %v542_v61  ;;  %v231_v60 = vld [vmem:[#allocation6 + $0x288] sm:$0xff] }
  0x9a   :  { %v410_v0 = vld [vmem:[#allocation6 + $0x820] sm:$0xff]  ;;  %853 = vmatpush.msrb.mxu3 %v610_v62  ;;  %v295_v61 = vld [vmem:[#allocation6 + $0x488] sm:$0xff] }
  0x9b   :  { %v474_v1 = vld [vmem:[#allocation6 + $0xa20] sm:$0xff]  ;;  %795 = vmatpush.msrb.mxu0 %v410_v0  ;;  %v363_v62 = vld [vmem:[#allocation6 + $0x6a8] sm:$0xff] }
  0x9c   :  { %v538_v2 = vld [vmem:[#allocation6 + $0xc20] sm:$0xff]  ;;  %815 = vmatpush.msrb.mxu1 %v474_v1  ;;  %v163_v0 = vld [vmem:[#allocation6 + $0x68] sm:$0xff] }
  0x9d   :  { %v606_v3 = vld [vmem:[#allocation6 + $0xe40] sm:$0xff]  ;;  %835 = vmatpush.msrb.mxu2 %v538_v2  ;;  %v227_v1 = vld [vmem:[#allocation6 + $0x268] sm:$0xff] }
  0x9e   :  { %v406_v6 = vld [vmem:[#allocation6 + $0x800] sm:$0xff]  ;;  %854 = vmatpush.msrb.mxu3 %v606_v3  ;;  %v291_v2 = vld [vmem:[#allocation6 + $0x468] sm:$0xff] }
  0x9f   :  { %v470_v7 = vld [vmem:[#allocation6 + $0xa00] sm:$0xff]  ;;  %796 = vmatpush.msrb.mxu0 %v406_v6  ;;  %v359_v3 = vld [vmem:[#allocation6 + $0x688] sm:$0xff] }
  0xa0   :  { %v534_v8 = vld [vmem:[#allocation6 + $0xc00] sm:$0xff]  ;;  %816 = vmatpush.msrb.mxu1 %v470_v7  ;;  %797 = vmatmul.f32.vlgmr.msrb.gmra.mxu0 %v2116_v24  ;;  %v159_v6 = vld [vmem:[#allocation6 + $0x48] sm:$0xff] }
  0xa1   :  { %v602_v9 = vld [vmem:[#allocation6 + $0xe20] sm:$0xff]  ;;  %836 = vmatpush.msrb.mxu2 %v534_v8  ;;  %861 = vmatpush.msra.mxu0 %v211_v11  ;;  %v223_v7 = vld [vmem:[#allocation6 + $0x248] sm:$0xff] }
  0xa2   :  { %v2110_v10 = vld.sshfl [vmem:[#allocation1 + $0x8] sm:$0xff pattern:$0x73625140]  ;;  %855 = vmatpush.msrb.mxu3 %v602_v9  ;;  %837 = vmatmul.f32.vlgmr.msrb.gmra.mxu2 %v2114_v19  ;;  %v287_v8 = vld [vmem:[#allocation6 + $0x448] sm:$0xff] }
  0xa3   :  { %v598_v14 = vld [vmem:[#allocation6 + $0xe00] sm:$0xff]  ;;  %737 = vmatmul.f32.vlgmr.msra.gmra.mxu1 %v2110_v10  ;;  %901 = vmatpush.msra.mxu2 %v339_v13  ;;  %v355_v9 = vld [vmem:[#allocation6 + $0x668] sm:$0xff] }
  0xa4   :  { %881 = vmatpush.msra.mxu1 %v275_v12  ;;  %856 = vmatpush.msrb.mxu3 %v598_v14  ;;  %v2122_v30 = vld.sshfl [vmem:[#allocation1 + $0x28] sm:$0xff pattern:$0x73625140]  ;;  %v155_v11 = vld [vmem:[#allocation6 + $0x28] sm:$0xff] }
  0xa5   :  { %862 = vmatpush.msra.mxu0 %v207_v15  ;;  %902 = vmatpush.msra.mxu2 %v335_v17  ;;  %v219_v12 = vld [vmem:[#allocation6 + $0x228] sm:$0xff] }
  0xa6   :  { %882 = vmatpush.msra.mxu1 %v271_v16  ;;  %921 = vmatpush.msra.mxu3 %v403_v18  ;;  %v283_v13 = vld [vmem:[#allocation6 + $0x428] sm:$0xff] }
  0xa7   :  { %863 = vmatpush.msra.mxu0 %v203_v20  ;;  %903 = vmatpush.msra.mxu2 %v331_v22  ;;  %v351_v14 = vld [vmem:[#allocation6 + $0x648] sm:$0xff] }
  0xa8   :  { %883 = vmatpush.msra.mxu1 %v267_v21  ;;  %922 = vmatpush.msra.mxu3 %v399_v23  ;;  %v151_v15 = vld [vmem:[#allocation6 + $0x8] sm:$0xff] }
  0xa9   :  { %857 = vmatmul.f32.vlgmr.msrb.gmra.mxu3 %v2119_v25  ;;  %864 = vmatpush.msra.mxu0 %v199_v26  ;;  %v215_v16 = vld [vmem:[#allocation6 + $0x208] sm:$0xff] }
  0xaa   :  { %884 = vmatpush.msra.mxu1 %v263_v27  ;;  %904 = vmatpush.msra.mxu2 %v327_v28  ;;  %v279_v17 = vld [vmem:[#allocation6 + $0x408] sm:$0xff] }
  0xab   :  { %923 = vmatpush.msra.mxu3 %v395_v29  ;;  %817 = vmatmul.f32.vlgmr.msrb.gmra.mxu1 %v2122_v30  ;;  %v347_v18 = vld [vmem:[#allocation6 + $0x628] sm:$0xff] }
  0xac   :  { %865 = vmatpush.msra.mxu0 %v195_v31  ;;  %885 = vmatpush.msra.mxu1 %v259_v32  ;;  %v467_v20 = vld [vmem:[#allocation6 + $0x9e8] sm:$0xff] }
  0xad   :  { %905 = vmatpush.msra.mxu2 %v323_v33  ;;  %924 = vmatpush.msra.mxu3 %v391_v34  ;;  %v531_v21 = vld [vmem:[#allocation6 + $0xbe8] sm:$0xff] }
  0xae   :  { %866 = vmatpush.msra.mxu0 %v191_v35  ;;  %886 = vmatpush.msra.mxu1 %v255_v36  ;;  %v595_v22 = vld [vmem:[#allocation6 + $0xde8] sm:$0xff] }
  0xaf   :  { %906 = vmatpush.msra.mxu2 %v319_v37  ;;  %925 = vmatpush.msra.mxu3 %v387_v38  ;;  %v343_v23 = vld [vmem:[#allocation6 + $0x608] sm:$0xff] }
  0xb0   :  { %867 = vmatpush.msra.mxu0 %v187_v39  ;;  %887 = vmatpush.msra.mxu1 %v251_v40  ;;  %v463_v26 = vld [vmem:[#allocation6 + $0x9c8] sm:$0xff] }
  0xb1   :  { %907 = vmatpush.msra.mxu2 %v315_v41  ;;  %926 = vmatpush.msra.mxu3 %v383_v42  ;;  %v527_v27 = vld [vmem:[#allocation6 + $0xbc8] sm:$0xff] }
  0xb2   :  { %868 = vmatpush.msra.mxu0 %v183_v43  ;;  %888 = vmatpush.msra.mxu1 %v247_v44  ;;  %v591_v28 = vld [vmem:[#allocation6 + $0xdc8] sm:$0xff] }
  0xb3   :  { %908 = vmatpush.msra.mxu2 %v311_v45  ;;  %927 = vmatpush.msra.mxu3 %v379_v46  ;;  %v659_v29 = vld [vmem:[#allocation6 + $0xfe8] sm:$0xff] }
  0xb4   :  { %869 = vmatpush.msra.mxu0 %v179_v47  ;;  %889 = vmatpush.msra.mxu1 %v243_v48  ;;  %v459_v31 = vld [vmem:[#allocation6 + $0x9a8] sm:$0xff] }
  0xb5   :  { %909 = vmatpush.msra.mxu2 %v307_v49  ;;  %928 = vmatpush.msra.mxu3 %v375_v50  ;;  %v523_v32 = vld [vmem:[#allocation6 + $0xba8] sm:$0xff] }
  0xb6   :  { %870 = vmatpush.msra.mxu0 %v175_v51  ;;  %890 = vmatpush.msra.mxu1 %v239_v52  ;;  %v587_v33 = vld [vmem:[#allocation6 + $0xda8] sm:$0xff] }
  0xb7   :  { %910 = vmatpush.msra.mxu2 %v303_v53  ;;  %929 = vmatpush.msra.mxu3 %v371_v54  ;;  %v655_v34 = vld [vmem:[#allocation6 + $0xfc8] sm:$0xff] }
  0xb8   :  { %871 = vmatpush.msra.mxu0 %v171_v55  ;;  %891 = vmatpush.msra.mxu1 %v235_v56  ;;  %v455_v35 = vld [vmem:[#allocation6 + $0x988] sm:$0xff] }
  0xb9   :  { %911 = vmatpush.msra.mxu2 %v299_v57  ;;  %930 = vmatpush.msra.mxu3 %v367_v58  ;;  %v519_v36 = vld [vmem:[#allocation6 + $0xb88] sm:$0xff] }
  0xba   :  { %872 = vmatpush.msra.mxu0 %v167_v59  ;;  %892 = vmatpush.msra.mxu1 %v231_v60  ;;  %v583_v37 = vld [vmem:[#allocation6 + $0xd88] sm:$0xff] }
  0xbb   :  { %912 = vmatpush.msra.mxu2 %v295_v61  ;;  %931 = vmatpush.msra.mxu3 %v363_v62  ;;  %v651_v38 = vld [vmem:[#allocation6 + $0xfa8] sm:$0xff] }
  0xbc   :  { %873 = vmatpush.msra.mxu0 %v163_v0  ;;  %893 = vmatpush.msra.mxu1 %v227_v1  ;;  %v451_v39 = vld [vmem:[#allocation6 + $0x968] sm:$0xff] }
  0xbd   :  { %913 = vmatpush.msra.mxu2 %v291_v2  ;;  %932 = vmatpush.msra.mxu3 %v359_v3  ;;  %v515_v40 = vld [vmem:[#allocation6 + $0xb68] sm:$0xff] }
  0xbe   :  { %874 = vmatpush.msra.mxu0 %v159_v6  ;;  %894 = vmatpush.msra.mxu1 %v223_v7  ;;  %v579_v41 = vld [vmem:[#allocation6 + $0xd68] sm:$0xff] }
  0xbf   :  { %914 = vmatpush.msra.mxu2 %v287_v8  ;;  %933 = vmatpush.msra.mxu3 %v355_v9  ;;  %v647_v42 = vld [vmem:[#allocation6 + $0xf88] sm:$0xff] }
  0xc0   :  { %875 = vmatpush.msra.mxu0 %v155_v11  ;;  %895 = vmatpush.msra.mxu1 %v219_v12  ;;  %v447_v43 = vld [vmem:[#allocation6 + $0x948] sm:$0xff] }
  0xc1   :  { %915 = vmatpush.msra.mxu2 %v283_v13  ;;  %934 = vmatpush.msra.mxu3 %v351_v14  ;;  %v511_v44 = vld [vmem:[#allocation6 + $0xb48] sm:$0xff] }
  0xc2   :  { %876 = vmatpush.msra.mxu0 %v151_v15  ;;  %896 = vmatpush.msra.mxu1 %v215_v16  ;;  %v575_v45 = vld [vmem:[#allocation6 + $0xd48] sm:$0xff] }
  0xc3   :  { %916 = vmatpush.msra.mxu2 %v279_v17  ;;  %935 = vmatpush.msra.mxu3 %v347_v18  ;;  %v643_v46 = vld [vmem:[#allocation6 + $0xf68] sm:$0xff] }
  0xc4   :  { %941 = vmatpush.msrb.mxu0 %v467_v20  ;;  %961 = vmatpush.msrb.mxu1 %v531_v21  ;;  %v443_v47 = vld [vmem:[#allocation6 + $0x928] sm:$0xff] }
  0xc5   :  { %981 = vmatpush.msrb.mxu2 %v595_v22  ;;  %936 = vmatpush.msra.mxu3 %v343_v23  ;;  %v507_v48 = vld [vmem:[#allocation6 + $0xb28] sm:$0xff] }
  0xc6   :  { %942 = vmatpush.msrb.mxu0 %v463_v26  ;;  %962 = vmatpush.msrb.mxu1 %v527_v27  ;;  %v571_v49 = vld [vmem:[#allocation6 + $0xd28] sm:$0xff] }
  0xc7   :  { %982 = vmatpush.msrb.mxu2 %v591_v28  ;;  %1001 = vmatpush.msrb.mxu3 %v659_v29  ;;  %v639_v50 = vld [vmem:[#allocation6 + $0xf48] sm:$0xff] }
  0xc8   :  { %943 = vmatpush.msrb.mxu0 %v459_v31  ;;  %963 = vmatpush.msrb.mxu1 %v523_v32  ;;  %v439_v51 = vld [vmem:[#allocation6 + $0x908] sm:$0xff]  ;;  %v212_v31 = vld [vmem:[#allocation6 + $0x1f0] sm:$0xff] }
  0xc9   :  { %983 = vmatpush.msrb.mxu2 %v587_v33  ;;  %1002 = vmatpush.msrb.mxu3 %v655_v34  ;;  %v503_v52 = vld [vmem:[#allocation6 + $0xb08] sm:$0xff]  ;;  %v276_v32 = vld [vmem:[#allocation6 + $0x3f0] sm:$0xff] }
  0xca   :  { %944 = vmatpush.msrb.mxu0 %v455_v35  ;;  %964 = vmatpush.msrb.mxu1 %v519_v36  ;;  %v567_v53 = vld [vmem:[#allocation6 + $0xd08] sm:$0xff]  ;;  %v340_v33 = vld [vmem:[#allocation6 + $0x5f0] sm:$0xff] }
  0xcb   :  { %984 = vmatpush.msrb.mxu2 %v583_v37  ;;  %1003 = vmatpush.msrb.mxu3 %v651_v38  ;;  %v635_v54 = vld [vmem:[#allocation6 + $0xf28] sm:$0xff]  ;;  %v272_v35 = vld [vmem:[#allocation6 + $0x3d0] sm:$0xff] }
  0xcc   :  { %945 = vmatpush.msrb.mxu0 %v451_v39  ;;  %965 = vmatpush.msrb.mxu1 %v515_v40  ;;  %v435_v55 = vld [vmem:[#allocation6 + $0x8e8] sm:$0xff]  ;;  %v336_v36 = vld [vmem:[#allocation6 + $0x5d0] sm:$0xff] }
  0xcd   :  { %985 = vmatpush.msrb.mxu2 %v579_v41  ;;  %1004 = vmatpush.msrb.mxu3 %v647_v42  ;;  %v499_v56 = vld [vmem:[#allocation6 + $0xae8] sm:$0xff]  ;;  %v404_v37 = vld [vmem:[#allocation6 + $0x7f0] sm:$0xff] }
  0xce   :  { %946 = vmatpush.msrb.mxu0 %v447_v43  ;;  %966 = vmatpush.msrb.mxu1 %v511_v44  ;;  %v563_v57 = vld [vmem:[#allocation6 + $0xce8] sm:$0xff]  ;;  %v332_v38 = vld [vmem:[#allocation6 + $0x5b0] sm:$0xff] }
  0xcf   :  { %986 = vmatpush.msrb.mxu2 %v575_v45  ;;  %1005 = vmatpush.msrb.mxu3 %v643_v46  ;;  %v631_v58 = vld [vmem:[#allocation6 + $0xf08] sm:$0xff]  ;;  %v400_v39 = vld [vmem:[#allocation6 + $0x7d0] sm:$0xff] }
  0xd0   :  { %947 = vmatpush.msrb.mxu0 %v443_v47  ;;  %967 = vmatpush.msrb.mxu1 %v507_v48  ;;  %v431_v59 = vld [vmem:[#allocation6 + $0x8c8] sm:$0xff]  ;;  %v264_v40 = vld [vmem:[#allocation6 + $0x390] sm:$0xff] }
  0xd1   :  { %987 = vmatpush.msrb.mxu2 %v571_v49  ;;  %1006 = vmatpush.msrb.mxu3 %v639_v50  ;;  %v495_v60 = vld [vmem:[#allocation6 + $0xac8] sm:$0xff]  ;;  %v328_v41 = vld [vmem:[#allocation6 + $0x590] sm:$0xff] }
  0xd2   :  { %948 = vmatpush.msrb.mxu0 %v439_v51  ;;  %968 = vmatpush.msrb.mxu1 %v503_v52  ;;  %v559_v61 = vld [vmem:[#allocation6 + $0xcc8] sm:$0xff]  ;;  %v396_v42 = vld [vmem:[#allocation6 + $0x7b0] sm:$0xff] }
  0xd3   :  { %988 = vmatpush.msrb.mxu2 %v567_v53  ;;  %1007 = vmatpush.msrb.mxu3 %v635_v54  ;;  %v627_v62 = vld [vmem:[#allocation6 + $0xee8] sm:$0xff]  ;;  %v196_v43 = vld [vmem:[#allocation6 + $0x170] sm:$0xff] }
  0xd4   :  { %949 = vmatpush.msrb.mxu0 %v435_v55  ;;  %969 = vmatpush.msrb.mxu1 %v499_v56  ;;  %v427_v0 = vld [vmem:[#allocation6 + $0x8a8] sm:$0xff]  ;;  %v260_v44 = vld [vmem:[#allocation6 + $0x370] sm:$0xff] }
  0xd5   :  { %989 = vmatpush.msrb.mxu2 %v563_v57  ;;  %1008 = vmatpush.msrb.mxu3 %v631_v58  ;;  %v491_v1 = vld [vmem:[#allocation6 + $0xaa8] sm:$0xff]  ;;  %v324_v45 = vld [vmem:[#allocation6 + $0x570] sm:$0xff] }
  0xd6   :  { %950 = vmatpush.msrb.mxu0 %v431_v59  ;;  %970 = vmatpush.msrb.mxu1 %v495_v60  ;;  %v555_v2 = vld [vmem:[#allocation6 + $0xca8] sm:$0xff]  ;;  %v392_v46 = vld [vmem:[#allocation6 + $0x790] sm:$0xff] }
  0xd7   :  { %v623_v3 = vld [vmem:[#allocation6 + $0xec8] sm:$0xff]  ;;  %990 = vmatpush.msrb.mxu2 %v559_v61  ;;  %1009 = vmatpush.msrb.mxu3 %v627_v62  ;;  %v256_v47 = vld [vmem:[#allocation6 + $0x350] sm:$0xff] }
  0xd8   :  { %v423_v6 = vld [vmem:[#allocation6 + $0x888] sm:$0xff]  ;;  %951 = vmatpush.msrb.mxu0 %v427_v0  ;;  %971 = vmatpush.msrb.mxu1 %v491_v1  ;;  %v320_v48 = vld [vmem:[#allocation6 + $0x550] sm:$0xff] }
  0xd9   :  { %v487_v7 = vld [vmem:[#allocation6 + $0xa88] sm:$0xff]  ;;  %991 = vmatpush.msrb.mxu2 %v555_v2  ;;  %1010 = vmatpush.msrb.mxu3 %v623_v3  ;;  %v388_v49 = vld [vmem:[#allocation6 + $0x770] sm:$0xff] }
  0xda   :  { %v551_v8 = vld [vmem:[#allocation6 + $0xc88] sm:$0xff]  ;;  %952 = vmatpush.msrb.mxu0 %v423_v6  ;;  %972 = vmatpush.msrb.mxu1 %v487_v7  ;;  %v316_v50 = vld [vmem:[#allocation6 + $0x530] sm:$0xff] }
  0xdb   :  { %v619_v9 = vld [vmem:[#allocation6 + $0xea8] sm:$0xff]  ;;  %992 = vmatpush.msrb.mxu2 %v551_v8  ;;  %877 = vmatmul.f32.vlgmr.msra.gmra.mxu0 %v2104_v4  ;;  %v204_v4 = vld [vmem:[#allocation6 + $0x1b0] sm:$0xff] }
  0xdc   :  { %v419_v11 = vld [vmem:[#allocation6 + $0x868] sm:$0xff]  ;;  %1011 = vmatpush.msrb.mxu3 %v619_v9  ;;  %917 = vmatmul.f32.vlgmr.msra.gmra.mxu2 %v2102_v63  ;;  %v208_v63 = vld [vmem:[#allocation6 + $0x1d0] sm:$0xff] }
  0xdd   :  { %v483_v12 = vld [vmem:[#allocation6 + $0xa68] sm:$0xff]  ;;  %953 = vmatpush.msrb.mxu0 %v419_v11  ;;  %937 = vmatmul.f32.vlgmr.msra.gmra.mxu3 %v2107_v5  ;;  %v268_v5 = vld [vmem:[#allocation6 + $0x3b0] sm:$0xff] }
  0xde   :  { %v547_v13 = vld [vmem:[#allocation6 + $0xc68] sm:$0xff]  ;;  %973 = vmatpush.msrb.mxu1 %v483_v12  ;;  %v384_v51 = vld [vmem:[#allocation6 + $0x750] sm:$0xff] }
  0xdf   :  { %v615_v14 = vld [vmem:[#allocation6 + $0xe88] sm:$0xff]  ;;  %993 = vmatpush.msrb.mxu2 %v547_v13  ;;  %897 = vmatmul.f32.vlgmr.msra.gmra.mxu1 %v2110_v10  ;;  %v200_v10 = vld [vmem:[#allocation6 + $0x190] sm:$0xff] }
  0xe0   :  { %v415_v15 = vld [vmem:[#allocation6 + $0x848] sm:$0xff]  ;;  %1012 = vmatpush.msrb.mxu3 %v615_v14  ;;  %v184_v52 = vld [vmem:[#allocation6 + $0x110] sm:$0xff] }
  0xe1   :  { %v479_v16 = vld [vmem:[#allocation6 + $0xa48] sm:$0xff]  ;;  %954 = vmatpush.msrb.mxu0 %v415_v15  ;;  %v248_v53 = vld [vmem:[#allocation6 + $0x310] sm:$0xff] }
  0xe2   :  { %v543_v17 = vld [vmem:[#allocation6 + $0xc48] sm:$0xff]  ;;  %974 = vmatpush.msrb.mxu1 %v479_v16  ;;  %v380_v54 = vld [vmem:[#allocation6 + $0x730] sm:$0xff] }
  0xe3   :  { %v611_v18 = vld [vmem:[#allocation6 + $0xe68] sm:$0xff]  ;;  %994 = vmatpush.msrb.mxu2 %v543_v17  ;;  %v180_v55 = vld [vmem:[#allocation6 + $0xf0] sm:$0xff] }
  0xe4   :  { %v411_v20 = vld [vmem:[#allocation6 + $0x828] sm:$0xff]  ;;  %1013 = vmatpush.msrb.mxu3 %v611_v18  ;;  %v244_v56 = vld [vmem:[#allocation6 + $0x2f0] sm:$0xff] }
  0xe5   :  { %v475_v21 = vld [vmem:[#allocation6 + $0xa28] sm:$0xff]  ;;  %955 = vmatpush.msrb.mxu0 %v411_v20  ;;  %v308_v57 = vld [vmem:[#allocation6 + $0x4f0] sm:$0xff] }
  0xe6   :  { %v539_v22 = vld [vmem:[#allocation6 + $0xc28] sm:$0xff]  ;;  %975 = vmatpush.msrb.mxu1 %v475_v21  ;;  %v376_v58 = vld [vmem:[#allocation6 + $0x710] sm:$0xff] }
  0xe7   :  { %v607_v23 = vld [vmem:[#allocation6 + $0xe48] sm:$0xff]  ;;  %995 = vmatpush.msrb.mxu2 %v539_v22  ;;  %v176_v59 = vld [vmem:[#allocation6 + $0xd0] sm:$0xff] }
  0xe8   :  { %v407_v26 = vld [vmem:[#allocation6 + $0x808] sm:$0xff]  ;;  %1014 = vmatpush.msrb.mxu3 %v607_v23  ;;  %v240_v60 = vld [vmem:[#allocation6 + $0x2d0] sm:$0xff] }
  0xe9   :  { %v471_v27 = vld [vmem:[#allocation6 + $0xa08] sm:$0xff]  ;;  %956 = vmatpush.msrb.mxu0 %v407_v26  ;;  %v304_v61 = vld [vmem:[#allocation6 + $0x4d0] sm:$0xff] }
  0xea   :  { %v535_v28 = vld [vmem:[#allocation6 + $0xc08] sm:$0xff]  ;;  %976 = vmatpush.msrb.mxu1 %v471_v27  ;;  %957 = vmatmul.f32.vlgmr.msrb.gmra.mxu0 %v2116_v24  ;;  %v188_v24 = vld [vmem:[#allocation6 + $0x130] sm:$0xff] }
  0xeb   :  { %v603_v29 = vld [vmem:[#allocation6 + $0xe28] sm:$0xff]  ;;  %996 = vmatpush.msrb.mxu2 %v535_v28  ;;  %1021 = vmatpush.msra.mxu0 %v212_v31  ;;  %v372_v62 = vld [vmem:[#allocation6 + $0x6f0] sm:$0xff] }
  0xec   :  { %v599_v34 = vld [vmem:[#allocation6 + $0xe08] sm:$0xff]  ;;  %1015 = vmatpush.msrb.mxu3 %v603_v29  ;;  %1041 = vmatpush.msra.mxu1 %v276_v32  ;;  %v172_v0 = vld [vmem:[#allocation6 + $0xb0] sm:$0xff] }
  0xed   :  { %1061 = vmatpush.msra.mxu2 %v340_v33  ;;  %1022 = vmatpush.msra.mxu0 %v208_v63  ;;  %v236_v1 = vld [vmem:[#allocation6 + $0x2b0] sm:$0xff] }
  0xee   :  { %1016 = vmatpush.msrb.mxu3 %v599_v34  ;;  %1042 = vmatpush.msra.mxu1 %v272_v35  ;;  %v300_v2 = vld [vmem:[#allocation6 + $0x4b0] sm:$0xff] }
  0xef   :  { %1062 = vmatpush.msra.mxu2 %v336_v36  ;;  %1023 = vmatpush.msra.mxu0 %v204_v4  ;;  %v368_v3 = vld [vmem:[#allocation6 + $0x6d0] sm:$0xff] }
  0xf0   :  { %1081 = vmatpush.msra.mxu3 %v404_v37  ;;  %997 = vmatmul.f32.vlgmr.msrb.gmra.mxu2 %v2114_v19  ;;  %v192_v19 = vld [vmem:[#allocation6 + $0x150] sm:$0xff] }
  0xf1   :  { %1043 = vmatpush.msra.mxu1 %v268_v5  ;;  %1063 = vmatpush.msra.mxu2 %v332_v38  ;;  %v168_v6 = vld [vmem:[#allocation6 + $0x90] sm:$0xff] }
  0xf2   :  { %1082 = vmatpush.msra.mxu3 %v400_v39  ;;  %1024 = vmatpush.msra.mxu0 %v200_v10  ;;  %v232_v7 = vld [vmem:[#allocation6 + $0x290] sm:$0xff] }
  0xf3   :  { %1017 = vmatmul.f32.vlgmr.msrb.gmra.mxu3 %v2119_v25  ;;  %1044 = vmatpush.msra.mxu1 %v264_v40  ;;  %v252_v25 = vld [vmem:[#allocation6 + $0x330] sm:$0xff] }
  0xf4   :  { %1064 = vmatpush.msra.mxu2 %v328_v41  ;;  %1083 = vmatpush.msra.mxu3 %v396_v42  ;;  %v296_v8 = vld [vmem:[#allocation6 + $0x490] sm:$0xff] }
  0xf5   :  { %977 = vmatmul.f32.vlgmr.msrb.gmra.mxu1 %v2122_v30  ;;  %1025 = vmatpush.msra.mxu0 %v196_v43  ;;  %v312_v30 = vld [vmem:[#allocation6 + $0x510] sm:$0xff] }
  0xf6   :  { %1045 = vmatpush.msra.mxu1 %v260_v44  ;;  %1065 = vmatpush.msra.mxu2 %v324_v45  ;;  %v364_v9 = vld [vmem:[#allocation6 + $0x6b0] sm:$0xff] }
  0xf7   :  { %1084 = vmatpush.msra.mxu3 %v392_v46  ;;  %1026 = vmatpush.msra.mxu0 %v192_v19  ;;  %v164_v11 = vld [vmem:[#allocation6 + $0x70] sm:$0xff] }
  0xf8   :  { %1046 = vmatpush.msra.mxu1 %v256_v47  ;;  %1066 = vmatpush.msra.mxu2 %v320_v48  ;;  %v228_v12 = vld [vmem:[#allocation6 + $0x270] sm:$0xff] }
  0xf9   :  { %1085 = vmatpush.msra.mxu3 %v388_v49  ;;  %1027 = vmatpush.msra.mxu0 %v188_v24  ;;  %v292_v13 = vld [vmem:[#allocation6 + $0x470] sm:$0xff] }
  0xfa   :  { %1047 = vmatpush.msra.mxu1 %v252_v25  ;;  %1067 = vmatpush.msra.mxu2 %v316_v50  ;;  %v360_v14 = vld [vmem:[#allocation6 + $0x690] sm:$0xff] }
  0xfb   :  { %1086 = vmatpush.msra.mxu3 %v384_v51  ;;  %1028 = vmatpush.msra.mxu0 %v184_v52  ;;  %v160_v15 = vld [vmem:[#allocation6 + $0x50] sm:$0xff] }
  0xfc   :  { %1048 = vmatpush.msra.mxu1 %v248_v53  ;;  %1068 = vmatpush.msra.mxu2 %v312_v30  ;;  %v224_v16 = vld [vmem:[#allocation6 + $0x250] sm:$0xff] }
  0xfd   :  { %1087 = vmatpush.msra.mxu3 %v380_v54  ;;  %1029 = vmatpush.msra.mxu0 %v180_v55  ;;  %v288_v17 = vld [vmem:[#allocation6 + $0x450] sm:$0xff] }
  0xfe   :  { %1049 = vmatpush.msra.mxu1 %v244_v56  ;;  %1069 = vmatpush.msra.mxu2 %v308_v57  ;;  %v356_v18 = vld [vmem:[#allocation6 + $0x670] sm:$0xff] }
  0xff   :  { %1088 = vmatpush.msra.mxu3 %v376_v58  ;;  %1030 = vmatpush.msra.mxu0 %v176_v59  ;;  %v156_v20 = vld [vmem:[#allocation6 + $0x30] sm:$0xff] }
 0x100   :  { %1050 = vmatpush.msra.mxu1 %v240_v60  ;;  %1070 = vmatpush.msra.mxu2 %v304_v61  ;;  %v220_v21 = vld [vmem:[#allocation6 + $0x230] sm:$0xff] }
 0x101   :  { %1089 = vmatpush.msra.mxu3 %v372_v62  ;;  %1031 = vmatpush.msra.mxu0 %v172_v0  ;;  %v284_v22 = vld [vmem:[#allocation6 + $0x430] sm:$0xff] }
 0x102   :  { %1051 = vmatpush.msra.mxu1 %v236_v1  ;;  %1071 = vmatpush.msra.mxu2 %v300_v2  ;;  %v352_v23 = vld [vmem:[#allocation6 + $0x650] sm:$0xff] }
 0x103   :  { %1090 = vmatpush.msra.mxu3 %v368_v3  ;;  %1032 = vmatpush.msra.mxu0 %v168_v6  ;;  %v152_v26 = vld [vmem:[#allocation6 + $0x10] sm:$0xff] }
 0x104   :  { %1052 = vmatpush.msra.mxu1 %v232_v7  ;;  %1072 = vmatpush.msra.mxu2 %v296_v8  ;;  %v216_v27 = vld [vmem:[#allocation6 + $0x210] sm:$0xff] }
 0x105   :  { %1091 = vmatpush.msra.mxu3 %v364_v9  ;;  %1033 = vmatpush.msra.mxu0 %v164_v11  ;;  %v280_v28 = vld [vmem:[#allocation6 + $0x410] sm:$0xff] }
 0x106   :  { %1053 = vmatpush.msra.mxu1 %v228_v12  ;;  %1073 = vmatpush.msra.mxu2 %v292_v13  ;;  %v348_v29 = vld [vmem:[#allocation6 + $0x630] sm:$0xff] }
 0x107   :  { %1092 = vmatpush.msra.mxu3 %v360_v14  ;;  %1034 = vmatpush.msra.mxu0 %v160_v15  ;;  %v468_v31 = vld [vmem:[#allocation6 + $0x9f0] sm:$0xff]  ;;  %v2134_v15 = vld.sshfl [vmem:[#allocation1 + $0x10] sm:$0xff pattern:$0x73625140] }
 0x108   :  { %1054 = vmatpush.msra.mxu1 %v224_v16  ;;  %1074 = vmatpush.msra.mxu2 %v288_v17  ;;  %v532_v32 = vld [vmem:[#allocation6 + $0xbf0] sm:$0xff] }
 0x109   :  { %1093 = vmatpush.msra.mxu3 %v356_v18  ;;  %1035 = vmatpush.msra.mxu0 %v156_v20  ;;  %v596_v33 = vld [vmem:[#allocation6 + $0xdf0] sm:$0xff]  ;;  %v2137_v20 = vld.sshfl [vmem:[#allocation1] sm:$0xff pattern:$0x73625140] }
 0x10a   :  { %1055 = vmatpush.msra.mxu1 %v220_v21  ;;  %1075 = vmatpush.msra.mxu2 %v284_v22  ;;  %v344_v34 = vld [vmem:[#allocation6 + $0x610] sm:$0xff] }
 0x10b   :  { %1094 = vmatpush.msra.mxu3 %v352_v23  ;;  %1036 = vmatpush.msra.mxu0 %v152_v26  ;;  %v464_v63 = vld [vmem:[#allocation6 + $0x9d0] sm:$0xff] }
 0x10c   :  { %1056 = vmatpush.msra.mxu1 %v216_v27  ;;  %1076 = vmatpush.msra.mxu2 %v280_v28  ;;  %v528_v35 = vld [vmem:[#allocation6 + $0xbd0] sm:$0xff] }
 0x10d   :  { %1095 = vmatpush.msra.mxu3 %v348_v29  ;;  %1101 = vmatpush.msrb.mxu0 %v468_v31  ;;  %v592_v36 = vld [vmem:[#allocation6 + $0xdd0] sm:$0xff]  ;;  %v2143_v29 = vld.sshfl [vmem:[#allocation1 + $0x8] sm:$0xff pattern:$0x73625140] }
 0x10e   :  { %1121 = vmatpush.msrb.mxu1 %v532_v32  ;;  %v660_v37 = vld [vmem:[#allocation6 + $0xff0] sm:$0xff]  ;;  %1141 = vmatpush.msrb.mxu2 %v596_v33 }
 0x10f   :  { %1096 = vmatpush.msra.mxu3 %v344_v34  ;;  %v460_v4 = vld [vmem:[#allocation6 + $0x9b0] sm:$0xff]  ;;  %1102 = vmatpush.msrb.mxu0 %v464_v63  ;;  %v213_v63 = vld [vmem:[#allocation6 + $0x1f8] sm:$0xff] }
 0x110   :  { %v524_v5 = vld [vmem:[#allocation6 + $0xbb0] sm:$0xff]  ;;  %1122 = vmatpush.msrb.mxu1 %v528_v35  ;;  %1142 = vmatpush.msrb.mxu2 %v592_v36  ;;  %v277_v35 = vld [vmem:[#allocation6 + $0x3f8] sm:$0xff] }
 0x111   :  { %v588_v38 = vld [vmem:[#allocation6 + $0xdb0] sm:$0xff]  ;;  %1161 = vmatpush.msrb.mxu3 %v660_v37  ;;  %1103 = vmatpush.msrb.mxu0 %v460_v4  ;;  %v341_v36 = vld [vmem:[#allocation6 + $0x5f8] sm:$0xff]  ;;  %v2146_v4 = vld.sshfl [vmem:[#allocation1 + $0x30] sm:$0xff pattern:$0x73625140] }
 0x112   :  { %v656_v39 = vld [vmem:[#allocation6 + $0xfd0] sm:$0xff]  ;;  %1123 = vmatpush.msrb.mxu1 %v524_v5  ;;  %1143 = vmatpush.msrb.mxu2 %v588_v38  ;;  %v209_v5 = vld [vmem:[#allocation6 + $0x1d8] sm:$0xff] }
 0x113   :  { %v456_v10 = vld [vmem:[#allocation6 + $0x990] sm:$0xff]  ;;  %1162 = vmatpush.msrb.mxu3 %v656_v39  ;;  %1077 = vmatmul.f32.vlgmr.msra.gmra.mxu2 %v2134_v15  ;;  %v273_v38 = vld [vmem:[#allocation6 + $0x3d8] sm:$0xff] }
 0x114   :  { %v520_v40 = vld [vmem:[#allocation6 + $0xb90] sm:$0xff]  ;;  %1104 = vmatpush.msrb.mxu0 %v456_v10  ;;  %1057 = vmatmul.f32.vlgmr.msra.gmra.mxu1 %v2143_v29  ;;  %v337_v39 = vld [vmem:[#allocation6 + $0x5d8] sm:$0xff] }
 0x115   :  { %v584_v41 = vld [vmem:[#allocation6 + $0xd90] sm:$0xff]  ;;  %1124 = vmatpush.msrb.mxu1 %v520_v40  ;;  %1037 = vmatmul.f32.vlgmr.msra.gmra.mxu0 %v2137_v20  ;;  %v2149_v10 = vld.sshfl [vmem:[#allocation1 + $0x20] sm:$0xff pattern:$0x73625140] }
 0x116   :  { %v652_v42 = vld [vmem:[#allocation6 + $0xfb0] sm:$0xff]  ;;  %1144 = vmatpush.msrb.mxu2 %v584_v41  ;;  %v405_v40 = vld [vmem:[#allocation6 + $0x7f8] sm:$0xff] }
 0x117   :  { %v452_v43 = vld [vmem:[#allocation6 + $0x970] sm:$0xff]  ;;  %1163 = vmatpush.msrb.mxu3 %v652_v42  ;;  %v205_v42 = vld [vmem:[#allocation6 + $0x1b8] sm:$0xff] }
 0x118   :  { %v516_v44 = vld [vmem:[#allocation6 + $0xb70] sm:$0xff]  ;;  %1105 = vmatpush.msrb.mxu0 %v452_v43  ;;  %v269_v43 = vld [vmem:[#allocation6 + $0x3b8] sm:$0xff] }
 0x119   :  { %v580_v45 = vld [vmem:[#allocation6 + $0xd70] sm:$0xff]  ;;  %1125 = vmatpush.msrb.mxu1 %v516_v44  ;;  %v333_v44 = vld [vmem:[#allocation6 + $0x5b8] sm:$0xff] }
 0x11a   :  { %v648_v46 = vld [vmem:[#allocation6 + $0xf90] sm:$0xff]  ;;  %1145 = vmatpush.msrb.mxu2 %v580_v45  ;;  %v401_v45 = vld [vmem:[#allocation6 + $0x7d8] sm:$0xff] }
 0x11b   :  { %v448_v19 = vld [vmem:[#allocation6 + $0x950] sm:$0xff]  ;;  %1164 = vmatpush.msrb.mxu3 %v648_v46  ;;  %v2155_v46 = vld.sshfl [vmem:[#allocation1 + $0x28] sm:$0xff pattern:$0x73625140] }
 0x11c   :  { %v512_v47 = vld [vmem:[#allocation6 + $0xb50] sm:$0xff]  ;;  %1106 = vmatpush.msrb.mxu0 %v448_v19  ;;  %v201_v19 = vld [vmem:[#allocation6 + $0x198] sm:$0xff] }
 0x11d   :  { %v576_v48 = vld [vmem:[#allocation6 + $0xd50] sm:$0xff]  ;;  %1126 = vmatpush.msrb.mxu1 %v512_v47  ;;  %v265_v47 = vld [vmem:[#allocation6 + $0x398] sm:$0xff] }
 0x11e   :  { %v644_v49 = vld [vmem:[#allocation6 + $0xf70] sm:$0xff]  ;;  %1146 = vmatpush.msrb.mxu2 %v576_v48  ;;  %v329_v48 = vld [vmem:[#allocation6 + $0x598] sm:$0xff] }
 0x11f   :  { %v444_v24 = vld [vmem:[#allocation6 + $0x930] sm:$0xff]  ;;  %1165 = vmatpush.msrb.mxu3 %v644_v49  ;;  %v397_v49 = vld [vmem:[#allocation6 + $0x7b8] sm:$0xff] }
 0x120   :  { %v508_v25 = vld [vmem:[#allocation6 + $0xb30] sm:$0xff]  ;;  %1107 = vmatpush.msrb.mxu0 %v444_v24  ;;  %v197_v24 = vld [vmem:[#allocation6 + $0x178] sm:$0xff] }
 0x121   :  { %v572_v50 = vld [vmem:[#allocation6 + $0xd30] sm:$0xff]  ;;  %1127 = vmatpush.msrb.mxu1 %v508_v25  ;;  %v261_v25 = vld [vmem:[#allocation6 + $0x378] sm:$0xff] }
 0x122   :  { %v640_v51 = vld [vmem:[#allocation6 + $0xf50] sm:$0xff]  ;;  %1147 = vmatpush.msrb.mxu2 %v572_v50  ;;  %v325_v50 = vld [vmem:[#allocation6 + $0x578] sm:$0xff] }
 0x123   :  { %v440_v52 = vld [vmem:[#allocation6 + $0x910] sm:$0xff]  ;;  %1166 = vmatpush.msrb.mxu3 %v640_v51  ;;  %v393_v51 = vld [vmem:[#allocation6 + $0x798] sm:$0xff] }
 0x124   :  { %v504_v53 = vld [vmem:[#allocation6 + $0xb10] sm:$0xff]  ;;  %1108 = vmatpush.msrb.mxu0 %v440_v52  ;;  %v193_v52 = vld [vmem:[#allocation6 + $0x158] sm:$0xff] }
 0x125   :  { %v568_v30 = vld [vmem:[#allocation6 + $0xd10] sm:$0xff]  ;;  %1128 = vmatpush.msrb.mxu1 %v504_v53  ;;  %v257_v53 = vld [vmem:[#allocation6 + $0x358] sm:$0xff] }
 0x126   :  { %v636_v54 = vld [vmem:[#allocation6 + $0xf30] sm:$0xff]  ;;  %1148 = vmatpush.msrb.mxu2 %v568_v30  ;;  %v321_v30 = vld [vmem:[#allocation6 + $0x558] sm:$0xff] }
 0x127   :  { %v436_v55 = vld [vmem:[#allocation6 + $0x8f0] sm:$0xff]  ;;  %1167 = vmatpush.msrb.mxu3 %v636_v54  ;;  %v389_v54 = vld [vmem:[#allocation6 + $0x778] sm:$0xff] }
 0x128   :  { %v500_v56 = vld [vmem:[#allocation6 + $0xaf0] sm:$0xff]  ;;  %1109 = vmatpush.msrb.mxu0 %v436_v55  ;;  %v189_v55 = vld [vmem:[#allocation6 + $0x138] sm:$0xff] }
 0x129   :  { %v564_v57 = vld [vmem:[#allocation6 + $0xcf0] sm:$0xff]  ;;  %1129 = vmatpush.msrb.mxu1 %v500_v56  ;;  %v253_v56 = vld [vmem:[#allocation6 + $0x338] sm:$0xff] }
 0x12a   :  { %v632_v58 = vld [vmem:[#allocation6 + $0xf10] sm:$0xff]  ;;  %1149 = vmatpush.msrb.mxu2 %v564_v57  ;;  %v317_v57 = vld [vmem:[#allocation6 + $0x538] sm:$0xff] }
 0x12b   :  { %v432_v59 = vld [vmem:[#allocation6 + $0x8d0] sm:$0xff]  ;;  %1168 = vmatpush.msrb.mxu3 %v632_v58  ;;  %v385_v58 = vld [vmem:[#allocation6 + $0x758] sm:$0xff] }
 0x12c   :  { %v496_v60 = vld [vmem:[#allocation6 + $0xad0] sm:$0xff]  ;;  %1110 = vmatpush.msrb.mxu0 %v432_v59  ;;  %v185_v59 = vld [vmem:[#allocation6 + $0x118] sm:$0xff] }
 0x12d   :  { %v560_v61 = vld [vmem:[#allocation6 + $0xcd0] sm:$0xff]  ;;  %1130 = vmatpush.msrb.mxu1 %v496_v60  ;;  %v249_v60 = vld [vmem:[#allocation6 + $0x318] sm:$0xff] }
 0x12e   :  { %v628_v62 = vld [vmem:[#allocation6 + $0xef0] sm:$0xff]  ;;  %1150 = vmatpush.msrb.mxu2 %v560_v61  ;;  %v313_v61 = vld [vmem:[#allocation6 + $0x518] sm:$0xff] }
 0x12f   :  { %v428_v0 = vld [vmem:[#allocation6 + $0x8b0] sm:$0xff]  ;;  %1169 = vmatpush.msrb.mxu3 %v628_v62  ;;  %v381_v62 = vld [vmem:[#allocation6 + $0x738] sm:$0xff] }
 0x130   :  { %v492_v1 = vld [vmem:[#allocation6 + $0xab0] sm:$0xff]  ;;  %1111 = vmatpush.msrb.mxu0 %v428_v0  ;;  %v181_v0 = vld [vmem:[#allocation6 + $0xf8] sm:$0xff] }
 0x131   :  { %v556_v2 = vld [vmem:[#allocation6 + $0xcb0] sm:$0xff]  ;;  %1131 = vmatpush.msrb.mxu1 %v492_v1  ;;  %v245_v1 = vld [vmem:[#allocation6 + $0x2f8] sm:$0xff] }
 0x132   :  { %v624_v3 = vld [vmem:[#allocation6 + $0xed0] sm:$0xff]  ;;  %1151 = vmatpush.msrb.mxu2 %v556_v2  ;;  %v309_v2 = vld [vmem:[#allocation6 + $0x4f8] sm:$0xff] }
 0x133   :  { %v424_v6 = vld [vmem:[#allocation6 + $0x890] sm:$0xff]  ;;  %1170 = vmatpush.msrb.mxu3 %v624_v3  ;;  %v377_v3 = vld [vmem:[#allocation6 + $0x718] sm:$0xff] }
 0x134   :  { %v488_v7 = vld [vmem:[#allocation6 + $0xa90] sm:$0xff]  ;;  %1112 = vmatpush.msrb.mxu0 %v424_v6  ;;  %v177_v6 = vld [vmem:[#allocation6 + $0xd8] sm:$0xff] }
 0x135   :  { %v552_v8 = vld [vmem:[#allocation6 + $0xc90] sm:$0xff]  ;;  %1132 = vmatpush.msrb.mxu1 %v488_v7  ;;  %v241_v7 = vld [vmem:[#allocation6 + $0x2d8] sm:$0xff] }
 0x136   :  { %v620_v9 = vld [vmem:[#allocation6 + $0xeb0] sm:$0xff]  ;;  %1152 = vmatpush.msrb.mxu2 %v552_v8  ;;  %v305_v8 = vld [vmem:[#allocation6 + $0x4d8] sm:$0xff] }
 0x137   :  { %v420_v11 = vld [vmem:[#allocation6 + $0x870] sm:$0xff]  ;;  %1171 = vmatpush.msrb.mxu3 %v620_v9  ;;  %v373_v9 = vld [vmem:[#allocation6 + $0x6f8] sm:$0xff] }
 0x138   :  { %v484_v12 = vld [vmem:[#allocation6 + $0xa70] sm:$0xff]  ;;  %1113 = vmatpush.msrb.mxu0 %v420_v11  ;;  %v173_v11 = vld [vmem:[#allocation6 + $0xb8] sm:$0xff] }
 0x139   :  { %v548_v13 = vld [vmem:[#allocation6 + $0xc70] sm:$0xff]  ;;  %1133 = vmatpush.msrb.mxu1 %v484_v12  ;;  %v237_v12 = vld [vmem:[#allocation6 + $0x2b8] sm:$0xff] }
 0x13a   :  { %v616_v14 = vld [vmem:[#allocation6 + $0xe90] sm:$0xff]  ;;  %1153 = vmatpush.msrb.mxu2 %v548_v13  ;;  %v301_v13 = vld [vmem:[#allocation6 + $0x4b8] sm:$0xff] }
 0x13b   :  { %v416_v16 = vld [vmem:[#allocation6 + $0x850] sm:$0xff]  ;;  %1172 = vmatpush.msrb.mxu3 %v616_v14  ;;  %v369_v14 = vld [vmem:[#allocation6 + $0x6d8] sm:$0xff] }
 0x13c   :  { %v480_v17 = vld [vmem:[#allocation6 + $0xa50] sm:$0xff]  ;;  %1114 = vmatpush.msrb.mxu0 %v416_v16  ;;  %v169_v16 = vld [vmem:[#allocation6 + $0x98] sm:$0xff] }
 0x13d   :  { %v544_v18 = vld [vmem:[#allocation6 + $0xc50] sm:$0xff]  ;;  %1134 = vmatpush.msrb.mxu1 %v480_v17  ;;  %v233_v17 = vld [vmem:[#allocation6 + $0x298] sm:$0xff] }
 0x13e   :  { %v612_v21 = vld [vmem:[#allocation6 + $0xe70] sm:$0xff]  ;;  %1154 = vmatpush.msrb.mxu2 %v544_v18  ;;  %v297_v18 = vld [vmem:[#allocation6 + $0x498] sm:$0xff] }
 0x13f   :  { %v2140_v22 = vld.sshfl [vmem:[#allocation1 + $0x18] sm:$0xff pattern:$0x73625140]  ;;  %1173 = vmatpush.msrb.mxu3 %v612_v21  ;;  %v365_v21 = vld [vmem:[#allocation6 + $0x6b8] sm:$0xff] }
 0x140   :  { %1097 = vmatmul.f32.vlgmr.msra.gmra.mxu3 %v2140_v22  ;;  %v412_v23 = vld [vmem:[#allocation6 + $0x830] sm:$0xff] }
 0x141   :  { %v476_v26 = vld [vmem:[#allocation6 + $0xa30] sm:$0xff]  ;;  %1115 = vmatpush.msrb.mxu0 %v412_v23  ;;  %v165_v23 = vld [vmem:[#allocation6 + $0x78] sm:$0xff] }
 0x142   :  { %v540_v27 = vld [vmem:[#allocation6 + $0xc30] sm:$0xff]  ;;  %1135 = vmatpush.msrb.mxu1 %v476_v26  ;;  %v229_v26 = vld [vmem:[#allocation6 + $0x278] sm:$0xff] }
 0x143   :  { %v608_v28 = vld [vmem:[#allocation6 + $0xe50] sm:$0xff]  ;;  %1155 = vmatpush.msrb.mxu2 %v540_v27  ;;  %v293_v27 = vld [vmem:[#allocation6 + $0x478] sm:$0xff] }
 0x144   :  { %v408_v31 = vld [vmem:[#allocation6 + $0x810] sm:$0xff]  ;;  %1174 = vmatpush.msrb.mxu3 %v608_v28  ;;  %v361_v28 = vld [vmem:[#allocation6 + $0x698] sm:$0xff] }
 0x145   :  { %v472_v32 = vld [vmem:[#allocation6 + $0xa10] sm:$0xff]  ;;  %1116 = vmatpush.msrb.mxu0 %v408_v31  ;;  %v161_v31 = vld [vmem:[#allocation6 + $0x58] sm:$0xff] }
 0x146   :  { %v536_v33 = vld [vmem:[#allocation6 + $0xc10] sm:$0xff]  ;;  %1136 = vmatpush.msrb.mxu1 %v472_v32  ;;  %1117 = vmatmul.f32.vlgmr.msrb.gmra.mxu0 %v2149_v10  ;;  %v225_v32 = vld [vmem:[#allocation6 + $0x258] sm:$0xff] }
 0x147   :  { %v604_v34 = vld [vmem:[#allocation6 + $0xe30] sm:$0xff]  ;;  %1156 = vmatpush.msrb.mxu2 %v536_v33  ;;  %1181 = vmatpush.msra.mxu0 %v213_v63  ;;  %v289_v33 = vld [vmem:[#allocation6 + $0x458] sm:$0xff] }
 0x148   :  { %1175 = vmatpush.msrb.mxu3 %v604_v34  ;;  %v600_v37 = vld [vmem:[#allocation6 + $0xe10] sm:$0xff]  ;;  %1157 = vmatmul.f32.vlgmr.msrb.gmra.mxu2 %v2146_v4  ;;  %v357_v34 = vld [vmem:[#allocation6 + $0x678] sm:$0xff] }
 0x149   :  { %1201 = vmatpush.msra.mxu1 %v277_v35  ;;  %1221 = vmatpush.msra.mxu2 %v341_v36  ;;  %v2152_v41 = vld.sshfl [vmem:[#allocation1 + $0x38] sm:$0xff pattern:$0x73625140]  ;;  %v157_v63 = vld [vmem:[#allocation6 + $0x38] sm:$0xff] }
 0x14a   :  { %1176 = vmatpush.msrb.mxu3 %v600_v37  ;;  %1182 = vmatpush.msra.mxu0 %v209_v5  ;;  %v221_v35 = vld [vmem:[#allocation6 + $0x238] sm:$0xff] }
 0x14b   :  { %1177 = vmatmul.f32.vlgmr.msrb.gmra.mxu3 %v2152_v41  ;;  %1202 = vmatpush.msra.mxu1 %v273_v38  ;;  %v285_v36 = vld [vmem:[#allocation6 + $0x438] sm:$0xff] }
 0x14c   :  { %1222 = vmatpush.msra.mxu2 %v337_v39  ;;  %1241 = vmatpush.msra.mxu3 %v405_v40  ;;  %v353_v37 = vld [vmem:[#allocation6 + $0x658] sm:$0xff] }
 0x14d   :  { %1137 = vmatmul.f32.vlgmr.msrb.gmra.mxu1 %v2155_v46  ;;  %1183 = vmatpush.msra.mxu0 %v205_v42  ;;  %v153_v5 = vld [vmem:[#allocation6 + $0x18] sm:$0xff] }
 0x14e   :  { %1203 = vmatpush.msra.mxu1 %v269_v43  ;;  %1223 = vmatpush.msra.mxu2 %v333_v44  ;;  %v217_v38 = vld [vmem:[#allocation6 + $0x218] sm:$0xff] }
 0x14f   :  { %1242 = vmatpush.msra.mxu3 %v401_v45  ;;  %1184 = vmatpush.msra.mxu0 %v201_v19  ;;  %v281_v39 = vld [vmem:[#allocation6 + $0x418] sm:$0xff] }
 0x150   :  { %1204 = vmatpush.msra.mxu1 %v265_v47  ;;  %1224 = vmatpush.msra.mxu2 %v329_v48  ;;  %v349_v40 = vld [vmem:[#allocation6 + $0x638] sm:$0xff] }
 0x151   :  { %1243 = vmatpush.msra.mxu3 %v397_v49  ;;  %1185 = vmatpush.msra.mxu0 %v197_v24  ;;  %v469_v42 = vld [vmem:[#allocation6 + $0x9f8] sm:$0xff] }
 0x152   :  { %1205 = vmatpush.msra.mxu1 %v261_v25  ;;  %1225 = vmatpush.msra.mxu2 %v325_v50  ;;  %v533_v43 = vld [vmem:[#allocation6 + $0xbf8] sm:$0xff] }
 0x153   :  { %1244 = vmatpush.msra.mxu3 %v393_v51  ;;  %1186 = vmatpush.msra.mxu0 %v193_v52  ;;  %v597_v44 = vld [vmem:[#allocation6 + $0xdf8] sm:$0xff] }
 0x154   :  { %1206 = vmatpush.msra.mxu1 %v257_v53  ;;  %1226 = vmatpush.msra.mxu2 %v321_v30  ;;  %v345_v45 = vld [vmem:[#allocation6 + $0x618] sm:$0xff] }
 0x155   :  { %1245 = vmatpush.msra.mxu3 %v389_v54  ;;  %1187 = vmatpush.msra.mxu0 %v189_v55  ;;  %v465_v19 = vld [vmem:[#allocation6 + $0x9d8] sm:$0xff] }
 0x156   :  { %1207 = vmatpush.msra.mxu1 %v253_v56  ;;  %1227 = vmatpush.msra.mxu2 %v317_v57  ;;  %v529_v47 = vld [vmem:[#allocation6 + $0xbd8] sm:$0xff] }
 0x157   :  { %1246 = vmatpush.msra.mxu3 %v385_v58  ;;  %1188 = vmatpush.msra.mxu0 %v185_v59  ;;  %v593_v48 = vld [vmem:[#allocation6 + $0xdd8] sm:$0xff] }
 0x158   :  { %1208 = vmatpush.msra.mxu1 %v249_v60  ;;  %1228 = vmatpush.msra.mxu2 %v313_v61  ;;  %v661_v49 = vld [vmem:[#allocation6 + $0xff8] sm:$0xff]  ;;  %v2158_v61 = vpop.f32.mrf.mxu1 }
 0x159   :  { %1247 = vmatpush.msra.mxu3 %v381_v62  ;;  %1189 = vmatpush.msra.mxu0 %v181_v0  ;;  %v461_v24 = vld [vmem:[#allocation6 + $0x9b8] sm:$0xff] }
 0x15a   :  { %1209 = vmatpush.msra.mxu1 %v245_v1  ;;  %1229 = vmatpush.msra.mxu2 %v309_v2  ;;  %v525_v25 = vld [vmem:[#allocation6 + $0xbb8] sm:$0xff] }
 0x15b   :  { %1248 = vmatpush.msra.mxu3 %v377_v3  ;;  %1190 = vmatpush.msra.mxu0 %v177_v6  ;;  %v589_v50 = vld [vmem:[#allocation6 + $0xdb8] sm:$0xff]  ;;  %v2160_v3 = vpop.f32.mrf.mxu0 }
 0x15c   :  { %1210 = vmatpush.msra.mxu1 %v241_v7  ;;  %1230 = vmatpush.msra.mxu2 %v305_v8  ;;  %v657_v51 = vld [vmem:[#allocation6 + $0xfd8] sm:$0xff] }
 0x15d   :  { %1249 = vmatpush.msra.mxu3 %v373_v9  ;;  %1191 = vmatpush.msra.mxu0 %v173_v11  ;;  %v457_v52 = vld [vmem:[#allocation6 + $0x998] sm:$0xff]  ;;  %v2162_v11 = vpop.f32.mrf.mxu2 }
 0x15e   :  { %1211 = vmatpush.msra.mxu1 %v237_v12  ;;  %1231 = vmatpush.msra.mxu2 %v301_v13  ;;  %v521_v53 = vld [vmem:[#allocation6 + $0xb98] sm:$0xff] }
 0x15f   :  { %1250 = vmatpush.msra.mxu3 %v369_v14  ;;  %1192 = vmatpush.msra.mxu0 %v169_v16  ;;  %v585_v30 = vld [vmem:[#allocation6 + $0xd98] sm:$0xff] }
 0x160   :  { %1212 = vmatpush.msra.mxu1 %v233_v17  ;;  %1232 = vmatpush.msra.mxu2 %v297_v18  ;;  %v653_v54 = vld [vmem:[#allocation6 + $0xfb8] sm:$0xff] }
 0x161   :  { %1251 = vmatpush.msra.mxu3 %v365_v21  ;;  %1193 = vmatpush.msra.mxu0 %v165_v23  ;;  %v453_v55 = vld [vmem:[#allocation6 + $0x978] sm:$0xff] }
 0x162   :  { %1213 = vmatpush.msra.mxu1 %v229_v26  ;;  %1233 = vmatpush.msra.mxu2 %v293_v27  ;;  %v517_v56 = vld [vmem:[#allocation6 + $0xb78] sm:$0xff]  ;;  %v2164_v26 = vpop.f32.mrf.mxu3 }
 0x163   :  { %1252 = vmatpush.msra.mxu3 %v361_v28  ;;  %1194 = vmatpush.msra.mxu0 %v161_v31  ;;  %v581_v57 = vld [vmem:[#allocation6 + $0xd78] sm:$0xff] }
 0x164   :  { %1214 = vmatpush.msra.mxu1 %v225_v32  ;;  %1234 = vmatpush.msra.mxu2 %v289_v33  ;;  %v649_v58 = vld [vmem:[#allocation6 + $0xf98] sm:$0xff]  ;;  %v2166_v33 = vpop.f32.mrf.mxu1 }
 0x165   :  { %1253 = vmatpush.msra.mxu3 %v357_v34  ;;  %1195 = vmatpush.msra.mxu0 %v157_v63  ;;  %v449_v59 = vld [vmem:[#allocation6 + $0x958] sm:$0xff] }
 0x166   :  { %1215 = vmatpush.msra.mxu1 %v221_v35  ;;  %1235 = vmatpush.msra.mxu2 %v285_v36  ;;  %v513_v60 = vld [vmem:[#allocation6 + $0xb58] sm:$0xff]  ;;  %v2168_v36 = vpop.f32.mrf.mxu0 }
 0x167   :  { %1254 = vmatpush.msra.mxu3 %v353_v37  ;;  %1196 = vmatpush.msra.mxu0 %v153_v5  ;;  %v577_v62 = vld [vmem:[#allocation6 + $0xd58] sm:$0xff] }
 0x168   :  { %1216 = vmatpush.msra.mxu1 %v217_v38  ;;  %1236 = vmatpush.msra.mxu2 %v281_v39  ;;  %v645_v0 = vld [vmem:[#allocation6 + $0xf78] sm:$0xff]  ;;  %v2170_v39 = vpop.f32.mrf.mxu2 }
 0x169   :  { %1255 = vmatpush.msra.mxu3 %v349_v40  ;;  %1261 = vmatpush.msrb.mxu0 %v469_v42  ;;  %v445_v1 = vld [vmem:[#allocation6 + $0x938] sm:$0xff] }
 0x16a   :  { %1281 = vmatpush.msrb.mxu1 %v533_v43  ;;  %1301 = vmatpush.msrb.mxu2 %v597_v44  ;;  %v509_v2 = vld [vmem:[#allocation6 + $0xb38] sm:$0xff] }
 0x16b   :  { %1256 = vmatpush.msra.mxu3 %v345_v45  ;;  %1262 = vmatpush.msrb.mxu0 %v465_v19  ;;  %v573_v6 = vld [vmem:[#allocation6 + $0xd38] sm:$0xff] }
 0x16c   :  { %1282 = vmatpush.msrb.mxu1 %v529_v47  ;;  %1302 = vmatpush.msrb.mxu2 %v593_v48  ;;  %v641_v7 = vld [vmem:[#allocation6 + $0xf58] sm:$0xff]  ;;  %v2175_v47 = vpop.f32.mrf.mxu3 }
 0x16d   :  { %1321 = vmatpush.msrb.mxu3 %v661_v49  ;;  %1263 = vmatpush.msrb.mxu0 %v461_v24  ;;  %v441_v8 = vld [vmem:[#allocation6 + $0x918] sm:$0xff]  ;;  %v898_v49 = vpop.f32.mrf.mxu1 }
 0x16e   :  { %1283 = vmatpush.msrb.mxu1 %v525_v25  ;;  %1303 = vmatpush.msrb.mxu2 %v589_v50  ;;  %v505_v9 = vld [vmem:[#allocation6 + $0xb18] sm:$0xff] }
 0x16f   :  { %1322 = vmatpush.msrb.mxu3 %v657_v51  ;;  %1264 = vmatpush.msrb.mxu0 %v457_v52  ;;  %v569_v12 = vld [vmem:[#allocation6 + $0xd18] sm:$0xff]  ;;  %v878_v51 = vpop.f32.mrf.mxu0 }
 0x170   :  { %1284 = vmatpush.msrb.mxu1 %v521_v53  ;;  %1304 = vmatpush.msrb.mxu2 %v585_v30  ;;  %v637_v13 = vld [vmem:[#allocation6 + $0xf38] sm:$0xff]  ;;  %v899_v30 = vadd.f32 %v898_v49, %v878_v51 }
 0x171   :  { %1323 = vmatpush.msrb.mxu3 %v653_v54  ;;  %1265 = vmatpush.msrb.mxu0 %v453_v55  ;;  %v437_v14 = vld [vmem:[#allocation6 + $0x8f8] sm:$0xff] }
 0x172   :  { %1285 = vmatpush.msrb.mxu1 %v517_v56  ;;  %1305 = vmatpush.msrb.mxu2 %v581_v57  ;;  %v501_v16 = vld [vmem:[#allocation6 + $0xaf8] sm:$0xff] }
 0x173   :  { %1324 = vmatpush.msrb.mxu3 %v649_v58  ;;  %1266 = vmatpush.msrb.mxu0 %v449_v59  ;;  %v565_v17 = vld [vmem:[#allocation6 + $0xcf8] sm:$0xff] }
 0x174   :  { %1286 = vmatpush.msrb.mxu1 %v513_v60  ;;  %1306 = vmatpush.msrb.mxu2 %v577_v62  ;;  %v633_v18 = vld [vmem:[#allocation6 + $0xf18] sm:$0xff]  ;;  %v938_v62 = vpop.f32.mrf.mxu3 }
 0x175   :  { %1325 = vmatpush.msrb.mxu3 %v645_v0  ;;  %1267 = vmatpush.msrb.mxu0 %v445_v1  ;;  %v433_v21 = vld [vmem:[#allocation6 + $0x8d8] sm:$0xff]  ;;  %v1438_v0 = vld [vmem:[#allocation9 + $0x1e0] sm:$0xff] }
 0x176   :  { %1287 = vmatpush.msrb.mxu1 %v509_v2  ;;  %1307 = vmatpush.msrb.mxu2 %v573_v6  ;;  %v497_v23 = vld [vmem:[#allocation6 + $0xad8] sm:$0xff] }
 0x177   :  { %1326 = vmatpush.msrb.mxu3 %v641_v7  ;;  %1268 = vmatpush.msrb.mxu0 %v441_v8  ;;  %v561_v27 = vld [vmem:[#allocation6 + $0xcd8] sm:$0xff]  ;;  %v958_v8 = vpop.f32.mrf.mxu0 }
 0x178   :  { %1288 = vmatpush.msrb.mxu1 %v505_v9  ;;  %1308 = vmatpush.msrb.mxu2 %v569_v12  ;;  %v629_v28 = vld [vmem:[#allocation6 + $0xef8] sm:$0xff]  ;;  %v1434_v9 = vld [vmem:[#allocation9 + $0x1c0] sm:$0xff] }
 0x179   :  { %1327 = vmatpush.msrb.mxu3 %v637_v13  ;;  %1269 = vmatpush.msrb.mxu0 %v437_v14  ;;  %v429_v31 = vld [vmem:[#allocation6 + $0x8b8] sm:$0xff] }
 0x17a   :  { %1289 = vmatpush.msrb.mxu1 %v501_v16  ;;  %1309 = vmatpush.msrb.mxu2 %v565_v17  ;;  %v493_v32 = vld [vmem:[#allocation6 + $0xab8] sm:$0xff]  ;;  %v978_v16 = vpop.f32.mrf.mxu1  ;;  %v1398_v17 = vld [vmem:[#allocation9 + $0xa0] sm:$0xff] }
 0x17b   :  { %1328 = vmatpush.msrb.mxu3 %v633_v18  ;;  %1270 = vmatpush.msrb.mxu0 %v433_v21  ;;  %v557_v34 = vld [vmem:[#allocation6 + $0xcb8] sm:$0xff]  ;;  %v1430_v18 = vld [vmem:[#allocation9 + $0x1a0] sm:$0xff] }
 0x17c   :  { %1290 = vmatpush.msrb.mxu1 %v497_v23  ;;  %v625_v63 = vld [vmem:[#allocation6 + $0xed8] sm:$0xff]  ;;  %1310 = vmatpush.msrb.mxu2 %v561_v27 }
 0x17d   :  { %1329 = vmatpush.msrb.mxu3 %v629_v28  ;;  %v425_v35 = vld [vmem:[#allocation6 + $0x898] sm:$0xff]  ;;  %1271 = vmatpush.msrb.mxu0 %v429_v31  ;;  %v1462_v31 = vld [vmem:[#allocation9 + $0x2a0] sm:$0xff] }
 0x17e   :  { %1291 = vmatpush.msrb.mxu1 %v493_v32  ;;  %v489_v37 = vld [vmem:[#allocation6 + $0xa98] sm:$0xff]  ;;  %1311 = vmatpush.msrb.mxu2 %v557_v34  ;;  %v1394_v34 = vld [vmem:[#allocation9 + $0x80] sm:$0xff] }
 0x17f   :  { %v553_v5 = vld [vmem:[#allocation6 + $0xc98] sm:$0xff]  ;;  %1330 = vmatpush.msrb.mxu3 %v625_v63  ;;  %1237 = vmatmul.f32.vlgmr.msra.gmra.mxu2 %v2134_v15  ;;  %v1426_v63 = vld [vmem:[#allocation9 + $0x180] sm:$0xff] }
 0x180   :  { %v621_v38 = vld [vmem:[#allocation6 + $0xeb8] sm:$0xff]  ;;  %1272 = vmatpush.msrb.mxu0 %v425_v35  ;;  %1292 = vmatpush.msrb.mxu1 %v489_v37 }
 0x181   :  { %v421_v40 = vld [vmem:[#allocation6 + $0x878] sm:$0xff]  ;;  %1312 = vmatpush.msrb.mxu2 %v553_v5  ;;  %1331 = vmatpush.msrb.mxu3 %v621_v38 }
 0x182   :  { %v485_v42 = vld [vmem:[#allocation6 + $0xa78] sm:$0xff]  ;;  %1197 = vmatmul.f32.vlgmr.msra.gmra.mxu0 %v2137_v20  ;;  %1257 = vmatmul.f32.vlgmr.msra.gmra.mxu3 %v2140_v22  ;;  %v739_v20 = vadd.f32 %v2158_v61, %v2160_v3  ;;  %v1406_v61 = vld [vmem:[#allocation9 + $0xe0] sm:$0xff] }
 0x183   :  { %v549_v43 = vld [vmem:[#allocation6 + $0xc78] sm:$0xff]  ;;  %1273 = vmatpush.msrb.mxu0 %v421_v40  ;;  %1293 = vmatpush.msrb.mxu1 %v485_v42  ;;  %v1458_v40 = vld [vmem:[#allocation9 + $0x280] sm:$0xff]  ;;  %v1018_v42 = vpop.f32.mrf.mxu3 }
 0x184   :  { %v617_v44 = vld [vmem:[#allocation6 + $0xe98] sm:$0xff]  ;;  %1313 = vmatpush.msrb.mxu2 %v549_v43  ;;  %1217 = vmatmul.f32.vlgmr.msra.gmra.mxu1 %v2143_v29  ;;  %v918_v29 = vpop.f32.mrf.mxu2  ;;  %v759_v56 = vadd.f32 %v2162_v11, %v739_v20  ;;  %v1390_v43 = vld [vmem:[#allocation9 + $0x60] sm:$0xff] }
 0x185   :  { %v417_v45 = vld [vmem:[#allocation6 + $0x858] sm:$0xff]  ;;  %1332 = vmatpush.msrb.mxu3 %v617_v44  ;;  %v919_v60 = vadd.f32 %v918_v29, %v899_v30  ;;  %v1422_v44 = vld [vmem:[#allocation9 + $0x160] sm:$0xff] }
 0x186   :  { %v481_v19 = vld [vmem:[#allocation6 + $0xa58] sm:$0xff]  ;;  %1274 = vmatpush.msrb.mxu0 %v417_v45  ;;  %v779_v2 = vadd.f32 %v2164_v26, %v759_v56  ;;  %v1386_v20 = vld [vmem:[#allocation9 + $0x40] sm:$0xff] }
 0x187   :  { %v545_v15 = vld [vmem:[#allocation6 + $0xc58] sm:$0xff]  ;;  %1294 = vmatpush.msrb.mxu1 %v481_v19  ;;  %v939_v7 = vadd.f32 %v938_v62, %v919_v60  ;;  %v1450_v30 = vld [vmem:[#allocation9 + $0x240] sm:$0xff] }
 0x188   :  { %v613_v48 = vld [vmem:[#allocation6 + $0xe78] sm:$0xff]  ;;  %1314 = vmatpush.msrb.mxu2 %v545_v15  ;;  %v799_v12 = vadd.f32 %v2168_v36, %v779_v2  ;;  %v1446_v60 = vld [vmem:[#allocation9 + $0x220] sm:$0xff] }
 0x189   :  { %v413_v24 = vld [vmem:[#allocation6 + $0x838] sm:$0xff]  ;;  %1333 = vmatpush.msrb.mxu3 %v613_v48  ;;  %v1410_v62 = vld [vmem:[#allocation9 + $0x100] sm:$0xff] }
 0x18a   :  { %v477_v25 = vld [vmem:[#allocation6 + $0xa38] sm:$0xff]  ;;  %1275 = vmatpush.msrb.mxu0 %v413_v24  ;;  %v819_v23 = vadd.f32 %v2166_v33, %v799_v12  ;;  %v2189_v33 = vld [vmem:[#allocation8] sm:$0xf]  ;;  %v1403_v12 = vld [vmem:[#allocation9 + $0xc8] sm:$0xff] }
 0x18b   :  { %v541_v22 = vld [vmem:[#allocation6 + $0xc38] sm:$0xff]  ;;  %1295 = vmatpush.msrb.mxu1 %v477_v25  ;;  %v1359_v49 = vperm.slane %v2189_v33, 1  ;;  %v1454_v25 = vld [vmem:[#allocation9 + $0x260] sm:$0xff] }
 0x18c   :  { %v609_v50 = vld [vmem:[#allocation6 + $0xe58] sm:$0xff]  ;;  %1315 = vmatpush.msrb.mxu2 %v541_v22  ;;  %v998_v32 = vpop.f32.mrf.mxu2  ;;  %v839_v36 = vadd.f32 %v2170_v39, %v819_v23  ;;  %v1358_v39 = vperm.slane %v2189_v33, 0  ;;  %v1418_v22 = vld [vmem:[#allocation9 + $0x140] sm:$0xff] }
 0x18d   :  { %v409_v52 = vld [vmem:[#allocation6 + $0x818] sm:$0xff]  ;;  %1334 = vmatpush.msrb.mxu3 %v609_v50 }
 0x18e   :  { %v473_v53 = vld [vmem:[#allocation6 + $0xa18] sm:$0xff]  ;;  %1276 = vmatpush.msrb.mxu0 %v409_v52  ;;  %v859_v19 = vadd.f32 %v2175_v47, %v839_v36 }
 0x18f   :  { %v537_v54 = vld [vmem:[#allocation6 + $0xc18] sm:$0xff]  ;;  %1296 = vmatpush.msrb.mxu1 %v473_v53  ;;  %1277 = vmatmul.f32.vlgmr.msrb.gmra.mxu0 %v2149_v10  ;;  %v1470_v10 = vld [vmem:[#allocation9 + $0x2e0] sm:$0xff] }
 0x190   :  { %v605_v55 = vld [vmem:[#allocation6 + $0xe38] sm:$0xff]  ;;  %1316 = vmatpush.msrb.mxu2 %v537_v54  ;;  %1297 = vmatmul.f32.vlgmr.msrb.gmra.mxu1 %v2155_v46  ;;  %v959_v46 = vadd.f32 %v958_v8, %v939_v7  ;;  %v1366_v51 = vadd.f32 %v1358_v39, %v859_v19  ;;  %v1382_v54 = vld [vmem:[#allocation9 + $0x20] sm:$0xff]  ;;  %v1407_v7 = vld [vmem:[#allocation9 + $0xe8] sm:$0xff] }
 0x191   :  { %v1408_v57 = vld [vmem:[#allocation9 + $0xf0] sm:$0xff]  ;;  %1335 = vmatpush.msrb.mxu3 %v605_v55  ;;  %1317 = vmatmul.f32.vlgmr.msrb.gmra.mxu2 %v2146_v4  ;;  %v1402_v4 = vld [vmem:[#allocation9 + $0xc0] sm:$0xff]  ;;  %v1405_v8 = vld [vmem:[#allocation9 + $0xd8] sm:$0xff] }
 0x192   :  { %v1440_v58 = vld [vmem:[#allocation9 + $0x1f0] sm:$0xff]  ;;  %1512 = vmatpush.msra.mxu0 %v1408_v57  ;;  %v979_v27 = vadd.f32 %v978_v16, %v959_v46  ;;  %v1414_v55 = vld [vmem:[#allocation9 + $0x120] sm:$0xff]  ;;  %v1370_v56 = vmul.f32 0.2, %v1366_v51  ;;  %v1435_v46 = vld [vmem:[#allocation9 + $0x1c8] sm:$0xff] }
 0x193   :  { %v601_v59 = vld [vmem:[#allocation6 + $0xe18] sm:$0xff]  ;;  %1532 = vmatpush.msra.mxu1 %v1440_v58  ;;  %v1387_v39 = vld [vmem:[#allocation9 + $0x48] sm:$0xff] }
 0x194   :  { %v1472_v1 = vld [vmem:[#allocation9 + $0x2f0] sm:$0xff]  ;;  %1336 = vmatpush.msrb.mxu3 %v601_v59  ;;  %1513 = vmatpush.msra.mxu0 %v1406_v61  ;;  %v999_v5 = vadd.f32 %v998_v32, %v979_v27  ;;  %v1378_v61 = vld [vmem:[#allocation9] sm:$0xff]  ;;  %v1433_v16 = vld [vmem:[#allocation9 + $0x1b8] sm:$0xff] }
 0x195   :  { %v1404_v3 = vld [vmem:[#allocation9 + $0xd0] sm:$0xff]  ;;  %1337 = vmatmul.f32.vlgmr.msrb.gmra.mxu3 %v2152_v41  ;;  %1533 = vmatpush.msra.mxu1 %v1438_v0  ;;  %v1466_v41 = vld [vmem:[#allocation9 + $0x2c0] sm:$0xff]  ;;  %v2194_v0 = vmax.f32 %v1366_v51, %v1370_v56  ;;  %v1397_v23 = vld [vmem:[#allocation9 + $0x98] sm:$0xff] }
 0x196   :  { %v1436_v6 = vld [vmem:[#allocation9 + $0x1d0] sm:$0xff]  ;;  %1552 = vmatpush.msra.mxu2 %v1472_v1  ;;  %1514 = vmatpush.msra.mxu0 %v1404_v3  ;;  %v1019_v48 = vadd.f32 %v1018_v42, %v999_v5  ;;  %v1409_v1 = vld [vmem:[#allocation9 + $0xf8] sm:$0xff]  ;;  %v1459_v5 = vld [vmem:[#allocation9 + $0x288] sm:$0xff] }
 0x197   :  { %v1468_v11 = vld [vmem:[#allocation9 + $0x2d0] sm:$0xff]  ;;  %1534 = vmatpush.msra.mxu1 %v1436_v6  ;;  %v1441_v3 = vld [vmem:[#allocation9 + $0x1f8] sm:$0xff]  ;;  %v1494_v56 = vld [vmem:[#allocation9 + $0x3a0] sm:$0xff] }
 0x198   :  { %v1400_v13 = vld [vmem:[#allocation9 + $0xb0] sm:$0xff]  ;;  %1553 = vmatpush.msra.mxu2 %v1470_v10  ;;  %1515 = vmatpush.msra.mxu0 %v1402_v4  ;;  %v1367_v52 = vadd.f32 %v1359_v49, %v1019_v48  ;;  %v1439_v10 = vld [vmem:[#allocation9 + $0x1e8] sm:$0xff]  ;;  %v1442_v4 = vld [vmem:[#allocation9 + $0x200] sm:$0xff] }
 0x199   :  { %v1432_v14 = vld [vmem:[#allocation9 + $0x1b0] sm:$0xff]  ;;  %1535 = vmatpush.msra.mxu1 %v1434_v9  ;;  %v1473_v9 = vld [vmem:[#allocation9 + $0x2f8] sm:$0xff]  ;;  %v1455_v48 = vld [vmem:[#allocation9 + $0x268] sm:$0xff] }
 0x19a   :  { %1554 = vmatpush.msra.mxu2 %v1468_v11  ;;  %1516 = vmatpush.msra.mxu0 %v1400_v13  ;;  %v1464_v21 = vld [vmem:[#allocation9 + $0x2b0] sm:$0xff]  ;;  %v1371_v58 = vmul.f32 0.2, %v1367_v52  ;;  %v1437_v11 = vld [vmem:[#allocation9 + $0x1d8] sm:$0xff]  ;;  %v1471_v13 = vld [vmem:[#allocation9 + $0x2e8] sm:$0xff] }
 0x19b   :  { %1536 = vmatpush.msra.mxu1 %v1432_v14  ;;  %v1396_v26 = vld [vmem:[#allocation9 + $0x90] sm:$0xff]  ;;  %v1401_v14 = vld [vmem:[#allocation9 + $0xb8] sm:$0xff]  ;;  %v1419_v49 = vld [vmem:[#allocation9 + $0x148] sm:$0xff] }
 0x19c   :  { %1555 = vmatpush.msra.mxu2 %v1466_v41  ;;  %1517 = vmatpush.msra.mxu0 %v1398_v17  ;;  %v1428_v28 = vld [vmem:[#allocation9 + $0x190] sm:$0xff]  ;;  %v2196_v2 = vmax.f32 %v1367_v52, %v1371_v58  ;;  %v1469_v41 = vld [vmem:[#allocation9 + $0x2d8] sm:$0xff]  ;;  %v1399_v17 = vld [vmem:[#allocation9 + $0xa8] sm:$0xff] }
 0x19d   :  { %1537 = vmatpush.msra.mxu1 %v1430_v18  ;;  %v1460_v35 = vld [vmem:[#allocation9 + $0x290] sm:$0xff]  ;;  %v1467_v18 = vld [vmem:[#allocation9 + $0x2c8] sm:$0xff]  ;;  %v1429_v27 = vld [vmem:[#allocation9 + $0x198] sm:$0xff] }
 0x19e   :  { %1556 = vmatpush.msra.mxu2 %v1464_v21  ;;  %1518 = vmatpush.msra.mxu0 %v1396_v26  ;;  %v1392_v37 = vld [vmem:[#allocation9 + $0x70] sm:$0xff]  ;;  %v1431_v21 = vld [vmem:[#allocation9 + $0x1a8] sm:$0xff]  ;;  %v1465_v26 = vld [vmem:[#allocation9 + $0x2b8] sm:$0xff] }
 0x19f   :  { %1538 = vmatpush.msra.mxu1 %v1428_v28  ;;  %v1424_v38 = vld [vmem:[#allocation9 + $0x170] sm:$0xff]  ;;  %v1395_v28 = vld [vmem:[#allocation9 + $0x88] sm:$0xff]  ;;  %v1425_v36 = vld [vmem:[#allocation9 + $0x178] sm:$0xff] }
 0x1a0   :  { %1557 = vmatpush.msra.mxu2 %v1462_v31  ;;  %1519 = vmatpush.msra.mxu0 %v1394_v34  ;;  %v1456_v45 = vld [vmem:[#allocation9 + $0x270] sm:$0xff]  ;;  %v1463_v31 = vld [vmem:[#allocation9 + $0x2a8] sm:$0xff]  ;;  %v1389_v42 = vld [vmem:[#allocation9 + $0x58] sm:$0xff] }
 0x1a1   :  { %1539 = vmatpush.msra.mxu1 %v1426_v63  ;;  %v1388_v15 = vld [vmem:[#allocation9 + $0x50] sm:$0xff]  ;;  %v1427_v34 = vld [vmem:[#allocation9 + $0x188] sm:$0xff]  ;;  %v1393_v63 = vld [vmem:[#allocation9 + $0x78] sm:$0xff] }
 0x1a2   :  { %1558 = vmatpush.msra.mxu2 %v1460_v35  ;;  %1520 = vmatpush.msra.mxu0 %v1392_v37  ;;  %v1420_v24 = vld [vmem:[#allocation9 + $0x150] sm:$0xff]  ;;  %v1461_v35 = vld [vmem:[#allocation9 + $0x298] sm:$0xff]  ;;  %v1391_v37 = vld [vmem:[#allocation9 + $0x68] sm:$0xff] }
 0x1a3   :  { %1540 = vmatpush.msra.mxu1 %v1424_v38  ;;  %v1452_v50 = vld [vmem:[#allocation9 + $0x250] sm:$0xff]  ;;  %v1423_v38 = vld [vmem:[#allocation9 + $0x168] sm:$0xff]  ;;  %v1417_v51 = vld [vmem:[#allocation9 + $0x138] sm:$0xff] }
 0x1a4   :  { %1559 = vmatpush.msra.mxu2 %v1458_v40  ;;  %1521 = vmatpush.msra.mxu0 %v1390_v43  ;;  %v1384_v47 = vld [vmem:[#allocation9 + $0x30] sm:$0xff]  ;;  %v1038_v40 = vpop.f32.mrf.mxu0  ;;  %v1457_v43 = vld [vmem:[#allocation9 + $0x278] sm:$0xff] }
 0x1a5   :  { %1541 = vmatpush.msra.mxu1 %v1422_v44  ;;  %v1416_v53 = vld [vmem:[#allocation9 + $0x130] sm:$0xff]  ;;  %v1421_v44 = vld [vmem:[#allocation9 + $0x158] sm:$0xff] }
 0x1a6   :  { %1560 = vmatpush.msra.mxu2 %v1456_v45  ;;  %1522 = vmatpush.msra.mxu0 %v1388_v15  ;;  %v1448_v29 = vld [vmem:[#allocation9 + $0x230] sm:$0xff]  ;;  %v1502_v45 = vld [vmem:[#allocation9 + $0x3e0] sm:$0xff]  ;;  %v1058_v15 = vpop.f32.mrf.mxu1  ;;  %v1449_v58 = vld [vmem:[#allocation9 + $0x238] sm:$0xff] }
 0x1a7   :  { %1542 = vmatpush.msra.mxu1 %v1420_v24  ;;  %v1380_v57 = vld [vmem:[#allocation9 + $0x10] sm:$0xff]  ;;  %v1059_v24 = vadd.f32 %v1058_v15, %v1038_v40  ;;  %v1487_v40 = vld [vmem:[#allocation9 + $0x368] sm:$0xff] }
 0x1a8   :  { %1561 = vmatpush.msra.mxu2 %v1454_v25  ;;  %1523 = vmatpush.msra.mxu0 %v1386_v20  ;;  %v1412_v59 = vld [vmem:[#allocation9 + $0x110] sm:$0xff]  ;;  %v1078_v25 = vpop.f32.mrf.mxu2  ;;  %v1498_v20 = vld [vmem:[#allocation9 + $0x3c0] sm:$0xff]  ;;  %v1475_v15 = vld [vmem:[#allocation9 + $0x308] sm:$0xff] }
 0x1a9   :  { %1543 = vmatpush.msra.mxu1 %v1418_v22  ;;  %v1444_v6 = vld [vmem:[#allocation9 + $0x210] sm:$0xff]  ;;  %v1385_v22 = vld [vmem:[#allocation9 + $0x38] sm:$0xff] }
 0x1aa   :  { %1562 = vmatpush.msra.mxu2 %v1452_v50  ;;  %1524 = vmatpush.msra.mxu0 %v1384_v47  ;;  %v1504_v32 = vld [vmem:[#allocation9 + $0x3f0] sm:$0xff]  ;;  %v1453_v50 = vld [vmem:[#allocation9 + $0x258] sm:$0xff]  ;;  %v1079_v47 = vadd.f32 %v1078_v25, %v1059_v24 }
 0x1ab   :  { %1544 = vmatpush.msra.mxu1 %v1416_v53  ;;  %1572 = vmatpush.msra.mxu3 %v1504_v32  ;;  %v1500_v19 = vld [vmem:[#allocation9 + $0x3d0] sm:$0xff]  ;;  %v1383_v53 = vld [vmem:[#allocation9 + $0x28] sm:$0xff] }
 0x1ac   :  { %1563 = vmatpush.msra.mxu2 %v1450_v30  ;;  %1525 = vmatpush.msra.mxu0 %v1382_v54  ;;  %v1496_v52 = vld [vmem:[#allocation9 + $0x3b0] sm:$0xff]  ;;  %v1451_v54 = vld [vmem:[#allocation9 + $0x248] sm:$0xff] }
 0x1ad   :  { %1545 = vmatpush.msra.mxu1 %v1414_v55  ;;  %1573 = vmatpush.msra.mxu3 %v1502_v45  ;;  %v1415_v55 = vld [vmem:[#allocation9 + $0x128] sm:$0xff] }
 0x1ae   :  { %1564 = vmatpush.msra.mxu2 %v1448_v29  ;;  %1526 = vmatpush.msra.mxu0 %v1380_v57  ;;  %v1381_v57 = vld [vmem:[#allocation9 + $0x18] sm:$0xff]  ;;  %v1503_v32 = vld [vmem:[#allocation9 + $0x3e8] sm:$0xff] }
 0x1af   :  { %1546 = vmatpush.msra.mxu1 %v1412_v59  ;;  %1574 = vmatpush.msra.mxu3 %v1500_v19  ;;  %v1413_v59 = vld [vmem:[#allocation9 + $0x118] sm:$0xff]  ;;  %v1479_v45 = vld [vmem:[#allocation9 + $0x328] sm:$0xff] }
 0x1b0   :  { %1565 = vmatpush.msra.mxu2 %v1446_v60  ;;  %1527 = vmatpush.msra.mxu0 %v1378_v61  ;;  %v1492_v61 = vld [vmem:[#allocation9 + $0x390] sm:$0xff] }
 0x1b1   :  { %1547 = vmatpush.msra.mxu1 %v1410_v62  ;;  %1528 = vmatmul.f32.vlgmr.msra.gmra.mxu0 %v2194_v0  ;;  %v1379_v62 = vld [vmem:[#allocation9 + $0x8] sm:$0xff] }
 0x1b2   :  { %1548 = vmatmul.f32.vlgmr.msra.gmra.mxu1 %v2196_v2  ;;  %1592 = vmatpush.msrb.mxu0 %v1409_v1 }
 0x1b3   :  { %1612 = vmatpush.msrb.mxu1 %v1441_v3  ;;  %1566 = vmatpush.msra.mxu2 %v1444_v6  ;;  %v1447_v3 = vld [vmem:[#allocation9 + $0x228] sm:$0xff] }
 0x1b4   :  { %1593 = vmatpush.msrb.mxu0 %v1407_v7  ;;  %1575 = vmatpush.msra.mxu3 %v1498_v20  ;;  %v1411_v6 = vld [vmem:[#allocation9 + $0x108] sm:$0xff] }
 0x1b5   :  { %1613 = vmatpush.msrb.mxu1 %v1439_v10  ;;  %1567 = vmatpush.msra.mxu2 %v1442_v4  ;;  %v1445_v10 = vld [vmem:[#allocation9 + $0x218] sm:$0xff] }
 0x1b6   :  { %1594 = vmatpush.msrb.mxu0 %v1405_v8  ;;  %1576 = vmatpush.msra.mxu3 %v1496_v52 }
 0x1b7   :  { %1632 = vmatpush.msrb.mxu2 %v1473_v9  ;;  %1614 = vmatpush.msrb.mxu1 %v1437_v11  ;;  %v1490_v9 = vld [vmem:[#allocation9 + $0x380] sm:$0xff]  ;;  %v1443_v11 = vld [vmem:[#allocation9 + $0x208] sm:$0xff] }
 0x1b8   :  { %1595 = vmatpush.msrb.mxu0 %v1403_v12  ;;  %1577 = vmatpush.msra.mxu3 %v1494_v56 }
 0x1b9   :  { %1633 = vmatpush.msrb.mxu2 %v1471_v13  ;;  %1615 = vmatpush.msrb.mxu1 %v1435_v46  ;;  %v1360_v13 = vperm.slane %v2189_v33, 2  ;;  %v1488_v46 = vld [vmem:[#allocation9 + $0x370] sm:$0xff] }
 0x1ba   :  { %1596 = vmatpush.msrb.mxu0 %v1401_v14  ;;  %1578 = vmatpush.msra.mxu3 %v1492_v61  ;;  %v1707_v61 = vld [vmem:[#allocation12 + $0xf8] sm:$0xff] }
 0x1bb   :  { %1634 = vmatpush.msrb.mxu2 %v1469_v41  ;;  %1616 = vmatpush.msrb.mxu1 %v1433_v16  ;;  %v1486_v16 = vld [vmem:[#allocation9 + $0x360] sm:$0xff] }
 0x1bc   :  { %1597 = vmatpush.msrb.mxu0 %v1399_v17  ;;  %1579 = vmatpush.msra.mxu3 %v1490_v9  ;;  %v1685_v9 = vld [vmem:[#allocation12 + $0x48] sm:$0xff] }
 0x1bd   :  { %1635 = vmatpush.msrb.mxu2 %v1467_v18  ;;  %1617 = vmatpush.msrb.mxu1 %v1431_v21  ;;  %v1484_v18 = vld [vmem:[#allocation9 + $0x350] sm:$0xff] }
 0x1be   :  { %1598 = vmatpush.msrb.mxu0 %v1397_v23  ;;  %1580 = vmatpush.msra.mxu3 %v1488_v46  ;;  %v1482_v23 = vld [vmem:[#allocation9 + $0x340] sm:$0xff] }
 0x1bf   :  { %1636 = vmatpush.msrb.mxu2 %v1465_v26  ;;  %1618 = vmatpush.msrb.mxu1 %v1429_v27  ;;  %v1480_v26 = vld [vmem:[#allocation9 + $0x330] sm:$0xff]  ;;  %v1683_v46 = vld [vmem:[#allocation12 + $0x38] sm:$0xff] }
 0x1c0   :  { %1599 = vmatpush.msrb.mxu0 %v1395_v28  ;;  %1581 = vmatpush.msra.mxu3 %v1486_v16  ;;  %v1476_v27 = vld [vmem:[#allocation9 + $0x310] sm:$0xff]  ;;  %v1474_v28 = vld [vmem:[#allocation9 + $0x300] sm:$0xff] }
 0x1c1   :  { %1637 = vmatpush.msrb.mxu2 %v1463_v31  ;;  %1619 = vmatpush.msrb.mxu1 %v1427_v34  ;;  %v1505_v31 = vld [vmem:[#allocation9 + $0x3f8] sm:$0xff]  ;;  %v1680_v16 = vld [vmem:[#allocation12 + $0x20] sm:$0xff] }
 0x1c2   :  { %1600 = vmatpush.msrb.mxu0 %v1393_v63  ;;  %1582 = vmatpush.msra.mxu3 %v1484_v18  ;;  %v1501_v34 = vld [vmem:[#allocation9 + $0x3d8] sm:$0xff]  ;;  %v1499_v63 = vld [vmem:[#allocation9 + $0x3c8] sm:$0xff] }
 0x1c3   :  { %1638 = vmatpush.msrb.mxu2 %v1461_v35  ;;  %1620 = vmatpush.msrb.mxu1 %v1425_v36  ;;  %v1098_v30 = vpop.f32.mrf.mxu3  ;;  %v1118_v60 = vpop.f32.mrf.mxu0  ;;  %v1497_v35 = vld [vmem:[#allocation9 + $0x3b8] sm:$0xff]  ;;  %v1495_v36 = vld [vmem:[#allocation9 + $0x3a8] sm:$0xff] }
 0x1c4   :  { %1601 = vmatpush.msrb.mxu0 %v1391_v37  ;;  %v1099_v29 = vadd.f32 %v1098_v30, %v1079_v47  ;;  %1583 = vmatpush.msra.mxu3 %v1482_v23  ;;  %v1493_v37 = vld [vmem:[#allocation9 + $0x398] sm:$0xff] }
 0x1c5   :  { %1639 = vmatpush.msrb.mxu2 %v1459_v5  ;;  %1621 = vmatpush.msrb.mxu1 %v1423_v38  ;;  %v1491_v5 = vld [vmem:[#allocation9 + $0x388] sm:$0xff]  ;;  %v1489_v38 = vld [vmem:[#allocation9 + $0x378] sm:$0xff] }
 0x1c6   :  { %1602 = vmatpush.msrb.mxu0 %v1389_v42  ;;  %v1119_v1 = vadd.f32 %v1118_v60, %v1099_v29  ;;  %1584 = vmatpush.msra.mxu3 %v1480_v26  ;;  %v1485_v42 = vld [vmem:[#allocation9 + $0x358] sm:$0xff]  ;;  %v1697_v26 = vld [vmem:[#allocation12 + $0xa8] sm:$0xff] }
 0x1c7   :  { %1640 = vmatpush.msrb.mxu2 %v1457_v43  ;;  %1622 = vmatpush.msrb.mxu1 %v1421_v44  ;;  %v1483_v43 = vld [vmem:[#allocation9 + $0x348] sm:$0xff]  ;;  %v1481_v44 = vld [vmem:[#allocation9 + $0x338] sm:$0xff] }
 0x1c8   :  { %1603 = vmatpush.msrb.mxu0 %v1387_v39  ;;  %v1477_v39 = vld [vmem:[#allocation9 + $0x318] sm:$0xff] }
 0x1c9   :  { %1641 = vmatpush.msrb.mxu2 %v1455_v48  ;;  %1623 = vmatpush.msrb.mxu1 %v1419_v49  ;;  %v1690_v60 = vld [vmem:[#allocation12 + $0x70] sm:$0xff]  ;;  %v1699_v18 = vld [vmem:[#allocation12 + $0xb8] sm:$0xff] }
 0x1ca   :  { %1604 = vmatpush.msrb.mxu0 %v1385_v22  ;;  %v1138_v7 = vpop.f32.mrf.mxu1  ;;  %v1698_v23 = vld [vmem:[#allocation12 + $0xb0] sm:$0xff] }
 0x1cb   :  { %1642 = vmatpush.msrb.mxu2 %v1453_v50  ;;  %1624 = vmatpush.msrb.mxu1 %v1417_v51  ;;  %v1139_v4 = vadd.f32 %v1138_v7, %v1119_v1  ;;  %v1158_v8 = vpop.f32.mrf.mxu2  ;;  %v1706_v1 = vld [vmem:[#allocation12 + $0xf0] sm:$0xff]  ;;  %v1687_v7 = vld [vmem:[#allocation12 + $0x58] sm:$0xff] }
 0x1cc   :  { %1605 = vmatpush.msrb.mxu0 %v1383_v53 }
 0x1cd   :  { %1643 = vmatpush.msrb.mxu2 %v1451_v54  ;;  %1625 = vmatpush.msrb.mxu1 %v1415_v55  ;;  %v1159_v12 = vadd.f32 %v1158_v8, %v1139_v4  ;;  %v1361_v54 = vperm.slane %v2189_v33, 3  ;;  %v1704_v33 = vld [vmem:[#allocation12 + $0xe0] sm:$0xff]  ;;  %v1686_v4 = vld [vmem:[#allocation12 + $0x50] sm:$0xff] }
 0x1ce   :  { %1606 = vmatpush.msrb.mxu0 %v1381_v57  ;;  %v1178_v14 = vpop.f32.mrf.mxu3  ;;  %v1702_v8 = vld [vmem:[#allocation12 + $0xd0] sm:$0xff] }
 0x1cf   :  { %1644 = vmatpush.msrb.mxu2 %v1449_v58  ;;  %1626 = vmatpush.msrb.mxu1 %v1413_v59  ;;  %v1179_v41 = vadd.f32 %v1178_v14, %v1159_v12  ;;  %v1691_v59 = vld [vmem:[#allocation12 + $0x78] sm:$0xff]  ;;  %v1684_v12 = vld [vmem:[#allocation12 + $0x40] sm:$0xff]  ;;  %v1682_v14 = vld [vmem:[#allocation12 + $0x30] sm:$0xff] }
 0x1d0   :  { %1607 = vmatpush.msrb.mxu0 %v1379_v62  ;;  %v1689_v62 = vld [vmem:[#allocation12 + $0x68] sm:$0xff] }
 0x1d1   :  { %1645 = vmatpush.msrb.mxu2 %v1447_v3  ;;  %1627 = vmatpush.msrb.mxu1 %v1411_v6  ;;  %v1368_v17 = vadd.f32 %v1360_v13, %v1179_v41  ;;  %v1705_v3 = vld [vmem:[#allocation12 + $0xe8] sm:$0xff]  ;;  %v1688_v6 = vld [vmem:[#allocation12 + $0x60] sm:$0xff] }
 0x1d2   :  { %1608 = vmatmul.f32.vlgmr.msrb.gmra.mxu0 %v2194_v0  ;;  %1628 = vmatmul.f32.vlgmr.msrb.gmra.mxu1 %v2196_v2  ;;  %v1478_v2 = vld [vmem:[#allocation9 + $0x320] sm:$0xff]  ;;  %v1681_v41 = vld [vmem:[#allocation12 + $0x28] sm:$0xff] }
 0x1d3   :  { %1646 = vmatpush.msrb.mxu2 %v1445_v10  ;;  %v1372_v21 = vmul.f32 0.2, %v1368_v17  ;;  %1585 = vmatpush.msra.mxu3 %v1478_v2  ;;  %v1703_v10 = vld [vmem:[#allocation12 + $0xd8] sm:$0xff]  ;;  %v1700_v13 = vld [vmem:[#allocation12 + $0xc0] sm:$0xff] }
 0x1d4   :  { %1712 = vmatpush.msra.mxu0 %v1691_v59  ;;  %1732 = vmatpush.msra.mxu1 %v1707_v61  ;;  %v1676_v2 = vld [vmem:[#allocation12] sm:$0xff] }
 0x1d5   :  { %1647 = vmatpush.msrb.mxu2 %v1443_v11  ;;  %v1376_v0 = vmax.f32 %v1368_v17, %v1372_v21  ;;  %1586 = vmatpush.msra.mxu3 %v1476_v27  ;;  %v1701_v11 = vld [vmem:[#allocation12 + $0xc8] sm:$0xff]  ;;  %v1679_v17 = vld [vmem:[#allocation12 + $0x18] sm:$0xff]  ;;  %v1678_v21 = vld [vmem:[#allocation12 + $0x10] sm:$0xff] }
 0x1d6   :  { %1713 = vmatpush.msra.mxu0 %v1690_v60  ;;  %1733 = vmatpush.msra.mxu1 %v1706_v1  ;;  %v1696_v27 = vld [vmem:[#allocation12 + $0xa0] sm:$0xff] }
 0x1d7   :  { %1568 = vmatmul.f32.vlgmr.msra.gmra.mxu2 %v1376_v0  ;;  %1587 = vmatpush.msra.mxu3 %v1474_v28  ;;  %v1695_v28 = vld [vmem:[#allocation12 + $0x98] sm:$0xff] }
 0x1d8   :  { %1714 = vmatpush.msra.mxu0 %v1689_v62  ;;  %1734 = vmatpush.msra.mxu1 %v1705_v3 }
 0x1d9   :  { %1652 = vmatpush.msrb.mxu3 %v1505_v31  ;;  %v1694_v31 = vld [vmem:[#allocation12 + $0x90] sm:$0xff] }
 0x1da   :  { %1715 = vmatpush.msra.mxu0 %v1688_v6  ;;  %1735 = vmatpush.msra.mxu1 %v1704_v33 }
 0x1db   :  { %1653 = vmatpush.msrb.mxu3 %v1503_v32  ;;  %v1693_v32 = vld [vmem:[#allocation12 + $0x88] sm:$0xff] }
 0x1dc   :  { %1716 = vmatpush.msra.mxu0 %v1687_v7  ;;  %1736 = vmatpush.msra.mxu1 %v1703_v10 }
 0x1dd   :  { %1654 = vmatpush.msrb.mxu3 %v1501_v34  ;;  %v1692_v34 = vld [vmem:[#allocation12 + $0x80] sm:$0xff] }
 0x1de   :  { %1717 = vmatpush.msra.mxu0 %v1686_v4  ;;  %1737 = vmatpush.msra.mxu1 %v1702_v8 }
 0x1df   :  { %1648 = vmatmul.f32.vlgmr.msrb.gmra.mxu2 %v1376_v0  ;;  %1655 = vmatpush.msrb.mxu3 %v1499_v63  ;;  %v1677_v0 = vld [vmem:[#allocation12 + $0x8] sm:$0xff]  ;;  %v1506_v63 = vld [vmem:[#allocation11] sm:$0x3] }
 0x1e0   :  { %1718 = vmatpush.msra.mxu0 %v1685_v9  ;;  %1738 = vmatpush.msra.mxu1 %v1701_v11 }
 0x1e1   :  { %1656 = vmatpush.msrb.mxu3 %v1497_v35  ;;  %v1508_v35 = vperm.slane %v1506_v63, 0 }
 0x1e2   :  { %1719 = vmatpush.msra.mxu0 %v1684_v12  ;;  %1739 = vmatpush.msra.mxu1 %v1700_v13 }
 0x1e3   :  { %1657 = vmatpush.msrb.mxu3 %v1495_v36 }
 0x1e4   :  { %1720 = vmatpush.msra.mxu0 %v1683_v46  ;;  %1740 = vmatpush.msra.mxu1 %v1699_v18 }
 0x1e5   :  { %1658 = vmatpush.msrb.mxu3 %v1493_v37 }
 0x1e6   :  { %1721 = vmatpush.msra.mxu0 %v1682_v14  ;;  %1741 = vmatpush.msra.mxu1 %v1698_v23 }
 0x1e7   :  { %1659 = vmatpush.msrb.mxu3 %v1491_v5 }
 0x1e8   :  { %1722 = vmatpush.msra.mxu0 %v1681_v41  ;;  %1742 = vmatpush.msra.mxu1 %v1697_v26 }
 0x1e9   :  { %1660 = vmatpush.msrb.mxu3 %v1489_v38 }
 0x1ea   :  { %1723 = vmatpush.msra.mxu0 %v1680_v16  ;;  %1743 = vmatpush.msra.mxu1 %v1696_v27 }
 0x1eb   :  { %1661 = vmatpush.msrb.mxu3 %v1487_v40 }
 0x1ec   :  { %1724 = vmatpush.msra.mxu0 %v1679_v17  ;;  %1744 = vmatpush.msra.mxu1 %v1695_v28 }
 0x1ed   :  { %1662 = vmatpush.msrb.mxu3 %v1485_v42  ;;  %v1509_v42 = vperm.slane %v1506_v63, 1 }
 0x1ee   :  { %1725 = vmatpush.msra.mxu0 %v1678_v21  ;;  %1745 = vmatpush.msra.mxu1 %v1694_v31 }
 0x1ef   :  { %1663 = vmatpush.msrb.mxu3 %v1483_v43 }
 0x1f0   :  { %1726 = vmatpush.msra.mxu0 %v1677_v0  ;;  %1746 = vmatpush.msra.mxu1 %v1693_v32 }
 0x1f1   :  { %1664 = vmatpush.msrb.mxu3 %v1481_v44 }
 0x1f2   :  { %1727 = vmatpush.msra.mxu0 %v1676_v2  ;;  %1747 = vmatpush.msra.mxu1 %v1692_v34 }
 0x1f3   :  { %1665 = vmatpush.msrb.mxu3 %v1479_v45 }
 0x1f5   :  { %1666 = vmatpush.msrb.mxu3 %v1477_v39 }
 0x1f7   :  { %1667 = vmatpush.msrb.mxu3 %v1475_v15 }
 0x1ff   :  { %v1198_v19 = vpop.f32.mrf.mxu0 }
 0x201   :  { %v1218_v48 = vpop.f32.mrf.mxu1 }
 0x202   :  { %v1219_v49 = vadd.f32 %v1218_v48, %v1198_v19  ;;  %v1238_v24 = vpop.f32.mrf.mxu2 }
 0x204   :  { %v1239_v25 = vadd.f32 %v1238_v24, %v1219_v49 }
 0x205   :  { %v1258_v20 = vpop.f32.mrf.mxu3 }
 0x206   :  { %v1259_v22 = vadd.f32 %v1258_v20, %v1239_v25 }
 0x20c   :  { %v1278_v50 = vpop.f32.mrf.mxu0 }
 0x20d   :  { %v1279_v51 = vadd.f32 %v1278_v50, %v1259_v22  ;;  %v1298_v47 = vpop.f32.mrf.mxu1 }
 0x20f   :  { %v1299_v52 = vadd.f32 %v1298_v47, %v1279_v51 }
 0x214   :  { %v1318_v53 = vpop.f32.mrf.mxu2 }
 0x215   :  { %v1319_v30 = vadd.f32 %v1318_v53, %v1299_v52  ;;  %v1810_v52 = vld [vmem:[#allocation14] ss:$0 sm:$0xff] }
 0x218   :  { %v1338_v55 = vpop.f32.mrf.mxu3 }
 0x219   :  { %v1339_v29 = vadd.f32 %v1338_v55, %v1319_v30 }
 0x21b   :  { %v1369_v56 = vadd.f32 %v1361_v54, %v1339_v29 }
 0x21d   :  { %v1373_v57 = vmul.f32 0.2, %v1369_v56 }
 0x21f   :  { %v1377_v58 = vmax.f32 %v1369_v56, %v1373_v57 }
 0x221   :  { %1588 = vmatmul.f32.vlgmr.msra.gmra.mxu3 %v1377_v58 }
 0x229   :  { %1668 = vmatmul.f32.vlgmr.msrb.gmra.mxu3 %v1377_v58 }
 0x22e   :  { %v1529_v36 = vpop.f32.mrf.mxu0 }
 0x22f   :  { %v1530_v37 = vadd.f32 %v1529_v36, %v1508_v35  ;;  %v1549_v38 = vpop.f32.mrf.mxu1 }
 0x231   :  { %v1550_v40 = vadd.f32 %v1549_v38, %v1530_v37 }
 0x24f   :  { %v1609_v43 = vpop.f32.mrf.mxu0  ;;  %v1629_v48 = vpop.f32.mrf.mxu1 }
 0x250   :  { %v1610_v19 = vadd.f32 %v1609_v43, %v1509_v42 }
 0x252   :  { %v1630_v24 = vadd.f32 %v1629_v48, %v1610_v19 }
 0x25a   :  { %v1569_v5 = vpop.f32.mrf.mxu2 }
 0x25b   :  { %v1570_v44 = vadd.f32 %v1569_v5, %v1550_v40 }
 0x262   :  { %v1649_v49 = vpop.f32.mrf.mxu2 }
 0x263   :  { %v1650_v20 = vadd.f32 %v1649_v49, %v1630_v24 }
 0x2a4   :  { %v1589_v45 = vpop.f32.mrf.mxu3 }
 0x2a5   :  { %v1590_v39 = vadd.f32 %v1589_v45, %v1570_v44 }
 0x2a7   :  { %v1672_v15 = vmul.f32 0.2, %v1590_v39 }
 0x2a9   :  { %v1674_v25 = vmax.f32 %v1590_v39, %v1672_v15 }
 0x2ab   :  { %1728 = vmatmul.f32.vlgmr.msra.gmra.mxu0 %v1674_v25 }
 0x2ac   :  { %v1669_v22 = vpop.f32.mrf.mxu3 }
 0x2ad   :  { %v1670_v50 = vadd.f32 %v1669_v22, %v1650_v20 }
 0x2af   :  { %v1673_v51 = vmul.f32 0.2, %v1670_v50 }
 0x2b1   :  { %v1675_v47 = vmax.f32 %v1670_v50, %v1673_v51 }
 0x2b3   :  { %1748 = vmatmul.f32.vlgmr.msra.gmra.mxu1 %v1675_v47 }
 0x328   :  { %v1729_v53 = vpop.f32.mrf.mxu0 }
 0x329   :  { %v1730_v30 = vadd.f32 %v1810_v52, %v1729_v53 }
 0x330   :  { %v1749_v54 = vpop.f32.mrf.mxu1 }
 0x331   :  { %v1750_v55 = vadd.f32 %v1749_v54, %v1730_v30 }
 0x333   :  { %v1794_v29 = vmul.f32 -1.442695, %v1750_v55 }
 0x335   :  { %1811 = vpow2.f32 %v1794_v29 }
 0x33b   :  { %v1812_v56 = vpop.eup %1811 }
 0x33c   :  { %v1755_v57 = vadd.f32 1.0, %v1812_v56 }
 0x33e   :  { %1813 = vrcp.f32 %v1755_v57  ;;  %v1767_v61 = vand.u32 2147483648, %v1755_v57  ;;  %v1765_v1 = vand.u32 2147483647, %v1755_v57  ;;  %vm1761_vm1 = vweird.f32 %v1755_v57 }
 0x340   :  { %v1768_v6 = vor.u32 1.1754944e-38, %v1767_v61  ;;  %vm1766_vm3 = vcmp.eq.f32.partialorder %v1765_v1, 8.507059e+37 }
 0x344   :  { %v1814_v58 = vpop.eup %1813 }
 0x345   :  { %v1757_v59 = vmul.f32 %v1814_v58, %v1755_v57  ;;  %vm1762_vm0 = vweird.f32 %v1814_v58 }
 0x346   :  { %vm1763_vm2 = vmor %vm1761_vm1, %vm1762_vm0 }
 0x347   :  { %v1758_v60 = vsub.f32 1.0, %v1757_v59 }
 0x349   :  { %v1759_v62 = vmul.f32 %v1814_v58, %v1758_v60 }
 0x34b   :  { %v1760_v3 = vadd.f32 %v1814_v58, %v1759_v62 }
 0x34d   :  { %v1764_v33 = vsel %vm1763_vm2, %v1814_v58, %v1760_v3 }
 0x34e   :  { %v1769_v7 = vsel %vm1766_vm3, %v1768_v6, %v1764_v33 }
 0x34f   :  { %1771 = vst [vmem:[#allocation15] sm:$0xff] %v1769_v7 }
 0x350   :  { %1775 = vsyncadd [#allocation5], 96  ;;  %s1778_s1 = sshll.u32 %s2216_s7, 4  ;;  %s2038_s15 = smov [#allocation15]   ;;  %s1779_s1 = int_to_ptr.hbm [resolvable:$true] %s1778_s1 }
 0x351   :  { %s1776_s16 = sshll.u32 %s2038_s15, 4  ;;  %s2039_s17 = smov 2   ;;  %s1777_s16 = int_to_ptr.vmem [resolvable:$true] %s1776_s16 }
 0x352   :  { %1784 = dma.vmem_to_hbm [thread:$0]  %s1777_s16, 32, %s1779_s1, [#allocation5], %s2027_s30, %s2027_s30, %s2039_s17  }
 0x353   :  { %2023 = dma.done.wait [#allocation5], 128  }
 0x354   :  { %2024 = vsyncadd [#allocation5], 4294967168 }
 0x355   :  { %1789 = vsyncpa [#allocation4], 1 }
 0x356   :  { %1790 = vsyncpa [#allocation7], 1 }
 0x357   :  { %1791 = vsyncpa [#allocation10], 1 }
 0x358   :  { %1792 = vsyncpa [#allocation13], 1 }
 0x359   :  { %1793 = vsyncpa [#allocation5], 1 }

</bundles_post_ra>
